<compile_context>
chip_gen: v6e
topology: v6e:2x2x1
jax: 0.10.0
libtpu: 0.0.40
codegen_flags: <defaults>
</compile_context>

<pallas_src>
import math

import jax
import jax.numpy as jnp
from jax.experimental import pallas as pl
from jax.experimental.pallas import tpu as pltpu

FEATURE_DIM = 7 * 7 * 512        # 25088
BOTTLENECK_DIM = 256
CLASS_NUM = 10
BN_EPS = 1e-5

TK = 12544                       # 25088 / 2  -> 2 K-steps, multiple of 128
K_STEPS = FEATURE_DIM // TK
N_TILE = 128                     # bottleneck split for megacore parallelism
N_SPLIT = BOTTLENECK_DIM // N_TILE
OUT_PAD = 128                    # lane-dense padded class dimension


def classifier_kernel(x_ref, w1_ref, w2_ref, out_ref, acc_ref):
    """Grid = (n, k).  n: parallel split of the bottleneck dim, k: K reduction."""
    k = pl.program_id(1)

    @pl.when(k == 0)
    def _():
        acc_ref[...] = jnp.zeros_like(acc_ref)

    # Hot path: bf16 (B, TK) @ (TK, N_TILE) accumulation on the MXU, f32 accumulator.
    acc_ref[...] += jnp.dot(x_ref[...], w1_ref[...],
                            preferred_element_type=jnp.float32)

    @pl.when(k == pl.num_programs(1) - 1)
    def _():
        # BN scale is pre-folded into w2_ref; bias term is added in the wrapper.
        out_ref[...] = jnp.dot(acc_ref[...], w2_ref[...],
                               preferred_element_type=jnp.float32
                               ).astype(out_ref.dtype)


def classifier_forward(x_nchw, w1, b1, gamma, beta, running_mean, running_var, w2):
    """x_nchw: (B, 512, 7, 7) float32. Returns (B, CLASS_NUM) float32."""
    B = x_nchw.shape[0]
    x = x_nchw.reshape(B, -1)                        # row-major, same as torch .view
    assert x.shape[1] == FEATURE_DIM

    # ---- eval-mode folding (done once, in XLA, outside the kernel) ----
    # feat_bn = (x@W1 + b1 - mean) * scale + beta,  scale = gamma / sqrt(var + eps)
    # out     = feat_bn @ W2
    #         = (x@W1) @ (diag(scale) @ W2)  +  ((b1 - mean)*scale + beta) @ W2
    scale = gamma / jnp.sqrt(running_var + BN_EPS)                       # (256,)
    w2_eff = w2 * scale[:, None]                                         # (256, C)
    out_bias = ((b1 - running_mean) * scale + beta) @ w2                 # (C,)

    # Lane-dense padded W2 (zeros beyond CLASS_NUM) -> unmasked stores in the kernel.
    w2_pad = jnp.zeros((BOTTLENECK_DIM, OUT_PAD), jnp.float32)
    w2_pad = w2_pad.at[:, :CLASS_NUM].set(w2_eff)

    # Halve the dominant HBM stream: bf16 activations + bf16 W1, f32 accumulation.
    x_bf16 = x.astype(jnp.bfloat16)
    w1_bf16 = w1.astype(jnp.bfloat16)

    partials = pl.pallas_call(
        classifier_kernel,
        out_shape=jax.ShapeDtypeStruct((N_SPLIT, B, OUT_PAD), jnp.float32),
        grid_spec=pltpu.PrefetchScalarGridSpec(
            num_scalar_prefetch=0,
            grid=(N_SPLIT, K_STEPS),
            in_specs=[
                pl.BlockSpec((B, TK), lambda n, k: (0, k)),            # x tile
                pl.BlockSpec((TK, N_TILE), lambda n, k: (k, n)),       # W1 tile (bf16)
                pl.BlockSpec((N_TILE, OUT_PAD), lambda n, k: (n, 0)),  # folded W2 half
            ],
            out_specs=pl.BlockSpec((None, B, OUT_PAD), lambda n, k: (n, 0, 0)),
            scratch_shapes=[pltpu.VMEM((B, N_TILE), jnp.float32)],
        ),
        compiler_params=pltpu.CompilerParams(
            dimension_semantics=("parallel", "arbitrary"),
            vmem_limit_bytes=32 * 1024 * 1024,
        ),
    )(x_bf16, w1_bf16, w2_pad)

    # Sum the two bottleneck-half partials, drop lane padding, add folded bias.
    return partials.sum(axis=0)[:, :CLASS_NUM] + out_bias[None, :]


def init_params(key):
    k1, k2 = jax.random.split(key, 2)
    # bottleneck Linear: xavier_normal_ -> std = sqrt(2 / (fan_in + fan_out))
    std1 = math.sqrt(2.0 / (FEATURE_DIM + BOTTLENECK_DIM))
    w1 = jax.random.normal(k1, (FEATURE_DIM, BOTTLENECK_DIM), jnp.float32) * std1
    b1 = jnp.zeros((BOTTLENECK_DIM,), jnp.float32)
    # BatchNorm1d default init (init_weights is NOT applied to bn in the module)
    gamma = jnp.ones((BOTTLENECK_DIM,), jnp.float32)
    beta = jnp.zeros((BOTTLENECK_DIM,), jnp.float32)
    running_mean = jnp.zeros((BOTTLENECK_DIM,), jnp.float32)
    running_var = jnp.ones((BOTTLENECK_DIM,), jnp.float32)
    # fc Linear (no bias): xavier_normal_
    std2 = math.sqrt(2.0 / (BOTTLENECK_DIM + CLASS_NUM))
    w2 = jax.random.normal(k2, (BOTTLENECK_DIM, CLASS_NUM), jnp.float32) * std2
    return w1, b1, gamma, beta, running_mean, running_var, w2


def reference_forward(x_nchw, w1, b1, gamma, beta, running_mean, running_var, w2):
    """Pure-JAX f32 reference of the PyTorch eval-mode forward."""
    x = x_nchw.reshape(x_nchw.shape[0], -1)
    feat = x @ w1 + b1
    feat = (feat - running_mean) / jnp.sqrt(running_var + BN_EPS) * gamma + beta
    # Dropout (eval) = identity
    return feat @ w2


if __name__ == "__main__":
    key = jax.random.PRNGKey(0)
    kx, kp = jax.random.split(key)

    B = 2
    x = jax.random.normal(kx, (B, 512, 7, 7), jnp.float32)   # NCHW, like PyTorch
    params = init_params(kp)

    out = classifier_forward(x, *params)
    out = jax.block_until_ready(out)

    ref = reference_forward(x, *params)
    assert out.shape == (B, CLASS_NUM)
    # bf16 weight/activation stream vs f32 reference -> modest tolerance.
    assert jnp.allclose(out, ref, atol=5e-2, rtol=2e-2), (
        f"max abs err {jnp.max(jnp.abs(out - ref))}")

    print("KERNEL_OK")
</pallas_src>

<mosaic_0001>
module attributes {stable_mosaic.version = 11 : i64} {
  func.func @classifier_kernel(%arg0: i32, %arg1: i32, %arg2: memref<2x12544xbf16, #tpu.memory_space<vmem>>, %arg3: memref<12544x128xbf16, #tpu.memory_space<vmem>>, %arg4: memref<128x128xf32, #tpu.memory_space<vmem>>, %arg5: memref<1x2x128xf32, #tpu.memory_space<vmem>>, %arg6: memref<2x128xf32, #tpu.memory_space<vmem>>) attributes {dimension_semantics = [#tpu.dimension_semantics<parallel>, #tpu.dimension_semantics<arbitrary>], iteration_bounds = array<i64: 2, 2>, scalar_prefetch = 0 : i64, scratch_operands = 1 : i64, tpu.core_type = #tpu.core_type<tc>, window_params = [{transform_indices = @transform_0, window_bounds = array<i64: 2, 12544>}, {transform_indices = @transform_1, window_bounds = array<i64: 12544, 128>}, {transform_indices = @transform_2, window_bounds = array<i64: 128, 128>}, {transform_indices = @transform_3, window_bounds = array<i64: 1, 2, 128>}]} {
    %c0_i32 = arith.constant 0 : i32
    %0 = arith.cmpi eq, %arg1, %c0_i32 : i32
    %1 = arith.extui %0 : i1 to i32
    %c0_i32_0 = arith.constant 0 : i32
    %2 = arith.cmpi ne, %1, %c0_i32_0 : i32
    scf.if %2 {
      %cst_9 = arith.constant 0.000000e+00 : f32
      %12 = vector.broadcast %cst_9 : f32 to vector<2x128xf32>
      %c0_10 = arith.constant 0 : index
      %c0_11 = arith.constant 0 : index
      %13 = vector.load %arg6[%c0_10, %c0_11] : memref<2x128xf32, #tpu.memory_space<vmem>>, vector<2x128xf32>
      tpu.vector_store %arg6[%c0_10, %c0_11], %12 {strides = array<i32>} : memref<2x128xf32, #tpu.memory_space<vmem>>, vector<2x128xf32>,
    } else {
    }
    %c0 = arith.constant 0 : index
    %c0_1 = arith.constant 0 : index
    %3 = vector.load %arg6[%c0, %c0_1] : memref<2x128xf32, #tpu.memory_space<vmem>>, vector<2x128xf32>
    %c0_2 = arith.constant 0 : index
    %c0_3 = arith.constant 0 : index
    %4 = vector.load %arg2[%c0_2, %c0_3] : memref<2x12544xbf16, #tpu.memory_space<vmem>>, vector<2x12544xbf16>
    %c0_4 = arith.constant 0 : index
    %c0_5 = arith.constant 0 : index
    %5 = vector.load %arg3[%c0_4, %c0_5] : memref<12544x128xbf16, #tpu.memory_space<vmem>>, vector<12544x128xbf16>
    %cst = arith.constant dense<0.000000e+00> : vector<2x128xf32>
    %6 = tpu.matmul %4, %5, %cst {dimension_numbers = #tpu.dot_dimension_numbers<[1], [0], [0], [1], [0, 0, 1, 1], [], []>} : vector<2x12544xbf16>, vector<12544x128xbf16>, vector<2x128xf32> -> vector<2x128xf32>
    %7 = arith.addf %3, %6 : vector<2x128xf32>
    %c0_6 = arith.constant 0 : index
    %c0_7 = arith.constant 0 : index
    %8 = vector.load %arg6[%c0_6, %c0_7] : memref<2x128xf32, #tpu.memory_space<vmem>>, vector<2x128xf32>
    tpu.vector_store %arg6[%c0_6, %c0_7], %7 {strides = array<i32>} : memref<2x128xf32, #tpu.memory_space<vmem>>, vector<2x128xf32>,
    %c1_i32 = arith.constant 1 : i32
    %9 = arith.cmpi eq, %arg1, %c1_i32 : i32
    %10 = arith.extui %9 : i1 to i32
    %c0_i32_8 = arith.constant 0 : i32
    %11 = arith.cmpi ne, %10, %c0_i32_8 : i32
    scf.if %11 {
      %c0_9 = arith.constant 0 : index
      %c0_10 = arith.constant 0 : index
      %12 = vector.load %arg6[%c0_9, %c0_10] : memref<2x128xf32, #tpu.memory_space<vmem>>, vector<2x128xf32>
      %c0_11 = arith.constant 0 : index
      %c0_12 = arith.constant 0 : index
      %13 = vector.load %arg4[%c0_11, %c0_12] : memref<128x128xf32, #tpu.memory_space<vmem>>, vector<128x128xf32>
      %cst_13 = arith.constant dense<0.000000e+00> : vector<2x128xf32>
      %14 = tpu.matmul %12, %13, %cst_13 {dimension_numbers = #tpu.dot_dimension_numbers<[1], [0], [0], [1], [0, 0, 1, 1], [], []>} : vector<2x128xf32>, vector<128x128xf32>, vector<2x128xf32> -> vector<2x128xf32>
      %c0_14 = arith.constant 0 : index
      %c0_15 = arith.constant 0 : index
      %c0_16 = arith.constant 0 : index
      %15 = vector.load %arg5[%c0_14, %c0_15, %c0_16] : memref<1x2x128xf32, #tpu.memory_space<vmem>>, vector<1x2x128xf32>
      %16 = vector.shape_cast %15 : vector<1x2x128xf32> to vector<2x128xf32>
      %17 = vector.shape_cast %14 : vector<2x128xf32> to vector<1x2x128xf32>
      tpu.vector_store %arg5[%c0_14, %c0_15, %c0_16], %17 {strides = array<i32>} : memref<1x2x128xf32, #tpu.memory_space<vmem>>, vector<1x2x128xf32>,
    } else {
    }
    return
  }
  func.func @transform_0(%arg0: i32, %arg1: i32) -> (i32, i32) {
    %c0_i32 = arith.constant 0 : i32
    %c0_i32_0 = arith.constant 0 : i32
    return %c0_i32, %arg1 : i32, i32
  }
  func.func @transform_1(%arg0: i32, %arg1: i32) -> (i32, i32) {
    %c0_i32 = arith.constant 0 : i32
    return %arg1, %arg0 : i32, i32
  }
  func.func @transform_2(%arg0: i32, %arg1: i32) -> (i32, i32) {
    %c0_i32 = arith.constant 0 : i32
    %c0_i32_0 = arith.constant 0 : i32
    return %arg0, %c0_i32 : i32, i32
  }
  func.func @transform_3(%arg0: i32, %arg1: i32) -> (i32, i32, i32) {
    %c0_i32 = arith.constant 0 : i32
    %c0_i32_0 = arith.constant 0 : i32
    %c0_i32_1 = arith.constant 0 : i32
    return %arg0, %c0_i32, %c0_i32_0 : i32, i32, i32
  }
}

</mosaic_0001>

<bundles_post_ra>
// kernel: tpu_custom_call.1
= control target key start
LH: loop header
LB: loop body
LE: loop exit
PB: predicated region body
PF: predicated region fallthrough
CT: control target
= control target key end

     0   :  { %s13976_s0 = inlined_call_operand.hbm [shape: bf16[2,25088], index: 0, kind: input, shape index: {}]   ;;  %s13977_s1 = inlined_call_operand.hbm [shape: bf16[25088,256], index: 1, kind: input, shape index: {}]   ;;  %s13978_s2 = inlined_call_operand.hbm [shape: f32[256,128], index: 2, kind: input, shape index: {}]   ;;  %s13979_s3 = inlined_call_operand.hbm [shape: f32[2,2,128], index: 3, kind: output, shape index: {}]  }
   0x1   :  { %13990 = sst [smem:[#allocation21_spill]] %s13976_s0 }
   0x2   :  { %13991 = sst [smem:[#allocation22_spill]] %s13977_s1 }
   0x3   :  { %13992 = sst [smem:[#allocation23_spill]] %s13979_s3 }
   0x4   :  { %8 = vsyncpa [#allocation4], 0 }
   0x5   :  { %10 = vsyncpa [#allocation4 + $0x1], 0 }
   0x6   :  { %11 = vsyncpa [#allocation7], 0 }
   0x7   :  { %13 = vsyncpa [#allocation7 + $0x1], 0 }
   0x8   :  { %14 = vsyncpa [#allocation5], 0 }
   0x9   :  { %16 = vsyncpa [#allocation5 + $0x1], 0  ;;  %s12641_s12 = smov 0   ;;  %s12643_s13 = smov 0  }
   0xa   :  { %s12645_s14 = smov 0   ;;  %s12647_s15 = smov 0  }
   0xb   :  { %s12649_s16 = smov 0   ;;  %s12651_s17 = smov 0  }
   0xc   :  { %s12653_s18 = smov 0   ;;  %s12655_s19 = smov 0  }
   0xd   :  { %s12657_s20 = smov 0   ;;  %s12659_s21 = smov 0  }
   0xe   :  { %s12661_s22 = smov 0   ;;  %s12663_s23 = smov 0  }
   0xf   :  { %s12665_s24 = smov 0   ;;  %s12667_s25 = smov 0  }
  0x10 LB: > { %13993 = sst [smem:[#allocation14_spill]] %s12591_s21  ;;  %p49_p0 = scmp.eq.s32.totalorder %s12607_s25, 0  ;;  %s12607_s25 = sphi %s12667_s25, %s22_s25   ;;  %s12603_s24 = sphi %s12665_s24, %s14031_s24   ;;  %s12599_s23 = sphi %s12663_s23, %s14030_s23   ;;  %s12595_s22 = sphi %s12661_s22, %s14029_s22   ;;  %s12591_s21 = sphi %s12659_s21, %s14028_s21   ;;  %s12587_s20 = sphi %s12657_s20, %s14040_s20   ;;  %s12583_s19 = sphi %s12655_s19, %s14039_s19   ;;  %s12579_s18 = sphi %s12653_s18, %s14038_s18   ;;  %s12575_s17 = sphi %s12651_s17, %s14037_s17   ;;  %s12571_s16 = sphi %s12649_s16, %s14036_s16   ;;  %s12567_s15 = sphi %s12647_s15, %s14035_s15   ;;  %s12563_s14 = sphi %s12645_s14, %s14034_s14   ;;  %s12559_s13 = sphi %s12643_s13, %s14033_s13   ;;  %s12555_s12 = sphi %s12641_s12, %s14032_s12  }
  0x11   : > { %13994 = sst [smem:[#allocation15_spill]] %s12595_s22  ;;  %p76_p1 = scmp.ne.s32.totalorder %s12575_s17, %s12571_s16 }
  0x12   : > { %13995 = sst [smem:[#allocation16_spill]] %s12599_s23  ;;  %p82_p2 = scmp.ne.s32.totalorder %s12571_s16, %s12567_s15 }
  0x13   : > { %13996 = sst [smem:[#allocation17_spill]] %s12603_s24  ;;  %p78_p3 = por %p76_p1, %p49_p0 }
  0x14   : > { %p13984_p4 = scmp.lt.s32.totalorder %s12607_s25, 4  ;;  %s177_s28 = sand.u32 1, %s12607_s25  }
  0x15   : > { %s179_s29 = sand.u32 1, %s12575_s17   ;;  %s10295_s4 = smul.u32 3136, %s12599_s23 }
  0x16   : > { %s11428_s30 = smul.u32 6272, %s179_s29  ;;  %p12726_p5 = pnand %p13984_p4, %p78_p3 }
  0x17   : > { %s187_s6 = sadd.s32 %s12603_s24, %s10295_s4  ;;  %s13998_s1 = sld [smem:[#allocation22_spill]] }
  0x18   : > { %s181_s7 = scalar_lea.vmem [#allocation6], %s11428_s30  ;;  %s9496_s9 = sshll.u32 %s187_s6, 6 }
  0x19   : > { %s190_s8 = sshll.u32 %s181_s7, 4  ;;  %s12734_s26 = scalar_lea.sflag [#allocation7], %s177_s28  ;;  %s191_s8 = int_to_ptr.vmem [resolvable:$true] %s190_s8 }
  0x1a   : > { %p12373_p6 = pneg %p12726_p5  ;;  %s12384_s29 = scalar_lea.vmem %s191_s8, 100352 }
  0x1b   : > { %p12385_p7 = scmp.ne.s32.totalorder %s191_s8, %s12384_s29  ;;  %s12609_s3 = smov [#allocation6]  }
  0x1c   : > { %s12389_s22 = sshll.u32 %s12609_s3, 4  ;;  %s12390_s22 = int_to_ptr.vmem [resolvable:$false] %s12389_s22 }
  0x1d   : > { %s189_s27 = scalar_lea.hbm %s13998_s1, %s9496_s9  ;;  %p12387_p8 = pnand %p12385_p7, %p12373_p6 }
  0x1e   : > { %s12391_s4 = scalar_lea.vmem %s12390_s22, 200704  ;;  %p12392_p10 = scmp.lt.s32.totalorder %s191_s8, %s12390_s22 }
  0x1f   : > { %p12388_p9 = pneg %p12387_p8  ;;  %p12393_p11 = scmp.lt.s32.totalorder %s12391_s4, %s12384_s29 }
  0x21   : > { %p12394_p12 = por %p12393_p11, %p12392_p10 }
  0x23   : > { %p12395_p13 = pnand %p12394_p12, %p12388_p9 }
  0x25   : > { %12398 = shalt.err (!%p12395_p13)
}
  0x26   : > { %s13981_s30 = smov 128   ;;  %s12611_s3 = smov 64  }
  0x27   : > { %s12612_s22 = smov 4   ;;  %p9500_p1 = scmp.ge.s32.totalorder %s12607_s25, 1 }
  0x28   : > { %11445 = dma.hbm_to_vmem [thread:$0]  (!%p12726_p5), %s189_s27, 100352, %s191_s8, %s12734_s26, %s13981_s30, %s12611_s3, %s12612_s22  }
  0x29   : > { %p219_p3 = scmp.lt.s32.totalorder %s12607_s25, 5  ;;  %s12749_s6 = sadd.s32 4294967295, %s12607_s25  }
  0x2a   : > { %s31_s7 = sadd.s32 1, %s12599_s23  ;;  %s41_s9 = sadd.s32 1, %s12587_s20 }
  0x2b   : > { %p12744_p6 = pnand %p9500_p1, %p219_p3  ;;  %p32_p7 = scmp.ge.s32.totalorder %s31_s7, 2 }
  0x2c   : > { %p48_p5 = scmp.ne.s32.totalorder %s12587_s20, %s12583_s19  ;;  %p54_p8 = scmp.ne.s32.totalorder %s12583_s19, %s12579_s18 }
  0x2d   : > { %p13985_p9 = scmp.eq.s32.totalorder %s12749_s6, 0  ;;  %s14042_s7 = smov (%p32_p7, %s31_s7), 0 }
  0x2e   : > { %14000 = sst [smem:[#allocation18_spill]] %s14042_s7  ;;  %s14001_s27 = sadd.s32 1, %s12603_s24 }
  0x2f   : > { %s14044_s27 = smov (!%p32_p7, %s14001_s27), %s12603_s24  ;;  %s38_s5 = ssub.s32 %s12599_s23, %s14042_s7 }
  0x30   : > { %p12767_p10 = por %p49_p0, %p48_p5  ;;  %p36_p11 = scmp.ge.s32.totalorder %s14044_s27, 2 }
  0x31   : > { %p39_p12 = scmp.eq.s32.totalorder %s38_s5, 0  ;;  %p12773_p13 = por %p13985_p9, %p54_p8 }
  0x32   : > { %p12782_p1 = por %p82_p2, %p13985_p9  ;;  %s14046_s27 = smov (%p36_p11, %s14044_s27), 0 }
  0x33   : > { %14005 = sst [smem:[#allocation19_spill]] %s14046_s27  ;;  %s12793_s29 = ssub.s32 %s12603_s24, %s14046_s27 }
  0x34   : > { %s12789_s11 = scalar_select %p39_p12, %s12587_s20, %s41_s9  }
  0x35   : > { %s66_s4 = sor.u32 %s12793_s29, %s38_s5  ;;  %p93_p7 = scmp.eq.s32.totalorder %s12793_s29, 0 }
  0x36   : > { %14006 = sst [smem:[#allocation20_spill]] %s12789_s11  ;;  %p67_p5 = scmp.eq.s32.totalorder %s66_s4, 0 }
  0x37   : > { %s158_s3 = sand.u32 1, %s12587_s20   ;;  %s14007_s15 = sadd.s32 1, %s12575_s17 }
  0x38   : > { %s11427_s22 = smul.u32 98, %s158_s3  ;;  %p12809_p2 = pnand %p13984_p4, %p12767_p10 }
  0x39   : > { %s12802_s30 = scalar_select %p67_p5, %s12575_s17, %s14007_s15  }
  0x3a   : > { %s10294_s1 = smul.u32 1568, %s12599_s23  ;;  %s162_s7 = scalar_lea.vmem [#allocation3], %s11427_s22 }
  0x3b   : > { %s170_s21 = sshll.u32 %s162_s7, 4  ;;  %s14009_s0 = sld [smem:[#allocation21_spill]]  ;;  %s171_s21 = int_to_ptr.vmem [resolvable:$true] %s170_s21 }
  0x3c   : > { %s159_s4 = scalar_lea.sflag [#allocation4], %s158_s3  ;;  %p12401_p8 = pneg %p12809_p2 }
  0x3d   : > { %s12412_s15 = scalar_lea.vmem %s171_s21, 1568  ;;  %s12613_s7 = smov [#allocation3]  }
  0x3e   : > { %p12413_p11 = scmp.ne.s32.totalorder %s171_s21, %s12412_s15  ;;  %s12417_s8 = sshll.u32 %s12613_s7, 4  ;;  %s12418_s8 = int_to_ptr.vmem [resolvable:$false] %s12417_s8 }
  0x3f   : > { %s12419_s22 = scalar_lea.vmem %s12418_s8, 3136  ;;  %p12420_p10 = scmp.lt.s32.totalorder %s171_s21, %s12418_s8 }
  0x40   : > { %p12415_p12 = pnand %p12413_p11, %p12401_p8  ;;  %p12421_p4 = scmp.lt.s32.totalorder %s12419_s22, %s12412_s15 }
  0x41   : > { %s168_s5 = scalar_lea.hbm %s14009_s0, %s10294_s1 }
  0x42   : > { %p12416_p5 = pneg %p12415_p12  ;;  %p12422_p9 = por %p12421_p4, %p12420_p10 }
  0x44   : > { %p12423_p3 = pnand %p12422_p9, %p12416_p5 }
  0x46   : > { %12426 = shalt.err (!%p12423_p3)
}
  0x47   : > { %11442 = dma.hbm_to_vmem [thread:$0]  (!%p12809_p2), %s168_s5, 1568, %s171_s21, %s159_s4  }
  0x48   : > { %s9491_s1 = sadd.s32 4294967294, %s12607_s25   ;;  %s95_s27 = sadd.s32 1, %s12563_s14 }
  0x49   : > { %p102_p4 = scmp.ne.s32.totalorder %s12563_s14, %s12559_s13  ;;  %p108_p3 = scmp.ne.s32.totalorder %s12559_s13, %s12555_s12 }
  0x4a   : > { %s12827_s11 = scalar_select %p93_p7, %s12563_s14, %s95_s27  }
  0x4b   : > { %p12831_p9 = por %p102_p4, %p49_p0  ;;  %p14011_p8 = scmp.eq.s32.totalorder %s12749_s6, 3 }
  0x4c   : > { %p138_p2 = scmp.eq.s32.totalorder %s9491_s1, 3  ;;  %p14013_p12 = scmp.eq.s32.totalorder %s12749_s6, 0 }
  0x4d   : > { %p12839_p11 = por %p14011_p8, %p102_p4  ;;  %s202_s29 = sand.u32 1, %s12563_s14  }
  0x4e   : > { %p12845_p5 = por %p108_p3, %p14013_p12  ;;  %p12850_p7 = por %p138_p2, %p108_p3 }
  0x4f   : > { %s14012_s9 = scalar_select %p12839_p11, 1, 0 }
  0x50   : > { %s14014_s21 = scalar_select %p12845_p5, 1, 0 }
  0x51   : > { %s14015_s5 = scalar_select %p12850_p7, 1, 0 }
  0x52   : > { %s9497_s4 = sshll.u32 %s202_s29, 7  ;;  %s10296_s15 = sshll.u32 %s12603_s24, 11 }
  0x53   : > { %s210_s22 = scalar_lea.hbm %s13978_s2, %s10296_s15  ;;  %s204_s27 = scalar_lea.vmem [#allocation8], %s9497_s4 }
  0x54   : > { %s211_s0 = sshll.u32 %s204_s27, 4  ;;  %p14016_p0 = scmp.lt.s32.totalorder %s12607_s25, 4  ;;  %s212_s0 = int_to_ptr.vmem [resolvable:$true] %s211_s0 }
  0x55   : > { %s12440_s23 = scalar_lea.vmem %s212_s0, 2048  ;;  %s12614_s29 = smov [#allocation8]  }
  0x56   : > { %p12862_p10 = pnand %p14016_p0, %p12831_p9  ;;  %p12441_p3 = scmp.ne.s32.totalorder %s212_s0, %s12440_s23 }
  0x57   : > { %s12445_s24 = sshll.u32 %s12614_s29, 4  ;;  %s12446_s24 = int_to_ptr.vmem [resolvable:$false] %s12445_s24 }
  0x58   : > { %p12429_p4 = pneg %p12862_p10  ;;  %s12447_s15 = scalar_lea.vmem %s12446_s24, 4096 }
  0x59   : > { %p12448_p12 = scmp.lt.s32.totalorder %s212_s0, %s12446_s24  ;;  %p12449_p7 = scmp.lt.s32.totalorder %s12447_s15, %s12440_s23 }
  0x5a   : > { %p12443_p8 = pnand %p12441_p3, %p12429_p4 }
  0x5b   : > { %p12450_p11 = por %p12449_p7, %p12448_p12 }
  0x5c   : > { %p12444_p2 = pneg %p12443_p8 }
  0x5e   : > { %p12451_p5 = pnand %p12450_p11, %p12444_p2 }
  0x60   : > { %12454 = shalt.err (!%p12451_p5)
}
  0x61   : > { %s12615_s3 = smov 8   ;;  %s14018_s4 = smov 128  }
  0x62   : > { %11448 = dma.hbm_to_vmem [thread:$0]  (!%p12862_p10), %s210_s22, 2048, %s212_s0, %s12734_s26, %s14018_s4, %s14018_s4, %s12615_s3  }
  0x63   : > { %223 = sbr.rel (%p12744_p6) target bundleno = 1387 (0x56b), region = 32  ;;  %s225_s7 = sand.u32 (!%p12744_p6), 1, %s12583_s19  }
  0x64   : > { %s11429_s8 = smul.u32 (!%p12744_p6), 98, %s225_s7  ;;  %s226_s27 = scalar_lea.sflag (!%p12744_p6), [#allocation4], %s225_s7 }
  0x66   : > { %s12876_s24 = scalar_lea.vmem (!%p12744_p6), [#allocation3], %s11429_s8 }
  0x68   : > { %12538 = dma.done.wait (%p12773_p13), %s226_s27, 1568  }
  0x69   : > { %12540 = vsyncadd (%p12773_p13), %s226_s27, 4294965728  ;;  %s234_s23 = sand.u32 1, %s12749_s6   ;;  %s236_s0 = sand.u32 1, %s12571_s16  }
  0x6a   : > { %s11430_s26 = smul.u32 6272, %s236_s0  ;;  %s235_s28 = scalar_lea.sflag [#allocation7], %s234_s23 }
  0x6c   : > { %s12884_s22 = scalar_lea.vmem [#allocation6], %s11430_s26 }
  0x6d   : > { %12542 = dma.done.wait (%p12782_p1), %s235_s28, 100352  }
  0x6e   : > { %12544 = vsyncadd (%p12782_p1), %s235_s28, 4294866944  ;;  %s12891_s1 = sand.u32 1, %s12559_s13   ;;  %p14019_p6 = scmp.ne.s32.totalorder %s14014_s21, 0 }
  0x6f   : > { %s9501_s18 = sshll.u32 %s12891_s1, 7 }
  0x70   : > { %s12894_s29 = scalar_lea.vmem [#allocation8], %s9501_s18 }
  0x71   : > { %12546 = dma.done.wait (%p14019_p6), %s235_s28, 2048  }
  0x72   : > { %12548 = vsyncadd (%p14019_p6), %s235_s28, 4294965248  ;;  %s9502_s6 = sshll.u32 %s12891_s1, 1  ;;  %s14020_s3 = sld [smem:[#allocation14_spill]] }
  0x73   : > { %s12901_s15 = scalar_lea.vmem [#allocation9], %s9502_s6 }
  0x78   : > { %p9503_p13 = scmp.ne.s32.totalorder %s14020_s3, 0 }
  0x7a   : > { %287 = sbr.rel (%p9503_p13) target bundleno = 129 (0x81), region = 48 }
  0x7f   : > { %v12616_v0 = vmov 0.0  }
  0x80   : > { %288 = vst [vmem:[#allocation2] sm:$0x3] %v12616_v0 }
  0x81 PF: > { %v11575_v1 = vld [vmem:[%s12884_s22 + $0x78] sm:$0xff]   ;;  %v11579_v5 = vld [vmem:[%s12884_s22 + $0x70] sm:$0xff]   ;;  %v11583_v9 = vld [vmem:[%s12884_s22 + $0x68] sm:$0xff]   ;;  %v1888_v30 = vlaneseq  ;;  %v12617_v36 = vmov 1966171168   ;;  %s14021_s10 = sld [smem:[#allocation14_spill]] }
  0x82   : > { %v11576_v2 = vld [vmem:[%s12884_s22 + $0xf8] sm:$0xff]   ;;  %10297 = vmatprep.subr.bf16.mxu0 %v11575_v1  ;;  %v11580_v6 = vld [vmem:[%s12884_s22 + $0xf0] sm:$0xff]   ;;  %v11584_v10 = vld [vmem:[%s12884_s22 + $0xe8] sm:$0xff]   ;;  %v1886_v37 = vunpack.c.l.s4 %v12617_v36 }
  0x83   : > { %v11577_v3 = vld [vmem:[%s12884_s22 + $0x38] sm:$0xff]   ;;  %10319 = vmatprep.subr.bf16.mxu1 %v11576_v2  ;;  %v11581_v7 = vld [vmem:[%s12884_s22 + $0x30] sm:$0xff]   ;;  %v11585_v11 = vld [vmem:[%s12884_s22 + $0x28] sm:$0xff]   ;;  %v1889_v34 = vshrl.u32 %v1888_v30, 7 }
  0x84   : > { %v11578_v4 = vld [vmem:[%s12884_s22 + $0xb8] sm:$0xff]   ;;  %10298 = vmatpush3.bf16.msra.mxu0 %v11577_v3  ;;  %v11582_v8 = vld [vmem:[%s12884_s22 + $0xb0] sm:$0xff]   ;;  %v11586_v12 = vld [vmem:[%s12884_s22 + $0xa8] sm:$0xff]   ;;  %v1887_v40 = vunpack.c.0.s8 %v1886_v37 }
  0x85   : > { %10320 = vmatpush3.bf16.msra.mxu1 %v11578_v4  ;;  %10299 = vmatprep.subr.bf16.mxu0 %v11579_v5  ;;  %v11587_v13 = vld [vmem:[%s12884_s22 + $0x60] sm:$0xff]   ;;  %v11591_v17 = vld [vmem:[%s12884_s22 + $0x58] sm:$0xff]   ;;  %v11595_v21 = vld [vmem:[%s12884_s22 + $0x50] sm:$0xff]  }
  0x86   : > { %10321 = vmatprep.subr.bf16.mxu1 %v11580_v6  ;;  %v11588_v14 = vld [vmem:[%s12884_s22 + $0xe0] sm:$0xff]   ;;  %v11592_v18 = vld [vmem:[%s12884_s22 + $0xd8] sm:$0xff]   ;;  %v11596_v22 = vld [vmem:[%s12884_s22 + $0xd0] sm:$0xff]   ;;  %v12939_v42 = vsub.s32 %v1887_v40, %v1889_v34 }
  0x87   : > { %v11589_v15 = vld [vmem:[%s12884_s22 + $0x20] sm:$0xff]   ;;  %v11593_v19 = vld [vmem:[%s12884_s22 + $0x18] sm:$0xff]   ;;  %v11597_v23 = vld [vmem:[%s12884_s22 + $0x10] sm:$0xff]   ;;  %p10289_p1 = scmp.ne.s32.totalorder %s14021_s10, 1 }
  0x88   : > { %10300 = vmatpush3.bf16.msra.mxu0 %v11581_v7  ;;  %v11590_v16 = vld [vmem:[%s12884_s22 + $0xa0] sm:$0xff]   ;;  %v11594_v20 = vld [vmem:[%s12884_s22 + $0x98] sm:$0xff]   ;;  %v11598_v24 = vld [vmem:[%s12884_s22 + $0x90] sm:$0xff]  }
  0x89   : > { %10322 = vmatpush3.bf16.msra.mxu1 %v11582_v8  ;;  %10301 = vmatprep.subr.bf16.mxu0 %v11583_v9  ;;  %v11599_v25 = vld [vmem:[%s12884_s22 + $0x48] sm:$0xff]   ;;  %v11603_v29 = vld [vmem:[%s12884_s22 + $0x40] sm:$0xff]   ;;  %v11608_v35 = vld [vmem:[%s12884_s22 + $0x178] sm:$0xff]  }
  0x8a   : > { %10323 = vmatprep.subr.bf16.mxu1 %v11584_v10  ;;  %v11600_v26 = vld [vmem:[%s12884_s22 + $0xc8] sm:$0xff]   ;;  %v11604_v31 = vld [vmem:[%s12884_s22 + $0xc0] sm:$0xff]   ;;  %v11610_v41 = vld [vmem:[%s12884_s22 + $0x1f8] sm:$0xff]  }
  0x8b   : > { %v11601_v27 = vld [vmem:[%s12884_s22 + $0x8] sm:$0xff]   ;;  %v11605_v32 = vld [vmem:[%s12884_s22] sm:$0xff]   ;;  %v11609_v48 = vld [vmem:[%s12884_s22 + $0x138] sm:$0xff]  }
  0x8c   : > { %10302 = vmatpush3.bf16.msra.mxu0 %v11585_v11  ;;  %v11602_v28 = vld [vmem:[%s12884_s22 + $0x88] sm:$0xff]   ;;  %v11606_v33 = vld [vmem:[%s12884_s22 + $0x80] sm:$0xff]   ;;  %v11611_v50 = vld [vmem:[%s12884_s22 + $0x1b8] sm:$0xff]  }
  0x8d   : > { %10324 = vmatpush3.bf16.msra.mxu1 %v11586_v12  ;;  %10303 = vmatprep.subr.bf16.mxu0 %v11587_v13  ;;  %v290_v38 = vld [vmem:[%s12876_s24] sm:$0xff]  ;;  %v11612_v53 = vld [vmem:[%s12884_s22 + $0x170] sm:$0xff]   ;;  %v11616_v59 = vld [vmem:[%s12884_s22 + $0x168] sm:$0xff]  }
  0x8e   : > { %10325 = vmatprep.subr.bf16.mxu1 %v11588_v14  ;;  %v1884_v39 = vcombine.high %v290_v38, %v290_v38  ;;  %v1891_v43 = vrot.slane %v290_v38, %v12939_v42  ;;  %v11613_v55 = vld [vmem:[%s12884_s22 + $0x130] sm:$0xff]   ;;  %v11617_v60 = vld [vmem:[%s12884_s22 + $0x128] sm:$0xff]   ;;  %v11620_v63 = vld [vmem:[%s12884_s22 + $0x160] sm:$0xff]  }
  0x8f   : > { %v11614_v56 = vld [vmem:[%s12884_s22 + $0x1f0] sm:$0xff]   ;;  %v11618_v61 = vld [vmem:[%s12884_s22 + $0x1e8] sm:$0xff]   ;;  %v11621_v0 = vld [vmem:[%s12884_s22 + $0x120] sm:$0xff]  }
  0x90   : > { %10304 = vmatpush3.bf16.msra.mxu0 %v11589_v15  ;;  %v12943_v44 = vrot.slane %v1884_v39, %v12939_v42  ;;  %v1899_v45 = vcombine.high %v1891_v43, %v1891_v43  ;;  %v1907_v46 = vrot.slane %v1891_v43, %v12939_v42  ;;  %v11615_v58 = vld [vmem:[%s12884_s22 + $0x1b0] sm:$0xff]   ;;  %v11619_v62 = vld [vmem:[%s12884_s22 + $0x1a8] sm:$0xff]   ;;  %v11622_v1 = vld [vmem:[%s12884_s22 + $0x1e0] sm:$0xff]  }
  0x91   : > { %10326 = vmatpush3.bf16.msra.mxu1 %v11590_v16  ;;  %10305 = vmatprep.subr.bf16.mxu0 %v11591_v17  ;;  %v11623_v2 = vld [vmem:[%s12884_s22 + $0x1a0] sm:$0xff]   ;;  %v11624_v3 = vld [vmem:[%s12884_s22 + $0x158] sm:$0xff]   ;;  %v11628_v7 = vld [vmem:[%s12884_s22 + $0x150] sm:$0xff]  }
  0x92   : > { %10327 = vmatprep.subr.bf16.mxu1 %v11592_v18  ;;  %v1900_v47 = vcombine.high %v12943_v44, %v12943_v44  ;;  %v1921_v49 = vrot.slane %v1899_v45, %v12939_v42  ;;  %v1929_v52 = vcombine.high %v1907_v46, %v1907_v46  ;;  %v11625_v4 = vld [vmem:[%s12884_s22 + $0x118] sm:$0xff]   ;;  %v11629_v8 = vld [vmem:[%s12884_s22 + $0x110] sm:$0xff]   ;;  %v11632_v11 = vld [vmem:[%s12884_s22 + $0x148] sm:$0xff]  }
  0x93   : > { %v11626_v5 = vld [vmem:[%s12884_s22 + $0x1d8] sm:$0xff]   ;;  %v11630_v9 = vld [vmem:[%s12884_s22 + $0x1d0] sm:$0xff]   ;;  %v11633_v12 = vld [vmem:[%s12884_s22 + $0x108] sm:$0xff]  }
  0x94   : > { %10306 = vmatpush3.bf16.msra.mxu0 %v11593_v19  ;;  %v1928_v51 = vrot.slane %v1900_v47, %v12939_v42  ;;  %7328 = vmatprep.mubr.bf16.mxu0 %v1921_v49  ;;  %v1931_v54 = vcombine.high %v1921_v49, %v1921_v49  ;;  %v11627_v6 = vld [vmem:[%s12884_s22 + $0x198] sm:$0xff]   ;;  %v11631_v10 = vld [vmem:[%s12884_s22 + $0x190] sm:$0xff]   ;;  %v11634_v13 = vld [vmem:[%s12884_s22 + $0x1c8] sm:$0xff]   ;;  %v1914_v19 = vrot.slane %v12943_v44, %v12939_v42 }
  0x95   : > { %10328 = vmatpush3.bf16.msra.mxu1 %v11594_v20  ;;  %10307 = vmatprep.subr.bf16.mxu0 %v11595_v21  ;;  %v11635_v14 = vld [vmem:[%s12884_s22 + $0x188] sm:$0xff]   ;;  %v11636_v15 = vld [vmem:[%s12884_s22 + $0x140] sm:$0xff]   ;;  %v11640_v20 = vld [vmem:[%s12884_s22 + $0x278] sm:$0xff]  }
  0x96   : > { %10329 = vmatprep.subr.bf16.mxu1 %v11596_v22  ;;  %v1932_v57 = vcombine.high %v1928_v51, %v1928_v51  ;;  %7368 = vmatprep.mubr.bf16.mxu1 %v1931_v54  ;;  %v11637_v16 = vld [vmem:[%s12884_s22 + $0x100] sm:$0xff]   ;;  %v11641_v21 = vld [vmem:[%s12884_s22 + $0x238] sm:$0xff]   ;;  %v11649_v30 = vld [vmem:[%s12884_s22 + $0x228] sm:$0xff]  }
  0x97   : > { %v11638_v17 = vld [vmem:[%s12884_s22 + $0x1c0] sm:$0xff]   ;;  %v11642_v22 = vld [vmem:[%s12884_s22 + $0x2f8] sm:$0xff]   ;;  %v11661_v43 = vld [vmem:[%s12884_s22 + $0x210] sm:$0xff]  }
  0x98   : > { %10308 = vmatpush3.bf16.msra.mxu0 %v11597_v23  ;;  %v11639_v18 = vld [vmem:[%s12884_s22 + $0x180] sm:$0xff]   ;;  %v11643_v23 = vld [vmem:[%s12884_s22 + $0x2b8] sm:$0xff]   ;;  %v11662_v44 = vld [vmem:[%s12884_s22 + $0x2d0] sm:$0xff]  }
  0x99   : > { %10330 = vmatpush3.bf16.msra.mxu1 %v11598_v24  ;;  %10309 = vmatprep.subr.bf16.mxu0 %v11599_v25  ;;  %v1930_v24 = vcombine.high %v1914_v19, %v1914_v19  ;;  %v11644_v25 = vld [vmem:[%s12884_s22 + $0x270] sm:$0xff]   ;;  %v11653_v34 = vld [vmem:[%s12884_s22 + $0x220] sm:$0xff]   ;;  %v11656_v37 = vld [vmem:[%s12884_s22 + $0x258] sm:$0xff]  }
  0x9a   : > { %10331 = vmatprep.subr.bf16.mxu1 %v11600_v26  ;;  %v11645_v26 = vld [vmem:[%s12884_s22 + $0x230] sm:$0xff]   ;;  %v11655_v36 = vld [vmem:[%s12884_s22 + $0x2a0] sm:$0xff]   ;;  %v11657_v38 = vld [vmem:[%s12884_s22 + $0x218] sm:$0xff]  }
  0x9b   : > { %v11658_v39 = vld [vmem:[%s12884_s22 + $0x2d8] sm:$0xff]   ;;  %v11663_v45 = vld [vmem:[%s12884_s22 + $0x290] sm:$0xff]   ;;  %v11664_v47 = vld [vmem:[%s12884_s22 + $0x248] sm:$0xff]  }
  0x9c   : > { %10310 = vmatpush3.bf16.msra.mxu0 %v11601_v27  ;;  %v11646_v27 = vld [vmem:[%s12884_s22 + $0x2f0] sm:$0xff]   ;;  %v11659_v40 = vld [vmem:[%s12884_s22 + $0x298] sm:$0xff]   ;;  %v11667_v54 = vld [vmem:[%s12884_s22 + $0x288] sm:$0xff]  }
  0x9d   : > { %10332 = vmatpush3.bf16.msra.mxu1 %v11602_v28  ;;  %10311 = vmatprep.subr.bf16.mxu0 %v11603_v29  ;;  %v11647_v28 = vld [vmem:[%s12884_s22 + $0x2b0] sm:$0xff]   ;;  %v11648_v29 = vld [vmem:[%s12884_s22 + $0x268] sm:$0xff]  }
  0x9e   : > { %10333 = vmatprep.subr.bf16.mxu1 %v11604_v31  ;;  %v11650_v31 = vld [vmem:[%s12884_s22 + $0x2e8] sm:$0xff]  }
  0xa0   : > { %10312 = vmatpush3.bf16.msra.mxu0 %v11605_v32  ;;  %v11651_v32 = vld [vmem:[%s12884_s22 + $0x2a8] sm:$0xff]  }
  0xa1   : > { %10334 = vmatpush3.bf16.msra.mxu1 %v11606_v33  ;;  %10341 = vmatprep.subr.bf16.mxu0 %v11608_v35  ;;  %v11652_v33 = vld [vmem:[%s12884_s22 + $0x260] sm:$0xff]  }
  0xa2   : > { %10363 = vmatprep.subr.bf16.mxu1 %v11610_v41  ;;  %v11654_v35 = vld [vmem:[%s12884_s22 + $0x2e0] sm:$0xff]   ;;  %v11660_v41 = vld [vmem:[%s12884_s22 + $0x250] sm:$0xff]  }
  0xa3   : > { %7329 = vmatmul.mubr.bf16.vlgmr.msra.gmra.mxu0 %v1907_v46  ;;  %v291_v46 = vld [vmem:[%s12876_s24 + $0x8] sm:$0xff] }
  0xa4   : > { %10342 = vmatpush3.bf16.msra.mxu0 %v11609_v48  ;;  %7369 = vmatmul.mubr.bf16.vlgmr.msra.gmra.mxu1 %v1929_v52  ;;  %v1940_v48 = vrot.slane %v291_v46, %v12939_v42  ;;  %v1933_v49 = vcombine.high %v291_v46, %v291_v46  ;;  %v11714_v46 = vld [vmem:[%s12884_s22 + $0x428] sm:$0xff]  }
  0xa5   : > { %10343 = vmatprep.subr.bf16.mxu0 %v11612_v53  ;;  %10364 = vmatpush3.bf16.msra.mxu1 %v11611_v50  ;;  %v11665_v50 = vld [vmem:[%s12884_s22 + $0x208] sm:$0xff]  }
  0xa6   : > { %7408 = vmatprep.mubr.bf16.mxu0 %v1928_v51  ;;  %10365 = vmatprep.subr.bf16.mxu1 %v11614_v56  ;;  %v11666_v51 = vld [vmem:[%s12884_s22 + $0x2c8] sm:$0xff]   ;;  %v1948_v52 = vcombine.high %v1940_v48, %v1940_v48  ;;  %v13012_v53 = vrot.slane %v1933_v49, %v12939_v42  ;;  %v11717_v49 = vld [vmem:[%s12884_s22 + $0x460] sm:$0xff]  }
  0xa7   : > { %7448 = vmatprep.mubr.bf16.mxu1 %v1932_v57  ;;  %v11669_v57 = vld [vmem:[%s12884_s22 + $0x200] sm:$0xff]  }
  0xa8   : > { %10344 = vmatpush3.bf16.msra.mxu0 %v11613_v55  ;;  %v11668_v55 = vld [vmem:[%s12884_s22 + $0x240] sm:$0xff]   ;;  %v1970_v56 = vrot.slane %v1948_v52, %v12939_v42 }
  0xa9   : > { %10345 = vmatprep.subr.bf16.mxu0 %v11616_v59  ;;  %10366 = vmatpush3.bf16.msra.mxu1 %v11615_v58  ;;  %v1949_v58 = vcombine.high %v13012_v53, %v13012_v53  ;;  %v11670_v59 = vld [vmem:[%s12884_s22 + $0x2c0] sm:$0xff]  }
  0xaa   : > { %10367 = vmatprep.subr.bf16.mxu1 %v11618_v61  ;;  %v11671_v61 = vld [vmem:[%s12884_s22 + $0x280] sm:$0xff]  }
  0xab   : > { %v11720_v52 = vld [vmem:[%s12884_s22 + $0x4a0] sm:$0xff]  }
  0xac   : > { %10346 = vmatpush3.bf16.msra.mxu0 %v11617_v60  ;;  %v1980_v60 = vcombine.high %v1970_v56, %v1970_v56 }
  0xad   : > { %10347 = vmatprep.subr.bf16.mxu0 %v11620_v63  ;;  %10368 = vmatpush3.bf16.msra.mxu1 %v11619_v62  ;;  %v1956_v62 = vrot.slane %v1940_v48, %v12939_v42  ;;  %v11672_v63 = vld [vmem:[%s12884_s22 + $0x378] sm:$0xff]   ;;  %v11716_v48 = vld [vmem:[%s12884_s22 + $0x4a8] sm:$0xff]  }
  0xae   : > { %10369 = vmatprep.subr.bf16.mxu1 %v11622_v1  ;;  %v1977_v1 = vrot.slane %v1949_v58, %v12939_v42  ;;  %v11726_v58 = vld [vmem:[%s12884_s22 + $0x410] sm:$0xff]  }
  0xb0   : > { %10348 = vmatpush3.bf16.msra.mxu0 %v11621_v0  ;;  %v11673_v0 = vld [vmem:[%s12884_s22 + $0x338] sm:$0xff]  }
  0xb1   : > { %10349 = vmatprep.subr.bf16.mxu0 %v11624_v3  ;;  %10370 = vmatpush3.bf16.msra.mxu1 %v11623_v2  ;;  %v11674_v2 = vld [vmem:[%s12884_s22 + $0x3f8] sm:$0xff]  }
  0xb2   : > { %10371 = vmatprep.subr.bf16.mxu1 %v11626_v5  ;;  %v11675_v3 = vld [vmem:[%s12884_s22 + $0x3b8] sm:$0xff]   ;;  %v11676_v5 = vld [vmem:[%s12884_s22 + $0x370] sm:$0xff]  }
  0xb4   : > { %10350 = vmatpush3.bf16.msra.mxu0 %v11625_v4  ;;  %v1978_v4 = vcombine.high %v1956_v62, %v1956_v62 }
  0xb5   : > { %10351 = vmatprep.subr.bf16.mxu0 %v11628_v7  ;;  %10372 = vmatpush3.bf16.msra.mxu1 %v11627_v6  ;;  %v11677_v6 = vld [vmem:[%s12884_s22 + $0x330] sm:$0xff]   ;;  %v1981_v7 = vcombine.high %v1977_v1, %v1977_v1 }
  0xb6   : > { %10373 = vmatprep.subr.bf16.mxu1 %v11630_v9  ;;  %v11679_v9 = vld [vmem:[%s12884_s22 + $0x3b0] sm:$0xff]  }
  0xb8   : > { %10352 = vmatpush3.bf16.msra.mxu0 %v11629_v8  ;;  %v11678_v8 = vld [vmem:[%s12884_s22 + $0x3f0] sm:$0xff]  }
  0xb9   : > { %10353 = vmatprep.subr.bf16.mxu0 %v11632_v11  ;;  %10374 = vmatpush3.bf16.msra.mxu1 %v11631_v10  ;;  %v11680_v10 = vld [vmem:[%s12884_s22 + $0x368] sm:$0xff]  }
  0xba   : > { %10375 = vmatprep.subr.bf16.mxu1 %v11634_v13  ;;  %v11681_v11 = vld [vmem:[%s12884_s22 + $0x328] sm:$0xff]  }
  0xbb   : > { %v11683_v13 = vld [vmem:[%s12884_s22 + $0x3a8] sm:$0xff]  }
  0xbc   : > { %10354 = vmatpush3.bf16.msra.mxu0 %v11633_v12  ;;  %v11682_v12 = vld [vmem:[%s12884_s22 + $0x3e8] sm:$0xff]  }
  0xbd   : > { %10355 = vmatprep.subr.bf16.mxu0 %v11636_v15  ;;  %10376 = vmatpush3.bf16.msra.mxu1 %v11635_v14  ;;  %v11684_v14 = vld [vmem:[%s12884_s22 + $0x360] sm:$0xff]  }
  0xbe   : > { %10377 = vmatprep.subr.bf16.mxu1 %v11638_v17  ;;  %v11685_v15 = vld [vmem:[%s12884_s22 + $0x320] sm:$0xff]  }
  0xbf   : > { %v11687_v17 = vld [vmem:[%s12884_s22 + $0x3a0] sm:$0xff]  }
  0xc0   : > { %10356 = vmatpush3.bf16.msra.mxu0 %v11637_v16  ;;  %v11686_v16 = vld [vmem:[%s12884_s22 + $0x3e0] sm:$0xff]  }
  0xc1   : > { %10385 = vmatprep.subr.bf16.mxu0 %v11640_v20  ;;  %10378 = vmatpush3.bf16.msra.mxu1 %v11639_v18  ;;  %v11688_v18 = vld [vmem:[%s12884_s22 + $0x358] sm:$0xff]  }
  0xc2   : > { %10407 = vmatprep.subr.bf16.mxu1 %v11642_v22  ;;  %v11690_v20 = vld [vmem:[%s12884_s22 + $0x3d8] sm:$0xff]   ;;  %v11692_v22 = vld [vmem:[%s12884_s22 + $0x350] sm:$0xff]  }
  0xc3   : > { %7409 = vmatmul.mubr.bf16.vlgmr.msra.gmra.mxu0 %v1914_v19  ;;  %v11689_v19 = vld [vmem:[%s12884_s22 + $0x318] sm:$0xff]  }
  0xc4   : > { %10386 = vmatpush3.bf16.msra.mxu0 %v11641_v21  ;;  %7449 = vmatmul.mubr.bf16.vlgmr.msra.gmra.mxu1 %v1930_v24  ;;  %v11691_v21 = vld [vmem:[%s12884_s22 + $0x398] sm:$0xff]   ;;  %v11694_v24 = vld [vmem:[%s12884_s22 + $0x3d0] sm:$0xff]  }
  0xc5   : > { %10387 = vmatprep.subr.bf16.mxu0 %v11644_v25  ;;  %10408 = vmatpush3.bf16.msra.mxu1 %v11643_v23  ;;  %v11693_v23 = vld [vmem:[%s12884_s22 + $0x310] sm:$0xff]  }
  0xc6   : > { %10409 = vmatprep.subr.bf16.mxu1 %v11646_v27  ;;  %7488 = vmatprep.mubr.bf16.mxu0 %v1970_v56  ;;  %v11695_v25 = vld [vmem:[%s12884_s22 + $0x390] sm:$0xff]   ;;  %v11697_v27 = vld [vmem:[%s12884_s22 + $0x308] sm:$0xff]   ;;  %v11724_v56 = vld [vmem:[%s12884_s22 + $0x498] sm:$0xff]  }
  0xc7   : > { %7528 = vmatprep.mubr.bf16.mxu1 %v1980_v60  ;;  %v11728_v60 = vld [vmem:[%s12884_s22 + $0x490] sm:$0xff]  }
  0xc8   : > { %10388 = vmatpush3.bf16.msra.mxu0 %v11645_v26  ;;  %v11696_v26 = vld [vmem:[%s12884_s22 + $0x348] sm:$0xff]  }
  0xc9   : > { %10389 = vmatprep.subr.bf16.mxu0 %v11648_v29  ;;  %10410 = vmatpush3.bf16.msra.mxu1 %v11647_v28  ;;  %v11698_v28 = vld [vmem:[%s12884_s22 + $0x3c8] sm:$0xff]  }
  0xca   : > { %10411 = vmatprep.subr.bf16.mxu1 %v11650_v31  ;;  %v11699_v29 = vld [vmem:[%s12884_s22 + $0x388] sm:$0xff]   ;;  %v11701_v31 = vld [vmem:[%s12884_s22 + $0x300] sm:$0xff]  }
  0xcc   : > { %10390 = vmatpush3.bf16.msra.mxu0 %v11649_v30  ;;  %v11700_v30 = vld [vmem:[%s12884_s22 + $0x340] sm:$0xff]  }
  0xcd   : > { %10391 = vmatprep.subr.bf16.mxu0 %v11652_v33  ;;  %10412 = vmatpush3.bf16.msra.mxu1 %v11651_v32  ;;  %v11702_v32 = vld [vmem:[%s12884_s22 + $0x3c0] sm:$0xff]  }
  0xce   : > { %10413 = vmatprep.subr.bf16.mxu1 %v11654_v35  ;;  %v11704_v33 = vld [vmem:[%s12884_s22 + $0x380] sm:$0xff]   ;;  %v11705_v35 = vld [vmem:[%s12884_s22 + $0x478] sm:$0xff]  }
  0xd0   : > { %10392 = vmatpush3.bf16.msra.mxu0 %v11653_v34  ;;  %v1963_v34 = vrot.slane %v13012_v53, %v12939_v42  ;;  %v11721_v53 = vld [vmem:[%s12884_s22 + $0x458] sm:$0xff]  }
  0xd1   : > { %10393 = vmatprep.subr.bf16.mxu0 %v11656_v37  ;;  %10414 = vmatpush3.bf16.msra.mxu1 %v11655_v36  ;;  %v11706_v36 = vld [vmem:[%s12884_s22 + $0x438] sm:$0xff]  }
  0xd2   : > { %10415 = vmatprep.subr.bf16.mxu1 %v11658_v39  ;;  %v11707_v37 = vld [vmem:[%s12884_s22 + $0x4f8] sm:$0xff]   ;;  %v1979_v39 = vcombine.high %v1963_v34, %v1963_v34 }
  0xd4   : > { %10394 = vmatpush3.bf16.msra.mxu0 %v11657_v38  ;;  %v11708_v38 = vld [vmem:[%s12884_s22 + $0x4b8] sm:$0xff]  }
  0xd5   : > { %10395 = vmatprep.subr.bf16.mxu0 %v11660_v41  ;;  %10416 = vmatpush3.bf16.msra.mxu1 %v11659_v40  ;;  %v11709_v40 = vld [vmem:[%s12884_s22 + $0x470] sm:$0xff]  }
  0xd6   : > { %10417 = vmatprep.subr.bf16.mxu1 %v11662_v44  ;;  %v11710_v41 = vld [vmem:[%s12884_s22 + $0x430] sm:$0xff]  }
  0xd7   : > { %v11712_v44 = vld [vmem:[%s12884_s22 + $0x4b0] sm:$0xff]  }
  0xd8   : > { %10396 = vmatpush3.bf16.msra.mxu0 %v11661_v43  ;;  %v11711_v43 = vld [vmem:[%s12884_s22 + $0x4f0] sm:$0xff]  }
  0xd9   : > { %10397 = vmatprep.subr.bf16.mxu0 %v11664_v47  ;;  %10418 = vmatpush3.bf16.msra.mxu1 %v11663_v45  ;;  %v11713_v45 = vld [vmem:[%s12884_s22 + $0x468] sm:$0xff]  }
  0xda   : > { %10419 = vmatprep.subr.bf16.mxu1 %v11666_v51  ;;  %v11715_v47 = vld [vmem:[%s12884_s22 + $0x4e8] sm:$0xff]   ;;  %v11719_v51 = vld [vmem:[%s12884_s22 + $0x4e0] sm:$0xff]  }
  0xdc   : > { %10398 = vmatpush3.bf16.msra.mxu0 %v11665_v50  ;;  %v11718_v50 = vld [vmem:[%s12884_s22 + $0x420] sm:$0xff]  }
  0xdd   : > { %10399 = vmatprep.subr.bf16.mxu0 %v11668_v55  ;;  %10420 = vmatpush3.bf16.msra.mxu1 %v11667_v54  ;;  %v11722_v54 = vld [vmem:[%s12884_s22 + $0x418] sm:$0xff]  }
  0xde   : > { %10421 = vmatprep.subr.bf16.mxu1 %v11670_v59  ;;  %v11723_v55 = vld [vmem:[%s12884_s22 + $0x4d8] sm:$0xff]   ;;  %v11727_v59 = vld [vmem:[%s12884_s22 + $0x4d0] sm:$0xff]  }
  0xe0   : > { %10400 = vmatpush3.bf16.msra.mxu0 %v11669_v57  ;;  %v11725_v57 = vld [vmem:[%s12884_s22 + $0x450] sm:$0xff]  }
  0xe1   : > { %10429 = vmatprep.subr.bf16.mxu0 %v11672_v63  ;;  %10422 = vmatpush3.bf16.msra.mxu1 %v11671_v61  ;;  %v292_v61 = vld [vmem:[%s12876_s24 + $0x10] sm:$0xff] }
  0xe2   : > { %10451 = vmatprep.subr.bf16.mxu1 %v11674_v2  ;;  %v1989_v63 = vrot.slane %v292_v61, %v12939_v42  ;;  %v11731_v2 = vld [vmem:[%s12884_s22 + $0x4c8] sm:$0xff]  }
  0xe3   : > { %7489 = vmatmul.mubr.bf16.vlgmr.msra.gmra.mxu0 %v1956_v62  ;;  %v11729_v62 = vld [vmem:[%s12884_s22 + $0x448] sm:$0xff]  }
  0xe4   : > { %10430 = vmatpush3.bf16.msra.mxu0 %v11673_v0  ;;  %7568 = vmatprep.mubr.bf16.mxu0 %v1977_v1  ;;  %v1982_v0 = vcombine.high %v292_v61, %v292_v61  ;;  %v11730_v1 = vld [vmem:[%s12884_s22 + $0x408] sm:$0xff]  }
  0xe5   : > { %7529 = vmatmul.mubr.bf16.vlgmr.msra.gmra.mxu1 %v1978_v4  ;;  %10431 = vmatprep.subr.bf16.mxu0 %v11676_v5  ;;  %v11732_v5 = vld [vmem:[%s12884_s22 + $0x488] sm:$0xff]  }
  0xe6   : > { %10452 = vmatpush3.bf16.msra.mxu1 %v11675_v3  ;;  %7608 = vmatprep.mubr.bf16.mxu1 %v1981_v7  ;;  %v1997_v3 = vcombine.high %v1989_v63, %v1989_v63  ;;  %v13088_v4 = vrot.slane %v1982_v0, %v12939_v42  ;;  %v11779_v61 = vld [vmem:[%s12884_s22 + $0x628] sm:$0xff]   ;;  %v11782_v0 = vld [vmem:[%s12884_s22 + $0x660] sm:$0xff]  }
  0xe7   : > { %10453 = vmatprep.subr.bf16.mxu1 %v11678_v8  ;;  %v11734_v8 = vld [vmem:[%s12884_s22 + $0x400] sm:$0xff]  }
  0xe8   : > { %10432 = vmatpush3.bf16.msra.mxu0 %v11677_v6  ;;  %v11733_v6 = vld [vmem:[%s12884_s22 + $0x440] sm:$0xff]   ;;  %v2019_v7 = vrot.slane %v1997_v3, %v12939_v42 }
  0xe9   : > { %10433 = vmatprep.subr.bf16.mxu0 %v11680_v10  ;;  %v11735_v10 = vld [vmem:[%s12884_s22 + $0x4c0] sm:$0xff]  }
  0xea   : > { %10454 = vmatpush3.bf16.msra.mxu1 %v11679_v9  ;;  %v1998_v9 = vcombine.high %v13088_v4, %v13088_v4  ;;  %v11785_v3 = vld [vmem:[%s12884_s22 + $0x6a0] sm:$0xff]  }
  0xeb   : > { %10455 = vmatprep.subr.bf16.mxu1 %v11682_v12  ;;  %v11736_v12 = vld [vmem:[%s12884_s22 + $0x480] sm:$0xff]  }
  0xec   : > { %10434 = vmatpush3.bf16.msra.mxu0 %v11681_v11  ;;  %v2029_v11 = vcombine.high %v2019_v7, %v2019_v7 }
  0xed   : > { %10435 = vmatprep.subr.bf16.mxu0 %v11684_v14  ;;  %v11737_v14 = vld [vmem:[%s12884_s22 + $0x578] sm:$0xff]  }
  0xee   : > { %10456 = vmatpush3.bf16.msra.mxu1 %v11683_v13  ;;  %v2005_v13 = vrot.slane %v1989_v63, %v12939_v42  ;;  %v11781_v63 = vld [vmem:[%s12884_s22 + $0x6a8] sm:$0xff]  }
  0xef   : > { %10457 = vmatprep.subr.bf16.mxu1 %v11686_v16  ;;  %v2026_v16 = vrot.slane %v1998_v9, %v12939_v42  ;;  %v11791_v9 = vld [vmem:[%s12884_s22 + $0x610] sm:$0xff]  }
  0xf0   : > { %10436 = vmatpush3.bf16.msra.mxu0 %v11685_v15  ;;  %v11738_v15 = vld [vmem:[%s12884_s22 + $0x538] sm:$0xff]  }
  0xf1   : > { %10437 = vmatprep.subr.bf16.mxu0 %v11688_v18  ;;  %v11740_v18 = vld [vmem:[%s12884_s22 + $0x5b8] sm:$0xff]  }
  0xf2   : > { %10458 = vmatpush3.bf16.msra.mxu1 %v11687_v17  ;;  %v11739_v17 = vld [vmem:[%s12884_s22 + $0x5f8] sm:$0xff]  }
  0xf3   : > { %10459 = vmatprep.subr.bf16.mxu1 %v11690_v20  ;;  %v11741_v20 = vld [vmem:[%s12884_s22 + $0x570] sm:$0xff]  }
  0xf4   : > { %10438 = vmatpush3.bf16.msra.mxu0 %v11689_v19  ;;  %v2027_v19 = vcombine.high %v2005_v13, %v2005_v13 }
  0xf5   : > { %10439 = vmatprep.subr.bf16.mxu0 %v11692_v22  ;;  %v2030_v22 = vcombine.high %v2026_v16, %v2026_v16 }
  0xf6   : > { %10460 = vmatpush3.bf16.msra.mxu1 %v11691_v21  ;;  %v11742_v21 = vld [vmem:[%s12884_s22 + $0x530] sm:$0xff]  }
  0xf7   : > { %10461 = vmatprep.subr.bf16.mxu1 %v11694_v24  ;;  %v11744_v24 = vld [vmem:[%s12884_s22 + $0x5b0] sm:$0xff]  }
  0xf8   : > { %10440 = vmatpush3.bf16.msra.mxu0 %v11693_v23  ;;  %v11743_v23 = vld [vmem:[%s12884_s22 + $0x5f0] sm:$0xff]  }
  0xf9   : > { %10441 = vmatprep.subr.bf16.mxu0 %v11696_v26  ;;  %v11746_v26 = vld [vmem:[%s12884_s22 + $0x528] sm:$0xff]  }
  0xfa   : > { %10462 = vmatpush3.bf16.msra.mxu1 %v11695_v25  ;;  %v11745_v25 = vld [vmem:[%s12884_s22 + $0x568] sm:$0xff]  }
  0xfb   : > { %10463 = vmatprep.subr.bf16.mxu1 %v11698_v28  ;;  %v11748_v28 = vld [vmem:[%s12884_s22 + $0x5a8] sm:$0xff]  }
  0xfc   : > { %10442 = vmatpush3.bf16.msra.mxu0 %v11697_v27  ;;  %v11747_v27 = vld [vmem:[%s12884_s22 + $0x5e8] sm:$0xff]  }
  0xfd   : > { %10443 = vmatprep.subr.bf16.mxu0 %v11700_v30  ;;  %v11750_v30 = vld [vmem:[%s12884_s22 + $0x520] sm:$0xff]  }
  0xfe   : > { %10464 = vmatpush3.bf16.msra.mxu1 %v11699_v29  ;;  %v11749_v29 = vld [vmem:[%s12884_s22 + $0x560] sm:$0xff]  }
  0xff   : > { %10465 = vmatprep.subr.bf16.mxu1 %v11702_v32  ;;  %v11752_v32 = vld [vmem:[%s12884_s22 + $0x5a0] sm:$0xff]  }
 0x100   : > { %10444 = vmatpush3.bf16.msra.mxu0 %v11701_v31  ;;  %v11751_v31 = vld [vmem:[%s12884_s22 + $0x5e0] sm:$0xff]  }
 0x101   : > { %10473 = vmatprep.subr.bf16.mxu0 %v11705_v35  ;;  %v11755_v35 = vld [vmem:[%s12884_s22 + $0x5d8] sm:$0xff]  }
 0x102   : > { %10466 = vmatpush3.bf16.msra.mxu1 %v11704_v33  ;;  %v11753_v33 = vld [vmem:[%s12884_s22 + $0x558] sm:$0xff]  }
 0x103   : > { %7569 = vmatmul.mubr.bf16.vlgmr.msra.gmra.mxu0 %v1963_v34  ;;  %10495 = vmatprep.subr.bf16.mxu1 %v11707_v37  ;;  %v11754_v34 = vld [vmem:[%s12884_s22 + $0x518] sm:$0xff]   ;;  %v11757_v37 = vld [vmem:[%s12884_s22 + $0x550] sm:$0xff]  }
 0x104   : > { %10474 = vmatpush3.bf16.msra.mxu0 %v11706_v36  ;;  %7648 = vmatprep.mubr.bf16.mxu0 %v2019_v7  ;;  %v11756_v36 = vld [vmem:[%s12884_s22 + $0x598] sm:$0xff]  }
 0x105   : > { %7609 = vmatmul.mubr.bf16.vlgmr.msra.gmra.mxu1 %v1979_v39  ;;  %10475 = vmatprep.subr.bf16.mxu0 %v11709_v40  ;;  %v11759_v39 = vld [vmem:[%s12884_s22 + $0x5d0] sm:$0xff]   ;;  %v11789_v7 = vld [vmem:[%s12884_s22 + $0x698] sm:$0xff]  }
 0x106   : > { %10496 = vmatpush3.bf16.msra.mxu1 %v11708_v38  ;;  %7688 = vmatprep.mubr.bf16.mxu1 %v2029_v11  ;;  %v11758_v38 = vld [vmem:[%s12884_s22 + $0x510] sm:$0xff]  }
 0x107   : > { %10497 = vmatprep.subr.bf16.mxu1 %v11711_v43  ;;  %v11760_v40 = vld [vmem:[%s12884_s22 + $0x590] sm:$0xff]   ;;  %v11762_v43 = vld [vmem:[%s12884_s22 + $0x508] sm:$0xff]  }
 0x108   : > { %10476 = vmatpush3.bf16.msra.mxu0 %v11710_v41  ;;  %v11761_v41 = vld [vmem:[%s12884_s22 + $0x548] sm:$0xff]   ;;  %v11793_v11 = vld [vmem:[%s12884_s22 + $0x690] sm:$0xff]  }
 0x109   : > { %10477 = vmatprep.subr.bf16.mxu0 %v11713_v45  ;;  %v11764_v45 = vld [vmem:[%s12884_s22 + $0x588] sm:$0xff]  }
 0x10a   : > { %10498 = vmatpush3.bf16.msra.mxu1 %v11712_v44  ;;  %v11763_v44 = vld [vmem:[%s12884_s22 + $0x5c8] sm:$0xff]  }
 0x10b   : > { %10499 = vmatprep.subr.bf16.mxu1 %v11715_v47  ;;  %v11766_v47 = vld [vmem:[%s12884_s22 + $0x500] sm:$0xff]  }
 0x10c   : > { %10478 = vmatpush3.bf16.msra.mxu0 %v11714_v46  ;;  %v11765_v46 = vld [vmem:[%s12884_s22 + $0x540] sm:$0xff]  }
 0x10d   : > { %10479 = vmatprep.subr.bf16.mxu0 %v11717_v49  ;;  %v11769_v49 = vld [vmem:[%s12884_s22 + $0x580] sm:$0xff]  }
 0x10e   : > { %10500 = vmatpush3.bf16.msra.mxu1 %v11716_v48  ;;  %v11767_v48 = vld [vmem:[%s12884_s22 + $0x5c0] sm:$0xff]  }
 0x10f   : > { %10501 = vmatprep.subr.bf16.mxu1 %v11719_v51  ;;  %v11770_v51 = vld [vmem:[%s12884_s22 + $0x678] sm:$0xff]  }
 0x110   : > { %10480 = vmatpush3.bf16.msra.mxu0 %v11718_v50  ;;  %v2012_v50 = vrot.slane %v13088_v4, %v12939_v42  ;;  %v11786_v4 = vld [vmem:[%s12884_s22 + $0x658] sm:$0xff]  }
 0x111   : > { %10481 = vmatprep.subr.bf16.mxu0 %v11721_v53  ;;  %v11772_v53 = vld [vmem:[%s12884_s22 + $0x6f8] sm:$0xff]  }
 0x112   : > { %10502 = vmatpush3.bf16.msra.mxu1 %v11720_v52  ;;  %v11771_v52 = vld [vmem:[%s12884_s22 + $0x638] sm:$0xff]  }
 0x113   : > { %10503 = vmatprep.subr.bf16.mxu1 %v11723_v55  ;;  %v2028_v55 = vcombine.high %v2012_v50, %v2012_v50 }
 0x114   : > { %10482 = vmatpush3.bf16.msra.mxu0 %v11722_v54  ;;  %v11773_v54 = vld [vmem:[%s12884_s22 + $0x6b8] sm:$0xff]  }
 0x115   : > { %10483 = vmatprep.subr.bf16.mxu0 %v11725_v57  ;;  %v11775_v57 = vld [vmem:[%s12884_s22 + $0x630] sm:$0xff]  }
 0x116   : > { %10504 = vmatpush3.bf16.msra.mxu1 %v11724_v56  ;;  %v11774_v56 = vld [vmem:[%s12884_s22 + $0x670] sm:$0xff]  }
 0x117   : > { %10505 = vmatprep.subr.bf16.mxu1 %v11727_v59  ;;  %v11777_v59 = vld [vmem:[%s12884_s22 + $0x6b0] sm:$0xff]  }
 0x118   : > { %10484 = vmatpush3.bf16.msra.mxu0 %v11726_v58  ;;  %v11776_v58 = vld [vmem:[%s12884_s22 + $0x6f0] sm:$0xff]  }
 0x119   : > { %10485 = vmatprep.subr.bf16.mxu0 %v11729_v62  ;;  %v11780_v62 = vld [vmem:[%s12884_s22 + $0x6e8] sm:$0xff]  }
 0x11a   : > { %10506 = vmatpush3.bf16.msra.mxu1 %v11728_v60  ;;  %v11778_v60 = vld [vmem:[%s12884_s22 + $0x668] sm:$0xff]  }
 0x11b   : > { %10507 = vmatprep.subr.bf16.mxu1 %v11731_v2  ;;  %v11784_v2 = vld [vmem:[%s12884_s22 + $0x6e0] sm:$0xff]  }
 0x11c   : > { %10486 = vmatpush3.bf16.msra.mxu0 %v11730_v1  ;;  %v11783_v1 = vld [vmem:[%s12884_s22 + $0x620] sm:$0xff]  }
 0x11d   : > { %10487 = vmatprep.subr.bf16.mxu0 %v11733_v6  ;;  %v11788_v6 = vld [vmem:[%s12884_s22 + $0x6d8] sm:$0xff]  }
 0x11e   : > { %10508 = vmatpush3.bf16.msra.mxu1 %v11732_v5  ;;  %v11787_v5 = vld [vmem:[%s12884_s22 + $0x618] sm:$0xff]  }
 0x11f   : > { %10509 = vmatprep.subr.bf16.mxu1 %v11735_v10  ;;  %v11792_v10 = vld [vmem:[%s12884_s22 + $0x6d0] sm:$0xff]  }
 0x120   : > { %10488 = vmatpush3.bf16.msra.mxu0 %v11734_v8  ;;  %v11790_v8 = vld [vmem:[%s12884_s22 + $0x650] sm:$0xff]  }
 0x121   : > { %10517 = vmatprep.subr.bf16.mxu0 %v11737_v14  ;;  %v11795_v14 = vld [vmem:[%s12884_s22 + $0x608] sm:$0xff]  }
 0x122   : > { %10510 = vmatpush3.bf16.msra.mxu1 %v11736_v12  ;;  %v11794_v12 = vld [vmem:[%s12884_s22 + $0x648] sm:$0xff]  }
 0x123   : > { %7649 = vmatmul.mubr.bf16.vlgmr.msra.gmra.mxu0 %v2005_v13  ;;  %10539 = vmatprep.subr.bf16.mxu1 %v11739_v17  ;;  %v293_v13 = vld [vmem:[%s12876_s24 + $0x18] sm:$0xff]  ;;  %v11796_v17 = vld [vmem:[%s12884_s22 + $0x6c8] sm:$0xff]  }
 0x124   : > { %10518 = vmatpush3.bf16.msra.mxu0 %v11738_v15  ;;  %7728 = vmatprep.mubr.bf16.mxu0 %v2026_v16  ;;  %v2038_v15 = vrot.slane %v293_v13, %v12939_v42  ;;  %v2031_v16 = vcombine.high %v293_v13, %v293_v13  ;;  %v11835_v13 = vld [vmem:[%s12884_s22 + $0x878] sm:$0xff]  }
 0x125   : > { %7689 = vmatmul.mubr.bf16.vlgmr.msra.gmra.mxu1 %v2027_v19  ;;  %10519 = vmatprep.subr.bf16.mxu0 %v11741_v20 }
 0x126   : > { %10540 = vmatpush3.bf16.msra.mxu1 %v11740_v18  ;;  %7768 = vmatprep.mubr.bf16.mxu1 %v2030_v22  ;;  %v11797_v18 = vld [vmem:[%s12884_s22 + $0x688] sm:$0xff]   ;;  %v2046_v19 = vcombine.high %v2038_v15, %v2038_v15  ;;  %v13165_v20 = vrot.slane %v2031_v16, %v12939_v42  ;;  %v11799_v22 = vld [vmem:[%s12884_s22 + $0x600] sm:$0xff]   ;;  %v11838_v16 = vld [vmem:[%s12884_s22 + $0x8b8] sm:$0xff]  }
 0x127   : > { %10541 = vmatprep.subr.bf16.mxu1 %v11743_v23 }
 0x128   : > { %10520 = vmatpush3.bf16.msra.mxu0 %v11742_v21  ;;  %v11798_v21 = vld [vmem:[%s12884_s22 + $0x640] sm:$0xff]   ;;  %v2068_v23 = vrot.slane %v2046_v19, %v12939_v42  ;;  %v11840_v19 = vld [vmem:[%s12884_s22 + $0x830] sm:$0xff]  }
 0x129   : > { %10521 = vmatprep.subr.bf16.mxu0 %v11745_v25  ;;  %v11800_v25 = vld [vmem:[%s12884_s22 + $0x6c0] sm:$0xff]  }
 0x12a   : > { %10542 = vmatpush3.bf16.msra.mxu1 %v11744_v24  ;;  %v2047_v24 = vcombine.high %v13165_v20, %v13165_v20 }
 0x12b   : > { %10543 = vmatprep.subr.bf16.mxu1 %v11747_v27  ;;  %v2078_v27 = vcombine.high %v2068_v23, %v2068_v23 }
 0x12c   : > { %10522 = vmatpush3.bf16.msra.mxu0 %v11746_v26  ;;  %v11801_v26 = vld [vmem:[%s12884_s22 + $0x680] sm:$0xff]  }
 0x12d   : > { %10523 = vmatprep.subr.bf16.mxu0 %v11749_v29  ;;  %v11802_v29 = vld [vmem:[%s12884_s22 + $0x778] sm:$0xff]  }
 0x12e   : > { %10544 = vmatpush3.bf16.msra.mxu1 %v11748_v28  ;;  %v2054_v28 = vrot.slane %v2038_v15, %v12939_v42  ;;  %v11837_v15 = vld [vmem:[%s12884_s22 + $0x8f8] sm:$0xff]  }
 0x12f   : > { %10545 = vmatprep.subr.bf16.mxu1 %v11751_v31  ;;  %v2075_v31 = vrot.slane %v2047_v24, %v12939_v42 }
 0x130   : > { %10524 = vmatpush3.bf16.msra.mxu0 %v11750_v30  ;;  %v11803_v30 = vld [vmem:[%s12884_s22 + $0x738] sm:$0xff]  }
 0x131   : > { %10525 = vmatprep.subr.bf16.mxu0 %v11753_v33  ;;  %v11805_v33 = vld [vmem:[%s12884_s22 + $0x7b8] sm:$0xff]  }
 0x132   : > { %10546 = vmatpush3.bf16.msra.mxu1 %v11752_v32  ;;  %v11804_v32 = vld [vmem:[%s12884_s22 + $0x7f8] sm:$0xff]  }
 0x133   : > { %10547 = vmatprep.subr.bf16.mxu1 %v11755_v35  ;;  %v11806_v35 = vld [vmem:[%s12884_s22 + $0x770] sm:$0xff]  }
 0x134   : > { %10526 = vmatpush3.bf16.msra.mxu0 %v11754_v34  ;;  %v2076_v34 = vcombine.high %v2054_v28, %v2054_v28 }
 0x135   : > { %10527 = vmatprep.subr.bf16.mxu0 %v11757_v37  ;;  %v2079_v37 = vcombine.high %v2075_v31, %v2075_v31 }
 0x136   : > { %10548 = vmatpush3.bf16.msra.mxu1 %v11756_v36  ;;  %v11807_v36 = vld [vmem:[%s12884_s22 + $0x730] sm:$0xff]  }
 0x137   : > { %10549 = vmatprep.subr.bf16.mxu1 %v11759_v39  ;;  %v11808_v39 = vld [vmem:[%s12884_s22 + $0x7f0] sm:$0xff]  }
 0x138   : > { %10528 = vmatpush3.bf16.msra.mxu0 %v11758_v38 }
 0x139   : > { %10529 = vmatprep.subr.bf16.mxu0 %v11761_v41 }
 0x13a   : > { %10550 = vmatpush3.bf16.msra.mxu1 %v11760_v40  ;;  %v11809_v40 = vld [vmem:[%s12884_s22 + $0x7b0] sm:$0xff]  }
 0x13b   : > { %10551 = vmatprep.subr.bf16.mxu1 %v11763_v44  ;;  %v11810_v44 = vld [vmem:[%s12884_s22 + $0x768] sm:$0xff]  }
 0x13c   : > { %10530 = vmatpush3.bf16.msra.mxu0 %v11762_v43 }
 0x13d   : > { %10531 = vmatprep.subr.bf16.mxu0 %v11765_v46  ;;  %v11811_v46 = vld [vmem:[%s12884_s22 + $0x728] sm:$0xff]  }
 0x13e   : > { %10552 = vmatpush3.bf16.msra.mxu1 %v11764_v45 }
 0x13f   : > { %10553 = vmatprep.subr.bf16.mxu1 %v11767_v48 }
 0x140   : > { %10532 = vmatpush3.bf16.msra.mxu0 %v11766_v47 }
 0x141   : > { %10561 = vmatprep.subr.bf16.mxu0 %v11770_v51  ;;  %v11813_v51 = vld [vmem:[%s12884_s22 + $0x7a8] sm:$0xff]  }
 0x142   : > { %10554 = vmatpush3.bf16.msra.mxu1 %v11769_v49  ;;  %v11812_v49 = vld [vmem:[%s12884_s22 + $0x7e8] sm:$0xff]  }
 0x143   : > { %7729 = vmatmul.mubr.bf16.vlgmr.msra.gmra.mxu0 %v2012_v50  ;;  %10583 = vmatprep.subr.bf16.mxu1 %v11772_v53  ;;  %v11814_v53 = vld [vmem:[%s12884_s22 + $0x760] sm:$0xff]  }
 0x144   : > { %10562 = vmatpush3.bf16.msra.mxu0 %v11771_v52  ;;  %7808 = vmatprep.mubr.bf16.mxu0 %v2068_v23 }
 0x145   : > { %7769 = vmatmul.mubr.bf16.vlgmr.msra.gmra.mxu1 %v2028_v55  ;;  %10563 = vmatprep.subr.bf16.mxu0 %v11774_v56  ;;  %v11815_v56 = vld [vmem:[%s12884_s22 + $0x720] sm:$0xff]  }
 0x146   : > { %10584 = vmatpush3.bf16.msra.mxu1 %v11773_v54  ;;  %7848 = vmatprep.mubr.bf16.mxu1 %v2078_v27  ;;  %v11844_v27 = vld [vmem:[%s12884_s22 + $0x828] sm:$0xff]  }
 0x147   : > { %10585 = vmatprep.subr.bf16.mxu1 %v11776_v58 }
 0x148   : > { %10564 = vmatpush3.bf16.msra.mxu0 %v11775_v57  ;;  %v11816_v57 = vld [vmem:[%s12884_s22 + $0x7e0] sm:$0xff]  }
 0x149   : > { %10565 = vmatprep.subr.bf16.mxu0 %v11778_v60  ;;  %v11818_v60 = vld [vmem:[%s12884_s22 + $0x758] sm:$0xff]  }
 0x14a   : > { %10586 = vmatpush3.bf16.msra.mxu1 %v11777_v59  ;;  %v11817_v59 = vld [vmem:[%s12884_s22 + $0x7a0] sm:$0xff]  }
 0x14b   : > { %10587 = vmatprep.subr.bf16.mxu1 %v11780_v62  ;;  %v11820_v62 = vld [vmem:[%s12884_s22 + $0x7d8] sm:$0xff]  }
 0x14c   : > { %10566 = vmatpush3.bf16.msra.mxu0 %v11779_v61  ;;  %v11819_v61 = vld [vmem:[%s12884_s22 + $0x718] sm:$0xff]  }
 0x14d   : > { %10567 = vmatprep.subr.bf16.mxu0 %v11782_v0  ;;  %v11822_v0 = vld [vmem:[%s12884_s22 + $0x750] sm:$0xff]  }
 0x14e   : > { %10588 = vmatpush3.bf16.msra.mxu1 %v11781_v63  ;;  %v11821_v63 = vld [vmem:[%s12884_s22 + $0x798] sm:$0xff]  }
 0x14f   : > { %10589 = vmatprep.subr.bf16.mxu1 %v11784_v2  ;;  %v11824_v2 = vld [vmem:[%s12884_s22 + $0x7d0] sm:$0xff]  }
 0x150   : > { %10568 = vmatpush3.bf16.msra.mxu0 %v11783_v1  ;;  %v11823_v1 = vld [vmem:[%s12884_s22 + $0x710] sm:$0xff]  }
 0x151   : > { %10569 = vmatprep.subr.bf16.mxu0 %v11786_v4  ;;  %v11826_v4 = vld [vmem:[%s12884_s22 + $0x748] sm:$0xff]  }
 0x152   : > { %10590 = vmatpush3.bf16.msra.mxu1 %v11785_v3  ;;  %v11825_v3 = vld [vmem:[%s12884_s22 + $0x790] sm:$0xff]  }
 0x153   : > { %10591 = vmatprep.subr.bf16.mxu1 %v11788_v6  ;;  %v11828_v6 = vld [vmem:[%s12884_s22 + $0x7c8] sm:$0xff]  }
 0x154   : > { %10570 = vmatpush3.bf16.msra.mxu0 %v11787_v5  ;;  %v11827_v5 = vld [vmem:[%s12884_s22 + $0x708] sm:$0xff]  }
 0x155   : > { %10571 = vmatprep.subr.bf16.mxu0 %v11790_v8  ;;  %v11830_v8 = vld [vmem:[%s12884_s22 + $0x740] sm:$0xff]  }
 0x156   : > { %10592 = vmatpush3.bf16.msra.mxu1 %v11789_v7  ;;  %v11829_v7 = vld [vmem:[%s12884_s22 + $0x788] sm:$0xff]  }
 0x157   : > { %10593 = vmatprep.subr.bf16.mxu1 %v11792_v10  ;;  %v11832_v10 = vld [vmem:[%s12884_s22 + $0x7c0] sm:$0xff]  }
 0x158   : > { %10572 = vmatpush3.bf16.msra.mxu0 %v11791_v9  ;;  %v11831_v9 = vld [vmem:[%s12884_s22 + $0x700] sm:$0xff]  }
 0x159   : > { %10573 = vmatprep.subr.bf16.mxu0 %v11794_v12  ;;  %v2061_v12 = vrot.slane %v13165_v20, %v12939_v42  ;;  %v11841_v20 = vld [vmem:[%s12884_s22 + $0x8f0] sm:$0xff]  }
 0x15a   : > { %10594 = vmatpush3.bf16.msra.mxu1 %v11793_v11  ;;  %v11834_v11 = vld [vmem:[%s12884_s22 + $0x780] sm:$0xff]  }
 0x15b   : > { %10595 = vmatprep.subr.bf16.mxu1 %v11796_v17  ;;  %v2077_v17 = vcombine.high %v2061_v12, %v2061_v12 }
 0x15c   : > { %10574 = vmatpush3.bf16.msra.mxu0 %v11795_v14  ;;  %v11836_v14 = vld [vmem:[%s12884_s22 + $0x838] sm:$0xff]  }
 0x15d   : > { %10575 = vmatprep.subr.bf16.mxu0 %v11798_v21 }
 0x15e   : > { %10596 = vmatpush3.bf16.msra.mxu1 %v11797_v18  ;;  %v11839_v18 = vld [vmem:[%s12884_s22 + $0x870] sm:$0xff]  }
 0x15f   : > { %10597 = vmatprep.subr.bf16.mxu1 %v11800_v25  ;;  %v11843_v25 = vld [vmem:[%s12884_s22 + $0x868] sm:$0xff]  }
 0x160   : > { %10576 = vmatpush3.bf16.msra.mxu0 %v11799_v22  ;;  %v11842_v22 = vld [vmem:[%s12884_s22 + $0x8b0] sm:$0xff]  }
 0x161   : > { %10605 = vmatprep.subr.bf16.mxu0 %v11802_v29 }
 0x162   : > { %10598 = vmatpush3.bf16.msra.mxu1 %v11801_v26 }
 0x163   : > { %v10313_v38 = vpop.f32.mrf.mxu0  ;;  %7809 = vmatmul.mubr.bf16.vlgmr.msra.gmra.mxu0 %v2054_v28  ;;  %10627 = vmatprep.subr.bf16.mxu1 %v11804_v32 }
 0x164   : > { %10606 = vmatpush3.bf16.msra.mxu0 %v11803_v30  ;;  %7888 = vmatprep.mubr.bf16.mxu0 %v2075_v31  ;;  %v10335_v41 = vpop.f32.mrf.mxu1  ;;  %v11845_v30 = vld [vmem:[%s12884_s22 + $0x8e8] sm:$0xff]  }
 0x165   : > { %v10314_v43 = vpop.f32.mrf.mxu0  ;;  %7849 = vmatmul.mubr.bf16.vlgmr.msra.gmra.mxu1 %v2076_v34  ;;  %10607 = vmatprep.subr.bf16.mxu0 %v11806_v35  ;;  %v11847_v35 = vld [vmem:[%s12884_s22 + $0x860] sm:$0xff]  }
 0x166   : > { %v10315_v45 = vadd.f32 %v10314_v43, %v10313_v38  ;;  %10628 = vmatpush3.bf16.msra.mxu1 %v11805_v33  ;;  %7928 = vmatprep.mubr.bf16.mxu1 %v2079_v37  ;;  %v10336_v47 = vpop.f32.mrf.mxu1  ;;  %v11846_v33 = vld [vmem:[%s12884_s22 + $0x8a8] sm:$0xff]   ;;  %v11848_v38 = vld [vmem:[%s12884_s22 + $0x820] sm:$0xff]   ;;  %v11851_v43 = vld [vmem:[%s12884_s22 + $0x858] sm:$0xff]  }
 0x167   : > { %v10316_v48 = vpop.f32.mrf.mxu0  ;;  %10629 = vmatprep.subr.bf16.mxu1 %v11808_v39  ;;  %v10337_v50 = vadd.f32 %v10336_v47, %v10335_v41  ;;  %v11849_v39 = vld [vmem:[%s12884_s22 + $0x8e0] sm:$0xff]   ;;  %v11855_v47 = vld [vmem:[%s12884_s22 + $0x850] sm:$0xff]  }
 0x168   : > { %10608 = vmatpush3.bf16.msra.mxu0 %v11807_v36  ;;  %v10338_v54 = vpop.f32.mrf.mxu1  ;;  %v11850_v41 = vld [vmem:[%s12884_s22 + $0x8a0] sm:$0xff]   ;;  %v11856_v48 = vld [vmem:[%s12884_s22 + $0x810] sm:$0xff]  }
 0x169   : > { %v10317_v52 = vpop.f32.mrf.mxu0  ;;  %10609 = vmatprep.subr.bf16.mxu0 %v11810_v44  ;;  %v13189_v55 = vadd.f32 %v10337_v50, %v10315_v45  ;;  %v11852_v44 = vld [vmem:[%s12884_s22 + $0x818] sm:$0xff]   ;;  %v11858_v50 = vld [vmem:[%s12884_s22 + $0x890] sm:$0xff]  }
 0x16a   : > { %10630 = vmatpush3.bf16.msra.mxu1 %v11809_v40  ;;  %v10339_v58 = vpop.f32.mrf.mxu1  ;;  %v11853_v45 = vld [vmem:[%s12884_s22 + $0x8d8] sm:$0xff]  }
 0x16b   : > { %10631 = vmatprep.subr.bf16.mxu1 %v11812_v49  ;;  %v11857_v49 = vld [vmem:[%s12884_s22 + $0x8d0] sm:$0xff]   ;;  %v294_v52 = vld [vmem:[%s12876_s24 + $0x20] sm:$0xff] }
 0x16c   : > { %10610 = vmatpush3.bf16.msra.mxu0 %v11811_v46  ;;  %v11854_v46 = vld [vmem:[%s12884_s22 + $0x898] sm:$0xff]   ;;  %v2087_v54 = vrot.slane %v294_v52, %v12939_v42 }
 0x16d   : > { %10611 = vmatprep.subr.bf16.mxu0 %v11814_v53  ;;  %v11860_v53 = vld [vmem:[%s12884_s22 + $0x808] sm:$0xff]  }
 0x16e   : > { %10632 = vmatpush3.bf16.msra.mxu1 %v11813_v51  ;;  %v11859_v51 = vld [vmem:[%s12884_s22 + $0x848] sm:$0xff]   ;;  %v2095_v58 = vcombine.high %v2087_v54, %v2087_v54 }
 0x16f   : > { %10633 = vmatprep.subr.bf16.mxu1 %v11816_v57  ;;  %v11862_v57 = vld [vmem:[%s12884_s22 + $0x888] sm:$0xff]  }
 0x170   : > { %10612 = vmatpush3.bf16.msra.mxu0 %v11815_v56  ;;  %v11861_v56 = vld [vmem:[%s12884_s22 + $0x8c8] sm:$0xff]  }
 0x171   : > { %10613 = vmatprep.subr.bf16.mxu0 %v11818_v60  ;;  %v11863_v60 = vld [vmem:[%s12884_s22 + $0x840] sm:$0xff]  }
 0x172   : > { %10634 = vmatpush3.bf16.msra.mxu1 %v11817_v59 }
 0x173   : > { %10635 = vmatprep.subr.bf16.mxu1 %v11820_v62  ;;  %v2117_v62 = vrot.slane %v2095_v58, %v12939_v42  ;;  %v11904_v58 = vld [vmem:[%s12884_s22 + $0xa70] sm:$0xff]  }
 0x174   : > { %10614 = vmatpush3.bf16.msra.mxu0 %v11819_v61  ;;  %v11864_v61 = vld [vmem:[%s12884_s22 + $0x800] sm:$0xff]  }
 0x175   : > { %10615 = vmatprep.subr.bf16.mxu0 %v11822_v0  ;;  %v11865_v0 = vld [vmem:[%s12884_s22 + $0x8c0] sm:$0xff]  }
 0x176   : > { %10636 = vmatpush3.bf16.msra.mxu1 %v11821_v63 }
 0x177   : > { %10637 = vmatprep.subr.bf16.mxu1 %v11824_v2  ;;  %v2127_v2 = vcombine.high %v2117_v62, %v2117_v62 }
 0x178   : > { %10616 = vmatpush3.bf16.msra.mxu0 %v11823_v1  ;;  %v11866_v1 = vld [vmem:[%s12884_s22 + $0x880] sm:$0xff]  }
 0x179   : > { %10617 = vmatprep.subr.bf16.mxu0 %v11826_v4  ;;  %v11867_v4 = vld [vmem:[%s12884_s22 + $0x978] sm:$0xff]  }
 0x17a   : > { %10638 = vmatpush3.bf16.msra.mxu1 %v11825_v3  ;;  %v2103_v3 = vrot.slane %v2087_v54, %v12939_v42  ;;  %v11901_v54 = vld [vmem:[%s12884_s22 + $0xa38] sm:$0xff]  }
 0x17b   : > { %10639 = vmatprep.subr.bf16.mxu1 %v11828_v6 }
 0x17c   : > { %10618 = vmatpush3.bf16.msra.mxu0 %v11827_v5  ;;  %v11868_v5 = vld [vmem:[%s12884_s22 + $0x938] sm:$0xff]  }
 0x17d   : > { %10619 = vmatprep.subr.bf16.mxu0 %v11830_v8  ;;  %v11870_v8 = vld [vmem:[%s12884_s22 + $0x9b8] sm:$0xff]  }
 0x17e   : > { %10640 = vmatpush3.bf16.msra.mxu1 %v11829_v7  ;;  %v11869_v7 = vld [vmem:[%s12884_s22 + $0x9f8] sm:$0xff]  }
 0x17f   : > { %10641 = vmatprep.subr.bf16.mxu1 %v11832_v10  ;;  %v11871_v10 = vld [vmem:[%s12884_s22 + $0x970] sm:$0xff]  }
 0x180   : > { %10620 = vmatpush3.bf16.msra.mxu0 %v11831_v9  ;;  %v2125_v9 = vcombine.high %v2103_v3, %v2103_v3 }
 0x181   : > { %10649 = vmatprep.subr.bf16.mxu0 %v11835_v13 }
 0x182   : > { %10642 = vmatpush3.bf16.msra.mxu1 %v11834_v11  ;;  %v11872_v11 = vld [vmem:[%s12884_s22 + $0x930] sm:$0xff]  }
 0x183   : > { %v10357_v21 = vpop.f32.mrf.mxu0  ;;  %7889 = vmatmul.mubr.bf16.vlgmr.msra.gmra.mxu0 %v2061_v12  ;;  %10671 = vmatprep.subr.bf16.mxu1 %v11837_v15  ;;  %v11874_v15 = vld [vmem:[%s12884_s22 + $0x9b0] sm:$0xff]  }
 0x184   : > { %10650 = vmatpush3.bf16.msra.mxu0 %v11836_v14  ;;  %v10379_v24 = vpop.f32.mrf.mxu1  ;;  %7968 = vmatprep.mubr.bf16.mxu0 %v2117_v62  ;;  %v11873_v14 = vld [vmem:[%s12884_s22 + $0x9f0] sm:$0xff]  }
 0x185   : > { %v10358_v23 = vpop.f32.mrf.mxu0  ;;  %7929 = vmatmul.mubr.bf16.vlgmr.msra.gmra.mxu1 %v2077_v17  ;;  %10651 = vmatprep.subr.bf16.mxu0 %v11839_v18  ;;  %v11875_v18 = vld [vmem:[%s12884_s22 + $0x968] sm:$0xff]   ;;  %v11907_v62 = vld [vmem:[%s12884_s22 + $0xab0] sm:$0xff]  }
 0x186   : > { %v10359_v26 = vadd.f32 %v10358_v23, %v10357_v21  ;;  %10672 = vmatpush3.bf16.msra.mxu1 %v11838_v16  ;;  %v10380_v29 = vpop.f32.mrf.mxu1  ;;  %8008 = vmatprep.mubr.bf16.mxu1 %v2127_v2  ;;  %v11876_v21 = vld [vmem:[%s12884_s22 + $0x928] sm:$0xff]  }
 0x187   : > { %v10360_v28 = vpop.f32.mrf.mxu0  ;;  %10673 = vmatprep.subr.bf16.mxu1 %v11841_v20  ;;  %v10381_v32 = vadd.f32 %v10380_v29, %v10379_v24  ;;  %v11877_v23 = vld [vmem:[%s12884_s22 + $0x9e8] sm:$0xff]  }
 0x188   : > { %v7411_v31 = vadd.f32 %v10359_v26, %v13189_v55  ;;  %10652 = vmatpush3.bf16.msra.mxu0 %v11840_v19  ;;  %v10382_v36 = vpop.f32.mrf.mxu1  ;;  %v2080_v55 = vcombine.high %v294_v52, %v294_v52  ;;  %v11878_v26 = vld [vmem:[%s12884_s22 + $0x9a8] sm:$0xff]   ;;  %v11879_v28 = vld [vmem:[%s12884_s22 + $0x960] sm:$0xff]  }
 0x189   : > { %v10361_v34 = vpop.f32.mrf.mxu0  ;;  %10653 = vmatprep.subr.bf16.mxu0 %v11843_v25  ;;  %v11884_v36 = vld [vmem:[%s12884_s22 + $0x918] sm:$0xff]  }
 0x18a   : > { %v13226_v37 = vadd.f32 %v10381_v32, %v7411_v31  ;;  %10674 = vmatpush3.bf16.msra.mxu1 %v11842_v22  ;;  %v10383_v40 = vpop.f32.mrf.mxu1  ;;  %v13246_v59 = vrot.slane %v2080_v55, %v12939_v42  ;;  %v11880_v31 = vld [vmem:[%s12884_s22 + $0x920] sm:$0xff]   ;;  %v11902_v55 = vld [vmem:[%s12884_s22 + $0xaf8] sm:$0xff]  }
 0x18b   : > { %10675 = vmatprep.subr.bf16.mxu1 %v11845_v30  ;;  %v11881_v32 = vld [vmem:[%s12884_s22 + $0x9e0] sm:$0xff]   ;;  %v11888_v40 = vld [vmem:[%s12884_s22 + $0x910] sm:$0xff]  }
 0x18c   : > { %10654 = vmatpush3.bf16.msra.mxu0 %v11844_v27  ;;  %v2096_v63 = vcombine.high %v13246_v59, %v13246_v59  ;;  %v11882_v34 = vld [vmem:[%s12884_s22 + $0x9a0] sm:$0xff]   ;;  %v2110_v52 = vrot.slane %v13246_v59, %v12939_v42  ;;  %v11906_v59 = vld [vmem:[%s12884_s22 + $0xaf0] sm:$0xff]  }
 0x18d   : > { %10655 = vmatprep.subr.bf16.mxu0 %v11847_v35  ;;  %v11883_v35 = vld [vmem:[%s12884_s22 + $0x958] sm:$0xff]  }
 0x18e   : > { %10676 = vmatpush3.bf16.msra.mxu1 %v11846_v33  ;;  %v2124_v6 = vrot.slane %v2096_v63, %v12939_v42 }
 0x18f   : > { %10677 = vmatprep.subr.bf16.mxu1 %v11849_v39  ;;  %v11887_v39 = vld [vmem:[%s12884_s22 + $0x950] sm:$0xff]  }
 0x190   : > { %10656 = vmatpush3.bf16.msra.mxu0 %v11848_v38  ;;  %v2128_v12 = vcombine.high %v2124_v6, %v2124_v6  ;;  %v11886_v38 = vld [vmem:[%s12884_s22 + $0x998] sm:$0xff]  }
 0x191   : > { %10657 = vmatprep.subr.bf16.mxu0 %v11851_v43  ;;  %v11890_v43 = vld [vmem:[%s12884_s22 + $0x990] sm:$0xff]  }
 0x192   : > { %10678 = vmatpush3.bf16.msra.mxu1 %v11850_v41  ;;  %v11889_v41 = vld [vmem:[%s12884_s22 + $0x9d0] sm:$0xff]  }
 0x193   : > { %10679 = vmatprep.subr.bf16.mxu1 %v11853_v45  ;;  %v11892_v45 = vld [vmem:[%s12884_s22 + $0x908] sm:$0xff]  }
 0x194   : > { %10658 = vmatpush3.bf16.msra.mxu0 %v11852_v44  ;;  %v11891_v44 = vld [vmem:[%s12884_s22 + $0x948] sm:$0xff]  }
 0x195   : > { %10659 = vmatprep.subr.bf16.mxu0 %v11855_v47  ;;  %v11894_v47 = vld [vmem:[%s12884_s22 + $0x988] sm:$0xff]  }
 0x196   : > { %10680 = vmatpush3.bf16.msra.mxu1 %v11854_v46  ;;  %v11893_v46 = vld [vmem:[%s12884_s22 + $0x9c8] sm:$0xff]  }
 0x197   : > { %10681 = vmatprep.subr.bf16.mxu1 %v11857_v49  ;;  %v11896_v49 = vld [vmem:[%s12884_s22 + $0x900] sm:$0xff]  }
 0x198   : > { %10660 = vmatpush3.bf16.msra.mxu0 %v11856_v48  ;;  %v11895_v48 = vld [vmem:[%s12884_s22 + $0x940] sm:$0xff]  }
 0x199   : > { %10661 = vmatprep.subr.bf16.mxu0 %v11859_v51  ;;  %v11899_v51 = vld [vmem:[%s12884_s22 + $0x980] sm:$0xff]  }
 0x19a   : > { %10682 = vmatpush3.bf16.msra.mxu1 %v11858_v50  ;;  %v11897_v50 = vld [vmem:[%s12884_s22 + $0x9c0] sm:$0xff]  }
 0x19b   : > { %10683 = vmatprep.subr.bf16.mxu1 %v11861_v56  ;;  %v11903_v56 = vld [vmem:[%s12884_s22 + $0xab8] sm:$0xff]  }
 0x19c   : > { %10662 = vmatpush3.bf16.msra.mxu0 %v11860_v53  ;;  %v11900_v53 = vld [vmem:[%s12884_s22 + $0xa78] sm:$0xff]  }
 0x19d   : > { %10663 = vmatprep.subr.bf16.mxu0 %v11863_v60  ;;  %v11905_v60 = vld [vmem:[%s12884_s22 + $0xa30] sm:$0xff]  }
 0x19e   : > { %10684 = vmatpush3.bf16.msra.mxu1 %v11862_v57  ;;  %v2126_v57 = vcombine.high %v2110_v52, %v2110_v52 }
 0x19f   : > { %10685 = vmatprep.subr.bf16.mxu1 %v11865_v0 }
 0x1a0   : > { %10664 = vmatpush3.bf16.msra.mxu0 %v11864_v61 }
 0x1a1   : > { %10693 = vmatprep.subr.bf16.mxu0 %v11867_v4 }
 0x1a2   : > { %10686 = vmatpush3.bf16.msra.mxu1 %v11866_v1  ;;  %v11908_v1 = vld [vmem:[%s12884_s22 + $0xa68] sm:$0xff]  }
 0x1a3   : > { %v10401_v13 = vpop.f32.mrf.mxu0  ;;  %7969 = vmatmul.mubr.bf16.vlgmr.msra.gmra.mxu0 %v2103_v3  ;;  %10715 = vmatprep.subr.bf16.mxu1 %v11869_v7  ;;  %v11909_v3 = vld [vmem:[%s12884_s22 + $0xa28] sm:$0xff]  }
 0x1a4   : > { %10694 = vmatpush3.bf16.msra.mxu0 %v11868_v5  ;;  %8048 = vmatprep.mubr.bf16.mxu0 %v2124_v6  ;;  %v11910_v6 = vld [vmem:[%s12884_s22 + $0xae8] sm:$0xff]  }
 0x1a5   : > { %v10402_v16 = vpop.f32.mrf.mxu0  ;;  %v10423_v17 = vpop.f32.mrf.mxu1  ;;  %8009 = vmatmul.mubr.bf16.vlgmr.msra.gmra.mxu1 %v2125_v9  ;;  %10695 = vmatprep.subr.bf16.mxu0 %v11871_v10  ;;  %v11911_v9 = vld [vmem:[%s12884_s22 + $0xaa8] sm:$0xff]  }
 0x1a6   : > { %v10403_v19 = vadd.f32 %v10402_v16, %v10401_v13  ;;  %10716 = vmatpush3.bf16.msra.mxu1 %v11870_v8  ;;  %8088 = vmatprep.mubr.bf16.mxu1 %v2128_v12 }
 0x1a7   : > { %v10404_v20 = vpop.f32.mrf.mxu0  ;;  %v10424_v22 = vpop.f32.mrf.mxu1  ;;  %10717 = vmatprep.subr.bf16.mxu1 %v11873_v14  ;;  %v11913_v14 = vld [vmem:[%s12884_s22 + $0xa20] sm:$0xff]  }
 0x1a8   : > { %v7491_v24 = vadd.f32 %v10403_v19, %v13226_v37  ;;  %v10425_v25 = vadd.f32 %v10424_v22, %v10423_v17  ;;  %10696 = vmatpush3.bf16.msra.mxu0 %v11872_v11  ;;  %v11885_v37 = vld [vmem:[%s12884_s22 + $0x9d8] sm:$0xff]   ;;  %v11912_v11 = vld [vmem:[%s12884_s22 + $0xa60] sm:$0xff]   ;;  %v11920_v22 = vld [vmem:[%s12884_s22 + $0xa50] sm:$0xff]  }
 0x1a9   : > { %v10405_v27 = vpop.f32.mrf.mxu0  ;;  %10697 = vmatprep.subr.bf16.mxu0 %v11875_v18  ;;  %v10426_v29 = vpop.f32.mrf.mxu1  ;;  %v11915_v17 = vld [vmem:[%s12884_s22 + $0xaa0] sm:$0xff]   ;;  %v11916_v18 = vld [vmem:[%s12884_s22 + $0xa58] sm:$0xff]  }
 0x1aa   : > { %v13271_v30 = vadd.f32 %v10425_v25, %v7491_v24  ;;  %10718 = vmatpush3.bf16.msra.mxu1 %v11874_v15  ;;  %v11914_v15 = vld [vmem:[%s12884_s22 + $0xae0] sm:$0xff]   ;;  %v11917_v19 = vld [vmem:[%s12884_s22 + $0xa18] sm:$0xff]   ;;  %v11922_v24 = vld [vmem:[%s12884_s22 + $0xad0] sm:$0xff]  }
 0x1ab   : > { %10719 = vmatprep.subr.bf16.mxu1 %v11877_v23  ;;  %v10427_v33 = vpop.f32.mrf.mxu1  ;;  %v11919_v20 = vld [vmem:[%s12884_s22 + $0xa98] sm:$0xff]   ;;  %v11921_v23 = vld [vmem:[%s12884_s22 + $0xa10] sm:$0xff]   ;;  %v295_v27 = vld [vmem:[%s12876_s24 + $0x28] sm:$0xff] }
 0x1ac   : > { %10698 = vmatpush3.bf16.msra.mxu0 %v11876_v21  ;;  %v11918_v21 = vld [vmem:[%s12884_s22 + $0xad8] sm:$0xff]   ;;  %v11923_v25 = vld [vmem:[%s12884_s22 + $0xa90] sm:$0xff]   ;;  %v2136_v29 = vrot.slane %v295_v27, %v12939_v42 }
 0x1ad   : > { %10699 = vmatprep.subr.bf16.mxu0 %v11879_v28  ;;  %v11925_v28 = vld [vmem:[%s12884_s22 + $0xa08] sm:$0xff]  }
 0x1ae   : > { %10720 = vmatpush3.bf16.msra.mxu1 %v11878_v26  ;;  %v11924_v26 = vld [vmem:[%s12884_s22 + $0xa48] sm:$0xff]   ;;  %v2144_v33 = vcombine.high %v2136_v29, %v2136_v29 }
 0x1af   : > { %10721 = vmatprep.subr.bf16.mxu1 %v11881_v32  ;;  %v11927_v32 = vld [vmem:[%s12884_s22 + $0xa88] sm:$0xff]  }
 0x1b0   : > { %10700 = vmatpush3.bf16.msra.mxu0 %v11880_v31  ;;  %v11926_v31 = vld [vmem:[%s12884_s22 + $0xac8] sm:$0xff]  }
 0x1b1   : > { %10701 = vmatprep.subr.bf16.mxu0 %v11883_v35  ;;  %v11928_v35 = vld [vmem:[%s12884_s22 + $0xa40] sm:$0xff]  }
 0x1b2   : > { %10722 = vmatpush3.bf16.msra.mxu1 %v11882_v34 }
 0x1b3   : > { %10723 = vmatprep.subr.bf16.mxu1 %v11885_v37  ;;  %v2166_v37 = vrot.slane %v2144_v33, %v12939_v42  ;;  %v11969_v33 = vld [vmem:[%s12884_s22 + $0xc70] sm:$0xff]  }
 0x1b4   : > { %10702 = vmatpush3.bf16.msra.mxu0 %v11884_v36  ;;  %v11929_v36 = vld [vmem:[%s12884_s22 + $0xa00] sm:$0xff]  }
 0x1b5   : > { %10703 = vmatprep.subr.bf16.mxu0 %v11887_v39  ;;  %v11930_v39 = vld [vmem:[%s12884_s22 + $0xac0] sm:$0xff]  }
 0x1b6   : > { %10724 = vmatpush3.bf16.msra.mxu1 %v11886_v38 }
 0x1b7   : > { %10725 = vmatprep.subr.bf16.mxu1 %v11889_v41  ;;  %v2176_v41 = vcombine.high %v2166_v37, %v2166_v37 }
 0x1b8   : > { %10704 = vmatpush3.bf16.msra.mxu0 %v11888_v40  ;;  %v11931_v40 = vld [vmem:[%s12884_s22 + $0xa80] sm:$0xff]  }
 0x1b9   : > { %10705 = vmatprep.subr.bf16.mxu0 %v11891_v44  ;;  %v11932_v44 = vld [vmem:[%s12884_s22 + $0xb78] sm:$0xff]  }
 0x1ba   : > { %10726 = vmatpush3.bf16.msra.mxu1 %v11890_v43  ;;  %v2152_v43 = vrot.slane %v2136_v29, %v12939_v42  ;;  %v11966_v29 = vld [vmem:[%s12884_s22 + $0xc38] sm:$0xff]  }
 0x1bb   : > { %10727 = vmatprep.subr.bf16.mxu1 %v11893_v46 }
 0x1bc   : > { %10706 = vmatpush3.bf16.msra.mxu0 %v11892_v45  ;;  %v11933_v45 = vld [vmem:[%s12884_s22 + $0xb38] sm:$0xff]  }
 0x1bd   : > { %10707 = vmatprep.subr.bf16.mxu0 %v11895_v48  ;;  %v11935_v48 = vld [vmem:[%s12884_s22 + $0xbb8] sm:$0xff]  }
 0x1be   : > { %10728 = vmatpush3.bf16.msra.mxu1 %v11894_v47  ;;  %v11934_v47 = vld [vmem:[%s12884_s22 + $0xbf8] sm:$0xff]  }
 0x1bf   : > { %10729 = vmatprep.subr.bf16.mxu1 %v11897_v50  ;;  %v11936_v50 = vld [vmem:[%s12884_s22 + $0xb70] sm:$0xff]  }
 0x1c0   : > { %10708 = vmatpush3.bf16.msra.mxu0 %v11896_v49  ;;  %v2174_v49 = vcombine.high %v2152_v43, %v2152_v43 }
 0x1c1   : > { %10737 = vmatprep.subr.bf16.mxu0 %v11900_v53 }
 0x1c2   : > { %10730 = vmatpush3.bf16.msra.mxu1 %v11899_v51  ;;  %v11937_v51 = vld [vmem:[%s12884_s22 + $0xb30] sm:$0xff]  }
 0x1c3   : > { %v10445_v61 = vpop.f32.mrf.mxu0  ;;  %8049 = vmatmul.mubr.bf16.vlgmr.msra.gmra.mxu0 %v2110_v52  ;;  %10759 = vmatprep.subr.bf16.mxu1 %v11902_v55  ;;  %v11939_v55 = vld [vmem:[%s12884_s22 + $0xbb0] sm:$0xff]  }
 0x1c4   : > { %10738 = vmatpush3.bf16.msra.mxu0 %v11901_v54  ;;  %8128 = vmatprep.mubr.bf16.mxu0 %v2166_v37  ;;  %v11938_v54 = vld [vmem:[%s12884_s22 + $0xbf0] sm:$0xff]  }
 0x1c5   : > { %v10446_v63 = vpop.f32.mrf.mxu0  ;;  %v10467_v0 = vpop.f32.mrf.mxu1  ;;  %8089 = vmatmul.mubr.bf16.vlgmr.msra.gmra.mxu1 %v2126_v57  ;;  %10739 = vmatprep.subr.bf16.mxu0 %v11904_v58  ;;  %v11940_v58 = vld [vmem:[%s12884_s22 + $0xb68] sm:$0xff]   ;;  %v11972_v37 = vld [vmem:[%s12884_s22 + $0xcb0] sm:$0xff]  }
 0x1c6   : > { %v10447_v2 = vadd.f32 %v10446_v63, %v10445_v61  ;;  %10760 = vmatpush3.bf16.msra.mxu1 %v11903_v56  ;;  %8168 = vmatprep.mubr.bf16.mxu1 %v2176_v41  ;;  %v11941_v61 = vld [vmem:[%s12884_s22 + $0xb28] sm:$0xff]  }
 0x1c7   : > { %v10448_v4 = vpop.f32.mrf.mxu0  ;;  %v10468_v5 = vpop.f32.mrf.mxu1  ;;  %10761 = vmatprep.subr.bf16.mxu1 %v11906_v59  ;;  %v11942_v63 = vld [vmem:[%s12884_s22 + $0xbe8] sm:$0xff]  }
 0x1c8   : > { %v7571_v7 = vadd.f32 %v10447_v2, %v13271_v30  ;;  %v10469_v8 = vadd.f32 %v10468_v5, %v10467_v0  ;;  %10740 = vmatpush3.bf16.msra.mxu0 %v11905_v60  ;;  %v2129_v30 = vcombine.high %v295_v27, %v295_v27  ;;  %v11943_v2 = vld [vmem:[%s12884_s22 + $0xba8] sm:$0xff]   ;;  %v11944_v4 = vld [vmem:[%s12884_s22 + $0xb60] sm:$0xff]  }
 0x1c9   : > { %v10449_v10 = vpop.f32.mrf.mxu0  ;;  %10741 = vmatprep.subr.bf16.mxu0 %v11908_v1  ;;  %v10470_v12 = vpop.f32.mrf.mxu1 }
 0x1ca   : > { %v13308_v13 = vadd.f32 %v10469_v8, %v7571_v7  ;;  %10762 = vmatpush3.bf16.msra.mxu1 %v11907_v62  ;;  %v13328_v34 = vrot.slane %v2129_v30, %v12939_v42  ;;  %v11945_v7 = vld [vmem:[%s12884_s22 + $0xb20] sm:$0xff]   ;;  %v11949_v12 = vld [vmem:[%s12884_s22 + $0xb18] sm:$0xff]  }
 0x1cb   : > { %10763 = vmatprep.subr.bf16.mxu1 %v11910_v6  ;;  %v10471_v16 = vpop.f32.mrf.mxu1  ;;  %v11946_v8 = vld [vmem:[%s12884_s22 + $0xbe0] sm:$0xff]   ;;  %v11967_v30 = vld [vmem:[%s12884_s22 + $0xcf8] sm:$0xff]  }
 0x1cc   : > { %10742 = vmatpush3.bf16.msra.mxu0 %v11909_v3  ;;  %v2145_v38 = vcombine.high %v13328_v34, %v13328_v34  ;;  %v11947_v10 = vld [vmem:[%s12884_s22 + $0xba0] sm:$0xff]   ;;  %v11953_v16 = vld [vmem:[%s12884_s22 + $0xb10] sm:$0xff]   ;;  %v2159_v27 = vrot.slane %v13328_v34, %v12939_v42 }
 0x1cd   : > { %10743 = vmatprep.subr.bf16.mxu0 %v11912_v11  ;;  %v11948_v11 = vld [vmem:[%s12884_s22 + $0xb58] sm:$0xff]   ;;  %v11971_v34 = vld [vmem:[%s12884_s22 + $0xcf0] sm:$0xff]  }
 0x1ce   : > { %10764 = vmatpush3.bf16.msra.mxu1 %v11911_v9  ;;  %v2173_v46 = vrot.slane %v2145_v38, %v12939_v42 }
 0x1cf   : > { %10765 = vmatprep.subr.bf16.mxu1 %v11914_v15  ;;  %v11952_v15 = vld [vmem:[%s12884_s22 + $0xb50] sm:$0xff]  }
 0x1d0   : > { %10744 = vmatpush3.bf16.msra.mxu0 %v11913_v14  ;;  %v2177_v52 = vcombine.high %v2173_v46, %v2173_v46  ;;  %v11951_v14 = vld [vmem:[%s12884_s22 + $0xb98] sm:$0xff]  }
 0x1d1   : > { %10745 = vmatprep.subr.bf16.mxu0 %v11916_v18  ;;  %v11955_v18 = vld [vmem:[%s12884_s22 + $0xb90] sm:$0xff]  }
 0x1d2   : > { %10766 = vmatpush3.bf16.msra.mxu1 %v11915_v17  ;;  %v11954_v17 = vld [vmem:[%s12884_s22 + $0xbd0] sm:$0xff]  }
 0x1d3   : > { %10767 = vmatprep.subr.bf16.mxu1 %v11918_v21  ;;  %v11957_v21 = vld [vmem:[%s12884_s22 + $0xb08] sm:$0xff]  }
 0x1d4   : > { %10746 = vmatpush3.bf16.msra.mxu0 %v11917_v19  ;;  %v11956_v19 = vld [vmem:[%s12884_s22 + $0xb48] sm:$0xff]  }
 0x1d5   : > { %10747 = vmatprep.subr.bf16.mxu0 %v11920_v22  ;;  %v11959_v22 = vld [vmem:[%s12884_s22 + $0xb88] sm:$0xff]  }
 0x1d6   : > { %10768 = vmatpush3.bf16.msra.mxu1 %v11919_v20  ;;  %v11958_v20 = vld [vmem:[%s12884_s22 + $0xbc8] sm:$0xff]  }
 0x1d7   : > { %10769 = vmatprep.subr.bf16.mxu1 %v11922_v24  ;;  %v11961_v24 = vld [vmem:[%s12884_s22 + $0xb00] sm:$0xff]  }
 0x1d8   : > { %10748 = vmatpush3.bf16.msra.mxu0 %v11921_v23  ;;  %v11960_v23 = vld [vmem:[%s12884_s22 + $0xb40] sm:$0xff]  }
 0x1d9   : > { %10749 = vmatprep.subr.bf16.mxu0 %v11924_v26  ;;  %v11964_v26 = vld [vmem:[%s12884_s22 + $0xb80] sm:$0xff]  }
 0x1da   : > { %10770 = vmatpush3.bf16.msra.mxu1 %v11923_v25  ;;  %v11962_v25 = vld [vmem:[%s12884_s22 + $0xbc0] sm:$0xff]  }
 0x1db   : > { %10771 = vmatprep.subr.bf16.mxu1 %v11926_v31  ;;  %v11968_v31 = vld [vmem:[%s12884_s22 + $0xcb8] sm:$0xff]  }
 0x1dc   : > { %10750 = vmatpush3.bf16.msra.mxu0 %v11925_v28  ;;  %v11965_v28 = vld [vmem:[%s12884_s22 + $0xc78] sm:$0xff]  }
 0x1dd   : > { %10751 = vmatprep.subr.bf16.mxu0 %v11928_v35  ;;  %v11970_v35 = vld [vmem:[%s12884_s22 + $0xc30] sm:$0xff]  }
 0x1de   : > { %10772 = vmatpush3.bf16.msra.mxu1 %v11927_v32  ;;  %v2175_v32 = vcombine.high %v2159_v27, %v2159_v27 }
 0x1df   : > { %10773 = vmatprep.subr.bf16.mxu1 %v11930_v39 }
 0x1e0   : > { %10752 = vmatpush3.bf16.msra.mxu0 %v11929_v36 }
 0x1e1   : > { %10781 = vmatprep.subr.bf16.mxu0 %v11932_v44 }
 0x1e2   : > { %10774 = vmatpush3.bf16.msra.mxu1 %v11931_v40  ;;  %v11973_v40 = vld [vmem:[%s12884_s22 + $0xc68] sm:$0xff]  }
 0x1e3   : > { %v10489_v53 = vpop.f32.mrf.mxu0  ;;  %8129 = vmatmul.mubr.bf16.vlgmr.msra.gmra.mxu0 %v2152_v43  ;;  %10803 = vmatprep.subr.bf16.mxu1 %v11934_v47  ;;  %v11974_v43 = vld [vmem:[%s12884_s22 + $0xc28] sm:$0xff]  }
 0x1e4   : > { %10782 = vmatpush3.bf16.msra.mxu0 %v11933_v45  ;;  %8208 = vmatprep.mubr.bf16.mxu0 %v2173_v46  ;;  %v11975_v46 = vld [vmem:[%s12884_s22 + $0xce8] sm:$0xff]  }
 0x1e5   : > { %v10490_v56 = vpop.f32.mrf.mxu0  ;;  %v10511_v57 = vpop.f32.mrf.mxu1  ;;  %8169 = vmatmul.mubr.bf16.vlgmr.msra.gmra.mxu1 %v2174_v49  ;;  %10783 = vmatprep.subr.bf16.mxu0 %v11936_v50  ;;  %v11976_v49 = vld [vmem:[%s12884_s22 + $0xca8] sm:$0xff]  }
 0x1e6   : > { %v10491_v60 = vadd.f32 %v10490_v56, %v10489_v53  ;;  %10804 = vmatpush3.bf16.msra.mxu1 %v11935_v48  ;;  %8248 = vmatprep.mubr.bf16.mxu1 %v2177_v52 }
 0x1e7   : > { %v10492_v59 = vpop.f32.mrf.mxu0  ;;  %v10512_v62 = vpop.f32.mrf.mxu1  ;;  %10805 = vmatprep.subr.bf16.mxu1 %v11938_v54  ;;  %v11978_v54 = vld [vmem:[%s12884_s22 + $0xc20] sm:$0xff]  }
 0x1e8   : > { %v7651_v0 = vadd.f32 %v10491_v60, %v13308_v13  ;;  %v10513_v1 = vadd.f32 %v10512_v62, %v10511_v57  ;;  %10784 = vmatpush3.bf16.msra.mxu0 %v11937_v51  ;;  %v11950_v13 = vld [vmem:[%s12884_s22 + $0xbd8] sm:$0xff]   ;;  %v11977_v51 = vld [vmem:[%s12884_s22 + $0xc60] sm:$0xff]   ;;  %v11985_v62 = vld [vmem:[%s12884_s22 + $0xc50] sm:$0xff]  }
 0x1e9   : > { %v10493_v3 = vpop.f32.mrf.mxu0  ;;  %10785 = vmatprep.subr.bf16.mxu0 %v11940_v58  ;;  %v10514_v5 = vpop.f32.mrf.mxu1  ;;  %v11980_v57 = vld [vmem:[%s12884_s22 + $0xca0] sm:$0xff]   ;;  %v11981_v58 = vld [vmem:[%s12884_s22 + $0xc58] sm:$0xff]  }
 0x1ea   : > { %v13353_v6 = vadd.f32 %v10513_v1, %v7651_v0  ;;  %10806 = vmatpush3.bf16.msra.mxu1 %v11939_v55  ;;  %v11979_v55 = vld [vmem:[%s12884_s22 + $0xce0] sm:$0xff]   ;;  %v11982_v60 = vld [vmem:[%s12884_s22 + $0xc18] sm:$0xff]   ;;  %v11987_v0 = vld [vmem:[%s12884_s22 + $0xcd0] sm:$0xff]  }
 0x1eb   : > { %10807 = vmatprep.subr.bf16.mxu1 %v11942_v63  ;;  %v10515_v9 = vpop.f32.mrf.mxu1  ;;  %v11984_v59 = vld [vmem:[%s12884_s22 + $0xc98] sm:$0xff]   ;;  %v11986_v63 = vld [vmem:[%s12884_s22 + $0xc10] sm:$0xff]   ;;  %v11990_v3 = vld [vmem:[%s12884_s22 + $0xc08] sm:$0xff]  }
 0x1ec   : > { %10786 = vmatpush3.bf16.msra.mxu0 %v11941_v61  ;;  %v11983_v61 = vld [vmem:[%s12884_s22 + $0xcd8] sm:$0xff]   ;;  %v11988_v1 = vld [vmem:[%s12884_s22 + $0xc90] sm:$0xff]   ;;  %v11991_v5 = vld [vmem:[%s12884_s22 + $0xcc8] sm:$0xff]  }
 0x1ed   : > { %10787 = vmatprep.subr.bf16.mxu0 %v11944_v4  ;;  %v296_v4 = vld [vmem:[%s12876_s24 + $0x30] sm:$0xff]  ;;  %v11993_v9 = vld [vmem:[%s12884_s22 + $0xc40] sm:$0xff]  }
 0x1ee   : > { %10808 = vmatpush3.bf16.msra.mxu1 %v11943_v2  ;;  %v11989_v2 = vld [vmem:[%s12884_s22 + $0xc48] sm:$0xff]  }
 0x1ef   : > { %10809 = vmatprep.subr.bf16.mxu1 %v11946_v8  ;;  %v11992_v8 = vld [vmem:[%s12884_s22 + $0xc88] sm:$0xff]  }
 0x1f0   : > { %10788 = vmatpush3.bf16.msra.mxu0 %v11945_v7  ;;  %v2178_v7 = vcombine.high %v296_v4, %v296_v4 }
 0x1f1   : > { %10789 = vmatprep.subr.bf16.mxu0 %v11948_v11 }
 0x1f2   : > { %10810 = vmatpush3.bf16.msra.mxu1 %v11947_v10  ;;  %v13411_v11 = vrot.slane %v2178_v7, %v12939_v42  ;;  %v12033_v7 = vld [vmem:[%s12884_s22 + $0xeb8] sm:$0xff]  }
 0x1f3   : > { %10811 = vmatprep.subr.bf16.mxu1 %v11950_v13  ;;  %v11995_v13 = vld [vmem:[%s12884_s22 + $0xcc0] sm:$0xff]  }
 0x1f4   : > { %10790 = vmatpush3.bf16.msra.mxu0 %v11949_v12  ;;  %v11994_v12 = vld [vmem:[%s12884_s22 + $0xc00] sm:$0xff]  }
 0x1f5   : > { %10791 = vmatprep.subr.bf16.mxu0 %v11952_v15  ;;  %v2194_v15 = vcombine.high %v13411_v11, %v13411_v11 }
 0x1f6   : > { %10812 = vmatpush3.bf16.msra.mxu1 %v11951_v14 }
 0x1f7   : > { %10813 = vmatprep.subr.bf16.mxu1 %v11954_v17 }
 0x1f8   : > { %10792 = vmatpush3.bf16.msra.mxu0 %v11953_v16  ;;  %v11996_v16 = vld [vmem:[%s12884_s22 + $0xc80] sm:$0xff]  }
 0x1f9   : > { %10793 = vmatprep.subr.bf16.mxu0 %v11956_v19 }
 0x1fa   : > { %10814 = vmatpush3.bf16.msra.mxu1 %v11955_v18  ;;  %v11997_v18 = vld [vmem:[%s12884_s22 + $0xd78] sm:$0xff]  }
 0x1fb   : > { %10815 = vmatprep.subr.bf16.mxu1 %v11958_v20  ;;  %v2222_v20 = vrot.slane %v2194_v15, %v12939_v42 }
 0x1fc   : > { %10794 = vmatpush3.bf16.msra.mxu0 %v11957_v21  ;;  %v11998_v21 = vld [vmem:[%s12884_s22 + $0xd38] sm:$0xff]  }
 0x1fd   : > { %10795 = vmatprep.subr.bf16.mxu0 %v11960_v23  ;;  %v12000_v23 = vld [vmem:[%s12884_s22 + $0xdb8] sm:$0xff]  }
 0x1fe   : > { %10816 = vmatpush3.bf16.msra.mxu1 %v11959_v22  ;;  %v11999_v22 = vld [vmem:[%s12884_s22 + $0xdf8] sm:$0xff]  }
 0x1ff   : > { %10817 = vmatprep.subr.bf16.mxu1 %v11962_v25  ;;  %v12001_v25 = vld [vmem:[%s12884_s22 + $0xd70] sm:$0xff]  }
 0x200   : > { %10796 = vmatpush3.bf16.msra.mxu0 %v11961_v24 }
 0x201   : > { %10825 = vmatprep.subr.bf16.mxu0 %v11965_v28 }
 0x202   : > { %10818 = vmatpush3.bf16.msra.mxu1 %v11964_v26  ;;  %v12002_v26 = vld [vmem:[%s12884_s22 + $0xd30] sm:$0xff]  }
 0x203   : > { %v10533_v36 = vpop.f32.mrf.mxu0  ;;  %8209 = vmatmul.mubr.bf16.vlgmr.msra.gmra.mxu0 %v2159_v27  ;;  %10847 = vmatprep.subr.bf16.mxu1 %v11967_v30  ;;  %v2226_v27 = vcombine.high %v2222_v20, %v2222_v20  ;;  %v12004_v30 = vld [vmem:[%s12884_s22 + $0xdb0] sm:$0xff]  }
 0x204   : > { %10826 = vmatpush3.bf16.msra.mxu0 %v11966_v29  ;;  %v12003_v29 = vld [vmem:[%s12884_s22 + $0xdf0] sm:$0xff]  }
 0x205   : > { %v10534_v38 = vpop.f32.mrf.mxu0  ;;  %v10555_v39 = vpop.f32.mrf.mxu1  ;;  %8249 = vmatmul.mubr.bf16.vlgmr.msra.gmra.mxu1 %v2175_v32  ;;  %10827 = vmatprep.subr.bf16.mxu0 %v11969_v33  ;;  %v12005_v33 = vld [vmem:[%s12884_s22 + $0xd68] sm:$0xff]  }
 0x206   : > { %v10535_v41 = vadd.f32 %v10534_v38, %v10533_v36  ;;  %10848 = vmatpush3.bf16.msra.mxu1 %v11968_v31  ;;  %v12006_v36 = vld [vmem:[%s12884_s22 + $0xd28] sm:$0xff]  }
 0x207   : > { %v10536_v44 = vpop.f32.mrf.mxu0  ;;  %v10556_v45 = vpop.f32.mrf.mxu1  ;;  %10849 = vmatprep.subr.bf16.mxu1 %v11971_v34  ;;  %v12007_v38 = vld [vmem:[%s12884_s22 + $0xde8] sm:$0xff]  }
 0x208   : > { %v7731_v47 = vadd.f32 %v10535_v41, %v13353_v6  ;;  %v10557_v48 = vadd.f32 %v10556_v45, %v10555_v39  ;;  %10828 = vmatpush3.bf16.msra.mxu0 %v11970_v35  ;;  %v2185_v6 = vrot.slane %v296_v4, %v12939_v42  ;;  %v12008_v41 = vld [vmem:[%s12884_s22 + $0xda8] sm:$0xff]   ;;  %v12009_v44 = vld [vmem:[%s12884_s22 + $0xd60] sm:$0xff]   ;;  %v12030_v4 = vld [vmem:[%s12884_s22 + $0xe78] sm:$0xff]  }
 0x209   : > { %v10537_v50 = vpop.f32.mrf.mxu0  ;;  %10829 = vmatprep.subr.bf16.mxu0 %v11973_v40  ;;  %v10558_v52 = vpop.f32.mrf.mxu1 }
 0x20a   : > { %v13390_v53 = vadd.f32 %v10557_v48, %v7731_v47  ;;  %10850 = vmatpush3.bf16.msra.mxu1 %v11972_v37  ;;  %v2193_v10 = vcombine.high %v2185_v6, %v2185_v6  ;;  %v2201_v17 = vrot.slane %v2185_v6, %v12939_v42  ;;  %v12010_v47 = vld [vmem:[%s12884_s22 + $0xd20] sm:$0xff]   ;;  %v12014_v52 = vld [vmem:[%s12884_s22 + $0xd18] sm:$0xff]  }
 0x20b   : > { %10851 = vmatprep.subr.bf16.mxu1 %v11975_v46  ;;  %v10559_v56 = vpop.f32.mrf.mxu1  ;;  %v12011_v48 = vld [vmem:[%s12884_s22 + $0xde0] sm:$0xff]   ;;  %v12032_v6 = vld [vmem:[%s12884_s22 + $0xef8] sm:$0xff]  }
 0x20c   : > { %10830 = vmatpush3.bf16.msra.mxu0 %v11974_v43  ;;  %v2215_v14 = vrot.slane %v2193_v10, %v12939_v42  ;;  %v2223_v24 = vcombine.high %v2201_v17, %v2201_v17  ;;  %v12012_v50 = vld [vmem:[%s12884_s22 + $0xda0] sm:$0xff]   ;;  %v12018_v56 = vld [vmem:[%s12884_s22 + $0xd10] sm:$0xff]  }
 0x20d   : > { %10831 = vmatprep.subr.bf16.mxu0 %v11977_v51  ;;  %v12013_v51 = vld [vmem:[%s12884_s22 + $0xd58] sm:$0xff]   ;;  %v12035_v10 = vld [vmem:[%s12884_s22 + $0xe30] sm:$0xff]  }
 0x20e   : > { %10852 = vmatpush3.bf16.msra.mxu1 %v11976_v49  ;;  %8288 = vmatprep.mubr.bf16.mxu0 %v2215_v14  ;;  %v2225_v19 = vcombine.high %v2215_v14, %v2215_v14 }
 0x20f   : > { %10853 = vmatprep.subr.bf16.mxu1 %v11979_v55  ;;  %v12017_v55 = vld [vmem:[%s12884_s22 + $0xd50] sm:$0xff]  }
 0x210   : > { %10832 = vmatpush3.bf16.msra.mxu0 %v11978_v54  ;;  %8328 = vmatprep.mubr.bf16.mxu1 %v2225_v19  ;;  %v12016_v54 = vld [vmem:[%s12884_s22 + $0xd98] sm:$0xff]  }
 0x211   : > { %10833 = vmatprep.subr.bf16.mxu0 %v11981_v58  ;;  %v12020_v58 = vld [vmem:[%s12884_s22 + $0xd90] sm:$0xff]  }
 0x212   : > { %10854 = vmatpush3.bf16.msra.mxu1 %v11980_v57  ;;  %v12019_v57 = vld [vmem:[%s12884_s22 + $0xdd0] sm:$0xff]  }
 0x213   : > { %10855 = vmatprep.subr.bf16.mxu1 %v11983_v61  ;;  %v12022_v61 = vld [vmem:[%s12884_s22 + $0xd08] sm:$0xff]  }
 0x214   : > { %10834 = vmatpush3.bf16.msra.mxu0 %v11982_v60  ;;  %v12021_v60 = vld [vmem:[%s12884_s22 + $0xd48] sm:$0xff]  }
 0x215   : > { %10835 = vmatprep.subr.bf16.mxu0 %v11985_v62  ;;  %v12024_v62 = vld [vmem:[%s12884_s22 + $0xd88] sm:$0xff]  }
 0x216   : > { %10856 = vmatpush3.bf16.msra.mxu1 %v11984_v59  ;;  %v12023_v59 = vld [vmem:[%s12884_s22 + $0xdc8] sm:$0xff]  }
 0x217   : > { %10857 = vmatprep.subr.bf16.mxu1 %v11987_v0  ;;  %v12026_v0 = vld [vmem:[%s12884_s22 + $0xd00] sm:$0xff]  }
 0x218   : > { %10836 = vmatpush3.bf16.msra.mxu0 %v11986_v63  ;;  %v12025_v63 = vld [vmem:[%s12884_s22 + $0xd40] sm:$0xff]  }
 0x219   : > { %10837 = vmatprep.subr.bf16.mxu0 %v11989_v2  ;;  %v12029_v2 = vld [vmem:[%s12884_s22 + $0xd80] sm:$0xff]  }
 0x21a   : > { %10858 = vmatpush3.bf16.msra.mxu1 %v11988_v1  ;;  %v12027_v1 = vld [vmem:[%s12884_s22 + $0xdc0] sm:$0xff]  }
 0x21b   : > { %10859 = vmatprep.subr.bf16.mxu1 %v11991_v5  ;;  %v12031_v5 = vld [vmem:[%s12884_s22 + $0xe38] sm:$0xff]  }
 0x21c   : > { %10838 = vmatpush3.bf16.msra.mxu0 %v11990_v3  ;;  %v2208_v3 = vrot.slane %v13411_v11, %v12939_v42  ;;  %v12036_v11 = vld [vmem:[%s12884_s22 + $0xef0] sm:$0xff]  }
 0x21d   : > { %10839 = vmatprep.subr.bf16.mxu0 %v11993_v9  ;;  %v12034_v9 = vld [vmem:[%s12884_s22 + $0xe70] sm:$0xff]  }
 0x21e   : > { %10860 = vmatpush3.bf16.msra.mxu1 %v11992_v8  ;;  %v2224_v8 = vcombine.high %v2208_v3, %v2208_v3 }
 0x21f   : > { %10861 = vmatprep.subr.bf16.mxu1 %v11995_v13  ;;  %v12037_v13 = vld [vmem:[%s12884_s22 + $0xeb0] sm:$0xff]  }
 0x220   : > { %10840 = vmatpush3.bf16.msra.mxu0 %v11994_v12 }
 0x221   : > { %10869 = vmatprep.subr.bf16.mxu0 %v11997_v18  ;;  %v12039_v18 = vld [vmem:[%s12884_s22 + $0xe28] sm:$0xff]  }
 0x222   : > { %10862 = vmatpush3.bf16.msra.mxu1 %v11996_v16  ;;  %v12038_v16 = vld [vmem:[%s12884_s22 + $0xe68] sm:$0xff]  }
 0x223   : > { %v10577_v28 = vpop.f32.mrf.mxu0  ;;  %8289 = vmatmul.mubr.bf16.vlgmr.msra.gmra.mxu0 %v2201_v17  ;;  %10891 = vmatprep.subr.bf16.mxu1 %v11999_v22 }
 0x224   : > { %10870 = vmatpush3.bf16.msra.mxu0 %v11998_v21  ;;  %8368 = vmatprep.mubr.bf16.mxu0 %v2222_v20  ;;  %v12040_v20 = vld [vmem:[%s12884_s22 + $0xee8] sm:$0xff]  }
 0x225   : > { %v10578_v31 = vpop.f32.mrf.mxu0  ;;  %v10599_v32 = vpop.f32.mrf.mxu1  ;;  %8329 = vmatmul.mubr.bf16.vlgmr.msra.gmra.mxu1 %v2223_v24  ;;  %10871 = vmatprep.subr.bf16.mxu0 %v12001_v25  ;;  %v12041_v24 = vld [vmem:[%s12884_s22 + $0xea8] sm:$0xff]  }
 0x226   : > { %v10579_v35 = vadd.f32 %v10578_v31, %v10577_v28  ;;  %10892 = vmatpush3.bf16.msra.mxu1 %v12000_v23  ;;  %8408 = vmatprep.mubr.bf16.mxu1 %v2226_v27 }
 0x227   : > { %v10580_v34 = vpop.f32.mrf.mxu0  ;;  %v10600_v37 = vpop.f32.mrf.mxu1  ;;  %10893 = vmatprep.subr.bf16.mxu1 %v12003_v29  ;;  %v12043_v29 = vld [vmem:[%s12884_s22 + $0xe20] sm:$0xff]  }
 0x228   : > { %v7811_v39 = vadd.f32 %v10579_v35, %v13390_v53  ;;  %v10601_v40 = vadd.f32 %v10600_v37, %v10599_v32  ;;  %10872 = vmatpush3.bf16.msra.mxu0 %v12002_v26  ;;  %v12015_v53 = vld [vmem:[%s12884_s22 + $0xdd8] sm:$0xff]   ;;  %v12042_v26 = vld [vmem:[%s12884_s22 + $0xe60] sm:$0xff]   ;;  %v12050_v37 = vld [vmem:[%s12884_s22 + $0xe50] sm:$0xff]  }
 0x229   : > { %v10581_v43 = vpop.f32.mrf.mxu0  ;;  %10873 = vmatprep.subr.bf16.mxu0 %v12005_v33  ;;  %v10602_v45 = vpop.f32.mrf.mxu1  ;;  %v12045_v32 = vld [vmem:[%s12884_s22 + $0xea0] sm:$0xff]   ;;  %v12046_v33 = vld [vmem:[%s12884_s22 + $0xe58] sm:$0xff]  }
 0x22a   : > { %v13435_v46 = vadd.f32 %v10601_v40, %v7811_v39  ;;  %10894 = vmatpush3.bf16.msra.mxu1 %v12004_v30  ;;  %v12044_v30 = vld [vmem:[%s12884_s22 + $0xee0] sm:$0xff]   ;;  %v12047_v35 = vld [vmem:[%s12884_s22 + $0xe18] sm:$0xff]   ;;  %v12052_v39 = vld [vmem:[%s12884_s22 + $0xed0] sm:$0xff]  }
 0x22b   : > { %10895 = vmatprep.subr.bf16.mxu1 %v12007_v38  ;;  %v10603_v49 = vpop.f32.mrf.mxu1  ;;  %v12049_v34 = vld [vmem:[%s12884_s22 + $0xe98] sm:$0xff]   ;;  %v12051_v38 = vld [vmem:[%s12884_s22 + $0xe10] sm:$0xff]   ;;  %v12055_v43 = vld [vmem:[%s12884_s22 + $0xe08] sm:$0xff]  }
 0x22c   : > { %10874 = vmatpush3.bf16.msra.mxu0 %v12006_v36  ;;  %v12048_v36 = vld [vmem:[%s12884_s22 + $0xed8] sm:$0xff]   ;;  %v12053_v40 = vld [vmem:[%s12884_s22 + $0xe90] sm:$0xff]   ;;  %v12056_v45 = vld [vmem:[%s12884_s22 + $0xec8] sm:$0xff]  }
 0x22d   : > { %10875 = vmatprep.subr.bf16.mxu0 %v12009_v44  ;;  %v297_v44 = vld [vmem:[%s12876_s24 + $0x38] sm:$0xff]  ;;  %v12058_v49 = vld [vmem:[%s12884_s22 + $0xe40] sm:$0xff]  }
 0x22e   : > { %10896 = vmatpush3.bf16.msra.mxu1 %v12008_v41  ;;  %v12054_v41 = vld [vmem:[%s12884_s22 + $0xe48] sm:$0xff]  }
 0x22f   : > { %10897 = vmatprep.subr.bf16.mxu1 %v12011_v48  ;;  %v12057_v48 = vld [vmem:[%s12884_s22 + $0xe88] sm:$0xff]  }
 0x230   : > { %10876 = vmatpush3.bf16.msra.mxu0 %v12010_v47  ;;  %v2227_v47 = vcombine.high %v297_v44, %v297_v44 }
 0x231   : > { %10877 = vmatprep.subr.bf16.mxu0 %v12013_v51 }
 0x232   : > { %10898 = vmatpush3.bf16.msra.mxu1 %v12012_v50  ;;  %v13493_v51 = vrot.slane %v2227_v47, %v12939_v42  ;;  %v12098_v47 = vld [vmem:[%s12884_s22 + $0x10b8] sm:$0xff]  }
 0x233   : > { %10899 = vmatprep.subr.bf16.mxu1 %v12015_v53  ;;  %v12060_v53 = vld [vmem:[%s12884_s22 + $0xec0] sm:$0xff]  }
 0x234   : > { %10878 = vmatpush3.bf16.msra.mxu0 %v12014_v52  ;;  %v12059_v52 = vld [vmem:[%s12884_s22 + $0xe00] sm:$0xff]  }
 0x235   : > { %10879 = vmatprep.subr.bf16.mxu0 %v12017_v55  ;;  %v2243_v55 = vcombine.high %v13493_v51, %v13493_v51 }
 0x236   : > { %10900 = vmatpush3.bf16.msra.mxu1 %v12016_v54 }
 0x237   : > { %10901 = vmatprep.subr.bf16.mxu1 %v12019_v57 }
 0x238   : > { %10880 = vmatpush3.bf16.msra.mxu0 %v12018_v56  ;;  %v12061_v56 = vld [vmem:[%s12884_s22 + $0xe80] sm:$0xff]  }
 0x239   : > { %10881 = vmatprep.subr.bf16.mxu0 %v12021_v60 }
 0x23a   : > { %10902 = vmatpush3.bf16.msra.mxu1 %v12020_v58  ;;  %v12062_v58 = vld [vmem:[%s12884_s22 + $0xf78] sm:$0xff]  }
 0x23b   : > { %10903 = vmatprep.subr.bf16.mxu1 %v12023_v59  ;;  %v2271_v59 = vrot.slane %v2243_v55, %v12939_v42 }
 0x23c   : > { %10882 = vmatpush3.bf16.msra.mxu0 %v12022_v61  ;;  %v12063_v61 = vld [vmem:[%s12884_s22 + $0xf38] sm:$0xff]  }
 0x23d   : > { %10883 = vmatprep.subr.bf16.mxu0 %v12025_v63  ;;  %v12065_v63 = vld [vmem:[%s12884_s22 + $0xfb8] sm:$0xff]  }
 0x23e   : > { %10904 = vmatpush3.bf16.msra.mxu1 %v12024_v62  ;;  %v12064_v62 = vld [vmem:[%s12884_s22 + $0xff8] sm:$0xff]  }
 0x23f   : > { %10905 = vmatprep.subr.bf16.mxu1 %v12027_v1  ;;  %v12066_v1 = vld [vmem:[%s12884_s22 + $0xf70] sm:$0xff]  }
 0x240   : > { %10884 = vmatpush3.bf16.msra.mxu0 %v12026_v0 }
 0x241   : > { %10913 = vmatprep.subr.bf16.mxu0 %v12030_v4 }
 0x242   : > { %10906 = vmatpush3.bf16.msra.mxu1 %v12029_v2  ;;  %v12067_v2 = vld [vmem:[%s12884_s22 + $0xf30] sm:$0xff]  }
 0x243   : > { %v10621_v12 = vpop.f32.mrf.mxu0  ;;  %8369 = vmatmul.mubr.bf16.vlgmr.msra.gmra.mxu0 %v2208_v3  ;;  %10935 = vmatprep.subr.bf16.mxu1 %v12032_v6  ;;  %v2275_v3 = vcombine.high %v2271_v59, %v2271_v59  ;;  %v12069_v6 = vld [vmem:[%s12884_s22 + $0xfb0] sm:$0xff]  }
 0x244   : > { %10914 = vmatpush3.bf16.msra.mxu0 %v12031_v5  ;;  %v12068_v5 = vld [vmem:[%s12884_s22 + $0xff0] sm:$0xff]  }
 0x245   : > { %v10622_v14 = vpop.f32.mrf.mxu0  ;;  %v10643_v15 = vpop.f32.mrf.mxu1  ;;  %8409 = vmatmul.mubr.bf16.vlgmr.msra.gmra.mxu1 %v2224_v8  ;;  %10915 = vmatprep.subr.bf16.mxu0 %v12034_v9  ;;  %v12070_v9 = vld [vmem:[%s12884_s22 + $0xf68] sm:$0xff]  }
 0x246   : > { %v10623_v17 = vadd.f32 %v10622_v14, %v10621_v12  ;;  %10936 = vmatpush3.bf16.msra.mxu1 %v12033_v7  ;;  %v12071_v12 = vld [vmem:[%s12884_s22 + $0xf28] sm:$0xff]  }
 0x247   : > { %v10624_v19 = vpop.f32.mrf.mxu0  ;;  %v10644_v21 = vpop.f32.mrf.mxu1  ;;  %10937 = vmatprep.subr.bf16.mxu1 %v12036_v11  ;;  %v12072_v14 = vld [vmem:[%s12884_s22 + $0xfe8] sm:$0xff]  }
 0x248   : > { %v7891_v22 = vadd.f32 %v10623_v17, %v13435_v46  ;;  %v10645_v23 = vadd.f32 %v10644_v21, %v10643_v15  ;;  %10916 = vmatpush3.bf16.msra.mxu0 %v12035_v10  ;;  %v2234_v46 = vrot.slane %v297_v44, %v12939_v42  ;;  %v12073_v17 = vld [vmem:[%s12884_s22 + $0xfa8] sm:$0xff]   ;;  %v12074_v19 = vld [vmem:[%s12884_s22 + $0xf60] sm:$0xff]   ;;  %v12095_v44 = vld [vmem:[%s12884_s22 + $0x1078] sm:$0xff]  }
 0x249   : > { %v10625_v25 = vpop.f32.mrf.mxu0  ;;  %10917 = vmatprep.subr.bf16.mxu0 %v12038_v16  ;;  %v10646_v27 = vpop.f32.mrf.mxu1 }
 0x24a   : > { %v13472_v28 = vadd.f32 %v10645_v23, %v7891_v22  ;;  %10938 = vmatpush3.bf16.msra.mxu1 %v12037_v13  ;;  %v2242_v50 = vcombine.high %v2234_v46, %v2234_v46  ;;  %v2250_v57 = vrot.slane %v2234_v46, %v12939_v42  ;;  %v12075_v22 = vld [vmem:[%s12884_s22 + $0xf20] sm:$0xff]   ;;  %v12079_v27 = vld [vmem:[%s12884_s22 + $0xf18] sm:$0xff]  }
 0x24b   : > { %10939 = vmatprep.subr.bf16.mxu1 %v12040_v20  ;;  %v10647_v31 = vpop.f32.mrf.mxu1  ;;  %v12076_v23 = vld [vmem:[%s12884_s22 + $0xfe0] sm:$0xff]   ;;  %v12097_v46 = vld [vmem:[%s12884_s22 + $0x10f8] sm:$0xff]  }
 0x24c   : > { %10918 = vmatpush3.bf16.msra.mxu0 %v12039_v18  ;;  %v2264_v54 = vrot.slane %v2242_v50, %v12939_v42  ;;  %v2272_v0 = vcombine.high %v2250_v57, %v2250_v57  ;;  %v12077_v25 = vld [vmem:[%s12884_s22 + $0xfa0] sm:$0xff]   ;;  %v12083_v31 = vld [vmem:[%s12884_s22 + $0xf10] sm:$0xff]  }
 0x24d   : > { %10919 = vmatprep.subr.bf16.mxu0 %v12042_v26  ;;  %v12078_v26 = vld [vmem:[%s12884_s22 + $0xf58] sm:$0xff]   ;;  %v12100_v50 = vld [vmem:[%s12884_s22 + $0x1030] sm:$0xff]  }
 0x24e   : > { %10940 = vmatpush3.bf16.msra.mxu1 %v12041_v24  ;;  %8448 = vmatprep.mubr.bf16.mxu0 %v2264_v54  ;;  %v2274_v60 = vcombine.high %v2264_v54, %v2264_v54 }
 0x24f   : > { %10941 = vmatprep.subr.bf16.mxu1 %v12044_v30  ;;  %v12082_v30 = vld [vmem:[%s12884_s22 + $0xf50] sm:$0xff]  }
 0x250   : > { %10920 = vmatpush3.bf16.msra.mxu0 %v12043_v29  ;;  %8488 = vmatprep.mubr.bf16.mxu1 %v2274_v60  ;;  %v12081_v29 = vld [vmem:[%s12884_s22 + $0xf98] sm:$0xff]  }
 0x251   : > { %10921 = vmatprep.subr.bf16.mxu0 %v12046_v33  ;;  %v12085_v33 = vld [vmem:[%s12884_s22 + $0xf90] sm:$0xff]  }
 0x252   : > { %10942 = vmatpush3.bf16.msra.mxu1 %v12045_v32  ;;  %v12084_v32 = vld [vmem:[%s12884_s22 + $0xfd0] sm:$0xff]  }
 0x253   : > { %10943 = vmatprep.subr.bf16.mxu1 %v12048_v36  ;;  %v12087_v36 = vld [vmem:[%s12884_s22 + $0xf08] sm:$0xff]  }
 0x254   : > { %10922 = vmatpush3.bf16.msra.mxu0 %v12047_v35  ;;  %v12086_v35 = vld [vmem:[%s12884_s22 + $0xf48] sm:$0xff]  }
 0x255   : > { %10923 = vmatprep.subr.bf16.mxu0 %v12050_v37  ;;  %v12089_v37 = vld [vmem:[%s12884_s22 + $0xf88] sm:$0xff]  }
 0x256   : > { %10944 = vmatpush3.bf16.msra.mxu1 %v12049_v34  ;;  %v12088_v34 = vld [vmem:[%s12884_s22 + $0xfc8] sm:$0xff]  }
 0x257   : > { %10945 = vmatprep.subr.bf16.mxu1 %v12052_v39  ;;  %v12091_v39 = vld [vmem:[%s12884_s22 + $0xf00] sm:$0xff]  }
 0x258   : > { %10924 = vmatpush3.bf16.msra.mxu0 %v12051_v38  ;;  %v12090_v38 = vld [vmem:[%s12884_s22 + $0xf40] sm:$0xff]  }
 0x259   : > { %10925 = vmatprep.subr.bf16.mxu0 %v12054_v41  ;;  %v12094_v41 = vld [vmem:[%s12884_s22 + $0xf80] sm:$0xff]  }
 0x25a   : > { %10946 = vmatpush3.bf16.msra.mxu1 %v12053_v40  ;;  %v12092_v40 = vld [vmem:[%s12884_s22 + $0xfc0] sm:$0xff]  }
 0x25b   : > { %10947 = vmatprep.subr.bf16.mxu1 %v12056_v45  ;;  %v12096_v45 = vld [vmem:[%s12884_s22 + $0x1038] sm:$0xff]  }
 0x25c   : > { %10926 = vmatpush3.bf16.msra.mxu0 %v12055_v43  ;;  %v2257_v43 = vrot.slane %v13493_v51, %v12939_v42  ;;  %v12101_v51 = vld [vmem:[%s12884_s22 + $0x10f0] sm:$0xff]  }
 0x25d   : > { %10927 = vmatprep.subr.bf16.mxu0 %v12058_v49  ;;  %v12099_v49 = vld [vmem:[%s12884_s22 + $0x1070] sm:$0xff]  }
 0x25e   : > { %10948 = vmatpush3.bf16.msra.mxu1 %v12057_v48  ;;  %v2273_v48 = vcombine.high %v2257_v43, %v2257_v43 }
 0x25f   : > { %10949 = vmatprep.subr.bf16.mxu1 %v12060_v53  ;;  %v12102_v53 = vld [vmem:[%s12884_s22 + $0x10b0] sm:$0xff]  }
 0x260   : > { %10928 = vmatpush3.bf16.msra.mxu0 %v12059_v52 }
 0x261   : > { %10957 = vmatprep.subr.bf16.mxu0 %v12062_v58  ;;  %v12104_v58 = vld [vmem:[%s12884_s22 + $0x1028] sm:$0xff]  }
 0x262   : > { %10950 = vmatpush3.bf16.msra.mxu1 %v12061_v56  ;;  %v12103_v56 = vld [vmem:[%s12884_s22 + $0x1068] sm:$0xff]  }
 0x263   : > { %v10665_v4 = vpop.f32.mrf.mxu0  ;;  %8449 = vmatmul.mubr.bf16.vlgmr.msra.gmra.mxu0 %v2250_v57  ;;  %10979 = vmatprep.subr.bf16.mxu1 %v12064_v62 }
 0x264   : > { %10958 = vmatpush3.bf16.msra.mxu0 %v12063_v61  ;;  %8528 = vmatprep.mubr.bf16.mxu0 %v2271_v59  ;;  %v12105_v59 = vld [vmem:[%s12884_s22 + $0x10e8] sm:$0xff]  }
 0x265   : > { %v10666_v7 = vpop.f32.mrf.mxu0  ;;  %v10687_v8 = vpop.f32.mrf.mxu1  ;;  %8489 = vmatmul.mubr.bf16.vlgmr.msra.gmra.mxu1 %v2272_v0  ;;  %10959 = vmatprep.subr.bf16.mxu0 %v12066_v1  ;;  %v12106_v0 = vld [vmem:[%s12884_s22 + $0x10a8] sm:$0xff]  }
 0x266   : > { %v10667_v10 = vadd.f32 %v10666_v7, %v10665_v4  ;;  %10980 = vmatpush3.bf16.msra.mxu1 %v12065_v63  ;;  %8568 = vmatprep.mubr.bf16.mxu1 %v2275_v3 }
 0x267   : > { %v10668_v11 = vpop.f32.mrf.mxu0  ;;  %v10688_v13 = vpop.f32.mrf.mxu1  ;;  %10981 = vmatprep.subr.bf16.mxu1 %v12068_v5  ;;  %v12108_v5 = vld [vmem:[%s12884_s22 + $0x1020] sm:$0xff]  }
 0x268   : > { %v7971_v15 = vadd.f32 %v10667_v10, %v13472_v28  ;;  %v10689_v16 = vadd.f32 %v10688_v13, %v10687_v8  ;;  %10960 = vmatpush3.bf16.msra.mxu0 %v12067_v2  ;;  %v12080_v28 = vld [vmem:[%s12884_s22 + $0xfd8] sm:$0xff]   ;;  %v12107_v2 = vld [vmem:[%s12884_s22 + $0x1060] sm:$0xff]   ;;  %v12115_v13 = vld [vmem:[%s12884_s22 + $0x1050] sm:$0xff]  }
 0x269   : > { %v10669_v18 = vpop.f32.mrf.mxu0  ;;  %10961 = vmatprep.subr.bf16.mxu0 %v12070_v9  ;;  %v10690_v21 = vpop.f32.mrf.mxu1  ;;  %v12110_v8 = vld [vmem:[%s12884_s22 + $0x10a0] sm:$0xff]   ;;  %v12111_v9 = vld [vmem:[%s12884_s22 + $0x1058] sm:$0xff]  }
 0x26a   : > { %v13517_v20 = vadd.f32 %v10689_v16, %v7971_v15  ;;  %10982 = vmatpush3.bf16.msra.mxu1 %v12069_v6  ;;  %v12109_v6 = vld [vmem:[%s12884_s22 + $0x10e0] sm:$0xff]   ;;  %v12112_v10 = vld [vmem:[%s12884_s22 + $0x1018] sm:$0xff]   ;;  %v12117_v15 = vld [vmem:[%s12884_s22 + $0x10d0] sm:$0xff]  }
 0x26b   : > { %10983 = vmatprep.subr.bf16.mxu1 %v12072_v14  ;;  %v10691_v24 = vpop.f32.mrf.mxu1  ;;  %v12114_v11 = vld [vmem:[%s12884_s22 + $0x1098] sm:$0xff]   ;;  %v12116_v14 = vld [vmem:[%s12884_s22 + $0x1010] sm:$0xff]   ;;  %v12120_v18 = vld [vmem:[%s12884_s22 + $0x1008] sm:$0xff]  }
 0x26c   : > { %10962 = vmatpush3.bf16.msra.mxu0 %v12071_v12  ;;  %v12113_v12 = vld [vmem:[%s12884_s22 + $0x10d8] sm:$0xff]   ;;  %v12118_v16 = vld [vmem:[%s12884_s22 + $0x1090] sm:$0xff]   ;;  %v12121_v21 = vld [vmem:[%s12884_s22 + $0x10c8] sm:$0xff]  }
 0x26d   : > { %10963 = vmatprep.subr.bf16.mxu0 %v12074_v19  ;;  %v298_v19 = vld [vmem:[%s12876_s24 + $0x40] sm:$0xff] }
 0x26e   : > { %10984 = vmatpush3.bf16.msra.mxu1 %v12073_v17  ;;  %v12119_v17 = vld [vmem:[%s12884_s22 + $0x1048] sm:$0xff]   ;;  %v12123_v24 = vld [vmem:[%s12884_s22 + $0x1040] sm:$0xff]  }
 0x26f   : > { %10985 = vmatprep.subr.bf16.mxu1 %v12076_v23  ;;  %v12122_v23 = vld [vmem:[%s12884_s22 + $0x1088] sm:$0xff]  }
 0x270   : > { %10964 = vmatpush3.bf16.msra.mxu0 %v12075_v22  ;;  %v2276_v22 = vcombine.high %v298_v19, %v298_v19 }
 0x271   : > { %10965 = vmatprep.subr.bf16.mxu0 %v12078_v26 }
 0x272   : > { %10986 = vmatpush3.bf16.msra.mxu1 %v12077_v25  ;;  %v13575_v26 = vrot.slane %v2276_v22, %v12939_v42  ;;  %v12163_v22 = vld [vmem:[%s12884_s22 + $0x12b8] sm:$0xff]  }
 0x273   : > { %10987 = vmatprep.subr.bf16.mxu1 %v12080_v28  ;;  %v12125_v28 = vld [vmem:[%s12884_s22 + $0x10c0] sm:$0xff]  }
 0x274   : > { %10966 = vmatpush3.bf16.msra.mxu0 %v12079_v27  ;;  %v12124_v27 = vld [vmem:[%s12884_s22 + $0x1000] sm:$0xff]  }
 0x275   : > { %10967 = vmatprep.subr.bf16.mxu0 %v12082_v30  ;;  %v2292_v30 = vcombine.high %v13575_v26, %v13575_v26 }
 0x276   : > { %10988 = vmatpush3.bf16.msra.mxu1 %v12081_v29 }
 0x277   : > { %10989 = vmatprep.subr.bf16.mxu1 %v12084_v32 }
 0x278   : > { %10968 = vmatpush3.bf16.msra.mxu0 %v12083_v31  ;;  %v12126_v31 = vld [vmem:[%s12884_s22 + $0x1080] sm:$0xff]  }
 0x279   : > { %10969 = vmatprep.subr.bf16.mxu0 %v12086_v35 }
 0x27a   : > { %10990 = vmatpush3.bf16.msra.mxu1 %v12085_v33  ;;  %v12127_v33 = vld [vmem:[%s12884_s22 + $0x1178] sm:$0xff]  }
 0x27b   : > { %10991 = vmatprep.subr.bf16.mxu1 %v12088_v34  ;;  %v2320_v34 = vrot.slane %v2292_v30, %v12939_v42 }
 0x27c   : > { %10970 = vmatpush3.bf16.msra.mxu0 %v12087_v36  ;;  %v12128_v36 = vld [vmem:[%s12884_s22 + $0x1138] sm:$0xff]  }
 0x27d   : > { %10971 = vmatprep.subr.bf16.mxu0 %v12090_v38  ;;  %v12130_v38 = vld [vmem:[%s12884_s22 + $0x11b8] sm:$0xff]  }
 0x27e   : > { %10992 = vmatpush3.bf16.msra.mxu1 %v12089_v37  ;;  %v12129_v37 = vld [vmem:[%s12884_s22 + $0x11f8] sm:$0xff]  }
 0x27f   : > { %10993 = vmatprep.subr.bf16.mxu1 %v12092_v40  ;;  %v12131_v40 = vld [vmem:[%s12884_s22 + $0x1170] sm:$0xff]  }
 0x280   : > { %10972 = vmatpush3.bf16.msra.mxu0 %v12091_v39 }
 0x281   : > { %11001 = vmatprep.subr.bf16.mxu0 %v12095_v44 }
 0x282   : > { %10994 = vmatpush3.bf16.msra.mxu1 %v12094_v41  ;;  %v12132_v41 = vld [vmem:[%s12884_s22 + $0x1130] sm:$0xff]  }
 0x283   : > { %v10709_v52 = vpop.f32.mrf.mxu0  ;;  %8529 = vmatmul.mubr.bf16.vlgmr.msra.gmra.mxu0 %v2257_v43  ;;  %11023 = vmatprep.subr.bf16.mxu1 %v12097_v46  ;;  %v2324_v43 = vcombine.high %v2320_v34, %v2320_v34  ;;  %v12134_v46 = vld [vmem:[%s12884_s22 + $0x11b0] sm:$0xff]  }
 0x284   : > { %11002 = vmatpush3.bf16.msra.mxu0 %v12096_v45  ;;  %v12133_v45 = vld [vmem:[%s12884_s22 + $0x11f0] sm:$0xff]  }
 0x285   : > { %v10710_v54 = vpop.f32.mrf.mxu0  ;;  %v10731_v55 = vpop.f32.mrf.mxu1  ;;  %8569 = vmatmul.mubr.bf16.vlgmr.msra.gmra.mxu1 %v2273_v48  ;;  %11003 = vmatprep.subr.bf16.mxu0 %v12099_v49  ;;  %v12135_v49 = vld [vmem:[%s12884_s22 + $0x1168] sm:$0xff]  }
 0x286   : > { %v10711_v57 = vadd.f32 %v10710_v54, %v10709_v52  ;;  %11024 = vmatpush3.bf16.msra.mxu1 %v12098_v47  ;;  %v12136_v52 = vld [vmem:[%s12884_s22 + $0x1128] sm:$0xff]  }
 0x287   : > { %v10712_v60 = vpop.f32.mrf.mxu0  ;;  %v10732_v61 = vpop.f32.mrf.mxu1  ;;  %11025 = vmatprep.subr.bf16.mxu1 %v12101_v51  ;;  %v12137_v54 = vld [vmem:[%s12884_s22 + $0x11e8] sm:$0xff]  }
 0x288   : > { %v8051_v62 = vadd.f32 %v10711_v57, %v13517_v20  ;;  %v10733_v63 = vadd.f32 %v10732_v61, %v10731_v55  ;;  %11004 = vmatpush3.bf16.msra.mxu0 %v12100_v50  ;;  %v2283_v20 = vrot.slane %v298_v19, %v12939_v42  ;;  %v12138_v57 = vld [vmem:[%s12884_s22 + $0x11a8] sm:$0xff]   ;;  %v12139_v60 = vld [vmem:[%s12884_s22 + $0x1160] sm:$0xff]   ;;  %v12160_v19 = vld [vmem:[%s12884_s22 + $0x1278] sm:$0xff]  }
 0x289   : > { %v10713_v1 = vpop.f32.mrf.mxu0  ;;  %11005 = vmatprep.subr.bf16.mxu0 %v12103_v56  ;;  %v10734_v3 = vpop.f32.mrf.mxu1 }
 0x28a   : > { %v13554_v4 = vadd.f32 %v10733_v63, %v8051_v62  ;;  %11026 = vmatpush3.bf16.msra.mxu1 %v12102_v53  ;;  %v2291_v25 = vcombine.high %v2283_v20, %v2283_v20  ;;  %v2299_v32 = vrot.slane %v2283_v20, %v12939_v42  ;;  %v12140_v62 = vld [vmem:[%s12884_s22 + $0x1120] sm:$0xff]   ;;  %v12144_v3 = vld [vmem:[%s12884_s22 + $0x1118] sm:$0xff]  }
 0x28b   : > { %11027 = vmatprep.subr.bf16.mxu1 %v12105_v59  ;;  %v10735_v7 = vpop.f32.mrf.mxu1  ;;  %v12141_v63 = vld [vmem:[%s12884_s22 + $0x11e0] sm:$0xff]   ;;  %v12162_v20 = vld [vmem:[%s12884_s22 + $0x12f8] sm:$0xff]  }
 0x28c   : > { %11006 = vmatpush3.bf16.msra.mxu0 %v12104_v58  ;;  %v2313_v29 = vrot.slane %v2291_v25, %v12939_v42  ;;  %v2321_v39 = vcombine.high %v2299_v32, %v2299_v32  ;;  %v12142_v1 = vld [vmem:[%s12884_s22 + $0x11a0] sm:$0xff]   ;;  %v12148_v7 = vld [vmem:[%s12884_s22 + $0x1110] sm:$0xff]  }
 0x28d   : > { %11007 = vmatprep.subr.bf16.mxu0 %v12107_v2  ;;  %v12143_v2 = vld [vmem:[%s12884_s22 + $0x1158] sm:$0xff]   ;;  %v12165_v25 = vld [vmem:[%s12884_s22 + $0x1230] sm:$0xff]  }
 0x28e   : > { %11028 = vmatpush3.bf16.msra.mxu1 %v12106_v0  ;;  %8608 = vmatprep.mubr.bf16.mxu0 %v2313_v29  ;;  %v2323_v35 = vcombine.high %v2313_v29, %v2313_v29 }
 0x28f   : > { %11029 = vmatprep.subr.bf16.mxu1 %v12109_v6  ;;  %v12147_v6 = vld [vmem:[%s12884_s22 + $0x1150] sm:$0xff]  }
 0x290   : > { %11008 = vmatpush3.bf16.msra.mxu0 %v12108_v5  ;;  %8648 = vmatprep.mubr.bf16.mxu1 %v2323_v35  ;;  %v12146_v5 = vld [vmem:[%s12884_s22 + $0x1198] sm:$0xff]  }
 0x291   : > { %11009 = vmatprep.subr.bf16.mxu0 %v12111_v9  ;;  %v12150_v9 = vld [vmem:[%s12884_s22 + $0x1190] sm:$0xff]  }
 0x292   : > { %11030 = vmatpush3.bf16.msra.mxu1 %v12110_v8  ;;  %v12149_v8 = vld [vmem:[%s12884_s22 + $0x11d0] sm:$0xff]  }
 0x293   : > { %11031 = vmatprep.subr.bf16.mxu1 %v12113_v12  ;;  %v12152_v12 = vld [vmem:[%s12884_s22 + $0x1108] sm:$0xff]  }
 0x294   : > { %11010 = vmatpush3.bf16.msra.mxu0 %v12112_v10  ;;  %v12151_v10 = vld [vmem:[%s12884_s22 + $0x1148] sm:$0xff]  }
 0x295   : > { %11011 = vmatprep.subr.bf16.mxu0 %v12115_v13  ;;  %v12154_v13 = vld [vmem:[%s12884_s22 + $0x1188] sm:$0xff]  }
 0x296   : > { %11032 = vmatpush3.bf16.msra.mxu1 %v12114_v11  ;;  %v12153_v11 = vld [vmem:[%s12884_s22 + $0x11c8] sm:$0xff]  }
 0x297   : > { %11033 = vmatprep.subr.bf16.mxu1 %v12117_v15  ;;  %v12156_v15 = vld [vmem:[%s12884_s22 + $0x1100] sm:$0xff]  }
 0x298   : > { %11012 = vmatpush3.bf16.msra.mxu0 %v12116_v14  ;;  %v12155_v14 = vld [vmem:[%s12884_s22 + $0x1140] sm:$0xff]  }
 0x299   : > { %11013 = vmatprep.subr.bf16.mxu0 %v12119_v17  ;;  %v12159_v17 = vld [vmem:[%s12884_s22 + $0x1180] sm:$0xff]  }
 0x29a   : > { %11034 = vmatpush3.bf16.msra.mxu1 %v12118_v16  ;;  %v12157_v16 = vld [vmem:[%s12884_s22 + $0x11c0] sm:$0xff]  }
 0x29b   : > { %11035 = vmatprep.subr.bf16.mxu1 %v12121_v21  ;;  %v12161_v21 = vld [vmem:[%s12884_s22 + $0x1238] sm:$0xff]  }
 0x29c   : > { %11014 = vmatpush3.bf16.msra.mxu0 %v12120_v18  ;;  %v2306_v18 = vrot.slane %v13575_v26, %v12939_v42  ;;  %v12166_v26 = vld [vmem:[%s12884_s22 + $0x12f0] sm:$0xff]  }
 0x29d   : > { %11015 = vmatprep.subr.bf16.mxu0 %v12123_v24  ;;  %v12164_v24 = vld [vmem:[%s12884_s22 + $0x1270] sm:$0xff]  }
 0x29e   : > { %11036 = vmatpush3.bf16.msra.mxu1 %v12122_v23  ;;  %v2322_v23 = vcombine.high %v2306_v18, %v2306_v18 }
 0x29f   : > { %11037 = vmatprep.subr.bf16.mxu1 %v12125_v28  ;;  %v12167_v28 = vld [vmem:[%s12884_s22 + $0x12b0] sm:$0xff]  }
 0x2a0   : > { %11016 = vmatpush3.bf16.msra.mxu0 %v12124_v27 }
 0x2a1   : > { %11045 = vmatprep.subr.bf16.mxu0 %v12127_v33  ;;  %v12169_v33 = vld [vmem:[%s12884_s22 + $0x1228] sm:$0xff]  }
 0x2a2   : > { %11038 = vmatpush3.bf16.msra.mxu1 %v12126_v31  ;;  %v12168_v31 = vld [vmem:[%s12884_s22 + $0x1268] sm:$0xff]  }
 0x2a3   : > { %v10753_v44 = vpop.f32.mrf.mxu0  ;;  %8609 = vmatmul.mubr.bf16.vlgmr.msra.gmra.mxu0 %v2299_v32  ;;  %11067 = vmatprep.subr.bf16.mxu1 %v12129_v37 }
 0x2a4   : > { %11046 = vmatpush3.bf16.msra.mxu0 %v12128_v36  ;;  %8688 = vmatprep.mubr.bf16.mxu0 %v2320_v34  ;;  %v12170_v34 = vld [vmem:[%s12884_s22 + $0x12e8] sm:$0xff]  }
 0x2a5   : > { %v10754_v47 = vpop.f32.mrf.mxu0  ;;  %v10775_v48 = vpop.f32.mrf.mxu1  ;;  %8649 = vmatmul.mubr.bf16.vlgmr.msra.gmra.mxu1 %v2321_v39  ;;  %11047 = vmatprep.subr.bf16.mxu0 %v12131_v40  ;;  %v12171_v39 = vld [vmem:[%s12884_s22 + $0x12a8] sm:$0xff]  }
 0x2a6   : > { %v10755_v50 = vadd.f32 %v10754_v47, %v10753_v44  ;;  %11068 = vmatpush3.bf16.msra.mxu1 %v12130_v38  ;;  %8728 = vmatprep.mubr.bf16.mxu1 %v2324_v43 }
 0x2a7   : > { %v10756_v51 = vpop.f32.mrf.mxu0  ;;  %v10776_v53 = vpop.f32.mrf.mxu1  ;;  %11069 = vmatprep.subr.bf16.mxu1 %v12133_v45  ;;  %v12173_v45 = vld [vmem:[%s12884_s22 + $0x1220] sm:$0xff]  }
 0x2a8   : > { %v8131_v55 = vadd.f32 %v10755_v50, %v13554_v4  ;;  %v10777_v56 = vadd.f32 %v10776_v53, %v10775_v48  ;;  %11048 = vmatpush3.bf16.msra.mxu0 %v12132_v41  ;;  %v12145_v4 = vld [vmem:[%s12884_s22 + $0x11d8] sm:$0xff]   ;;  %v12172_v41 = vld [vmem:[%s12884_s22 + $0x1260] sm:$0xff]   ;;  %v12180_v53 = vld [vmem:[%s12884_s22 + $0x1250] sm:$0xff]  }
 0x2a9   : > { %v10757_v58 = vpop.f32.mrf.mxu0  ;;  %11049 = vmatprep.subr.bf16.mxu0 %v12135_v49  ;;  %v10778_v61 = vpop.f32.mrf.mxu1  ;;  %v12175_v48 = vld [vmem:[%s12884_s22 + $0x12a0] sm:$0xff]   ;;  %v12176_v49 = vld [vmem:[%s12884_s22 + $0x1258] sm:$0xff]  }
 0x2aa   : > { %v13599_v59 = vadd.f32 %v10777_v56, %v8131_v55  ;;  %11070 = vmatpush3.bf16.msra.mxu1 %v12134_v46  ;;  %v12174_v46 = vld [vmem:[%s12884_s22 + $0x12e0] sm:$0xff]   ;;  %v12177_v50 = vld [vmem:[%s12884_s22 + $0x1218] sm:$0xff]   ;;  %v12182_v55 = vld [vmem:[%s12884_s22 + $0x12d0] sm:$0xff]  }
 0x2ab   : > { %11071 = vmatprep.subr.bf16.mxu1 %v12137_v54  ;;  %v10779_v0 = vpop.f32.mrf.mxu1  ;;  %v12179_v51 = vld [vmem:[%s12884_s22 + $0x1298] sm:$0xff]   ;;  %v12181_v54 = vld [vmem:[%s12884_s22 + $0x1210] sm:$0xff]   ;;  %v12186_v58 = vld [vmem:[%s12884_s22 + $0x12c8] sm:$0xff]  }
 0x2ac   : > { %11050 = vmatpush3.bf16.msra.mxu0 %v12136_v52  ;;  %v12178_v52 = vld [vmem:[%s12884_s22 + $0x12d8] sm:$0xff]   ;;  %v12183_v56 = vld [vmem:[%s12884_s22 + $0x1290] sm:$0xff]   ;;  %v12185_v61 = vld [vmem:[%s12884_s22 + $0x1208] sm:$0xff]  }
 0x2ad   : > { %11051 = vmatprep.subr.bf16.mxu0 %v12139_v60  ;;  %v299_v60 = vld [vmem:[%s12876_s24 + $0x48] sm:$0xff] }
 0x2ae   : > { %11072 = vmatpush3.bf16.msra.mxu1 %v12138_v57  ;;  %v12184_v57 = vld [vmem:[%s12884_s22 + $0x1248] sm:$0xff]  }
 0x2af   : > { %11073 = vmatprep.subr.bf16.mxu1 %v12141_v63  ;;  %v12188_v63 = vld [vmem:[%s12884_s22 + $0x1240] sm:$0xff]   ;;  %v12187_v0 = vld [vmem:[%s12884_s22 + $0x1288] sm:$0xff]  }
 0x2b0   : > { %11052 = vmatpush3.bf16.msra.mxu0 %v12140_v62  ;;  %v2325_v62 = vcombine.high %v299_v60, %v299_v60 }
 0x2b1   : > { %11053 = vmatprep.subr.bf16.mxu0 %v12143_v2 }
 0x2b2   : > { %11074 = vmatpush3.bf16.msra.mxu1 %v12142_v1  ;;  %v13657_v2 = vrot.slane %v2325_v62, %v12939_v42 }
 0x2b3   : > { %11075 = vmatprep.subr.bf16.mxu1 %v12145_v4  ;;  %v12189_v4 = vld [vmem:[%s12884_s22 + $0x1200] sm:$0xff]  }
 0x2b4   : > { %11054 = vmatpush3.bf16.msra.mxu0 %v12144_v3  ;;  %v12190_v3 = vld [vmem:[%s12884_s22 + $0x12c0] sm:$0xff]  }
 0x2b5   : > { %11055 = vmatprep.subr.bf16.mxu0 %v12147_v6  ;;  %v2341_v6 = vcombine.high %v13657_v2, %v13657_v2 }
 0x2b6   : > { %11076 = vmatpush3.bf16.msra.mxu1 %v12146_v5 }
 0x2b7   : > { %11077 = vmatprep.subr.bf16.mxu1 %v12149_v8  ;;  %v12192_v8 = vld [vmem:[%s12884_s22 + $0x1378] sm:$0xff]  }
 0x2b8   : > { %11056 = vmatpush3.bf16.msra.mxu0 %v12148_v7 }
 0x2b9   : > { %11057 = vmatprep.subr.bf16.mxu0 %v12151_v10 }
 0x2ba   : > { %11078 = vmatpush3.bf16.msra.mxu1 %v12150_v9  ;;  %v12191_v9 = vld [vmem:[%s12884_s22 + $0x1280] sm:$0xff]  }
 0x2bb   : > { %11079 = vmatprep.subr.bf16.mxu1 %v12153_v11  ;;  %v12194_v11 = vld [vmem:[%s12884_s22 + $0x13f8] sm:$0xff]  }
 0x2bc   : > { %11058 = vmatpush3.bf16.msra.mxu0 %v12152_v12  ;;  %v2369_v12 = vrot.slane %v2341_v6, %v12939_v42  ;;  %v12233_v6 = vld [vmem:[%s12884_s22 + $0x1468] sm:$0xff]  }
 0x2bd   : > { %11059 = vmatprep.subr.bf16.mxu0 %v12155_v14 }
 0x2be   : > { %11080 = vmatpush3.bf16.msra.mxu1 %v12154_v13  ;;  %v12193_v13 = vld [vmem:[%s12884_s22 + $0x1338] sm:$0xff]  }
 0x2bf   : > { %11081 = vmatprep.subr.bf16.mxu1 %v12157_v16  ;;  %v12195_v16 = vld [vmem:[%s12884_s22 + $0x13b8] sm:$0xff]  }
 0x2c0   : > { %11060 = vmatpush3.bf16.msra.mxu0 %v12156_v15  ;;  %v12196_v15 = vld [vmem:[%s12884_s22 + $0x1370] sm:$0xff]  }
 0x2c1   : > { %11089 = vmatprep.subr.bf16.mxu0 %v12160_v19  ;;  %v12198_v19 = vld [vmem:[%s12884_s22 + $0x13f0] sm:$0xff]  }
 0x2c2   : > { %11082 = vmatpush3.bf16.msra.mxu1 %v12159_v17  ;;  %v2373_v17 = vcombine.high %v2369_v12, %v2369_v12 }
 0x2c3   : > { %v10797_v27 = vpop.f32.mrf.mxu0  ;;  %8689 = vmatmul.mubr.bf16.vlgmr.msra.gmra.mxu0 %v2306_v18  ;;  %11111 = vmatprep.subr.bf16.mxu1 %v12162_v20 }
 0x2c4   : > { %11090 = vmatpush3.bf16.msra.mxu0 %v12161_v21  ;;  %v12197_v21 = vld [vmem:[%s12884_s22 + $0x1330] sm:$0xff]  }
 0x2c5   : > { %v10798_v29 = vpop.f32.mrf.mxu0  ;;  %v10819_v30 = vpop.f32.mrf.mxu1  ;;  %8729 = vmatmul.mubr.bf16.vlgmr.msra.gmra.mxu1 %v2322_v23  ;;  %11091 = vmatprep.subr.bf16.mxu0 %v12164_v24  ;;  %v12200_v23 = vld [vmem:[%s12884_s22 + $0x1368] sm:$0xff]  }
 0x2c6   : > { %v10799_v32 = vadd.f32 %v10798_v29, %v10797_v27  ;;  %11112 = vmatpush3.bf16.msra.mxu1 %v12163_v22 }
 0x2c7   : > { %v10800_v35 = vpop.f32.mrf.mxu0  ;;  %v10820_v36 = vpop.f32.mrf.mxu1  ;;  %11113 = vmatprep.subr.bf16.mxu1 %v12166_v26 }
 0x2c8   : > { %v8211_v37 = vadd.f32 %v10799_v32, %v13599_v59  ;;  %v10821_v38 = vadd.f32 %v10820_v36, %v10819_v30  ;;  %11092 = vmatpush3.bf16.msra.mxu0 %v12165_v25  ;;  %v2332_v59 = vrot.slane %v299_v60, %v12939_v42  ;;  %v12199_v25 = vld [vmem:[%s12884_s22 + $0x13b0] sm:$0xff]   ;;  %v12224_v60 = vld [vmem:[%s12884_s22 + $0x1380] sm:$0xff]  }
 0x2c9   : > { %v10801_v40 = vpop.f32.mrf.mxu0  ;;  %11093 = vmatprep.subr.bf16.mxu0 %v12168_v31  ;;  %v10822_v43 = vpop.f32.mrf.mxu1  ;;  %v12201_v31 = vld [vmem:[%s12884_s22 + $0x1328] sm:$0xff]  }
 0x2ca   : > { %v13636_v44 = vadd.f32 %v10821_v38, %v8211_v37  ;;  %11114 = vmatpush3.bf16.msra.mxu1 %v12167_v28  ;;  %v2340_v1 = vcombine.high %v2332_v59, %v2332_v59  ;;  %v2348_v7 = vrot.slane %v2332_v59, %v12939_v42  ;;  %v12202_v28 = vld [vmem:[%s12884_s22 + $0x13e8] sm:$0xff]   ;;  %v12206_v37 = vld [vmem:[%s12884_s22 + $0x13e0] sm:$0xff]   ;;  %v12208_v40 = vld [vmem:[%s12884_s22 + $0x1358] sm:$0xff]  }
 0x2cb   : > { %11115 = vmatprep.subr.bf16.mxu1 %v12170_v34  ;;  %v10823_v47 = vpop.f32.mrf.mxu1  ;;  %v12203_v34 = vld [vmem:[%s12884_s22 + $0x13a8] sm:$0xff]   ;;  %v12210_v43 = vld [vmem:[%s12884_s22 + $0x13d8] sm:$0xff]  }
 0x2cc   : > { %11094 = vmatpush3.bf16.msra.mxu0 %v12169_v33  ;;  %v2362_v5 = vrot.slane %v2340_v1, %v12939_v42  ;;  %v2370_v14 = vcombine.high %v2348_v7, %v2348_v7  ;;  %v12204_v33 = vld [vmem:[%s12884_s22 + $0x1360] sm:$0xff]   ;;  %v12214_v47 = vld [vmem:[%s12884_s22 + $0x13d0] sm:$0xff]   ;;  %v12226_v59 = vld [vmem:[%s12884_s22 + $0x1438] sm:$0xff]  }
 0x2cd   : > { %11095 = vmatprep.subr.bf16.mxu0 %v12172_v41  ;;  %v12207_v41 = vld [vmem:[%s12884_s22 + $0x13a0] sm:$0xff]  }
 0x2ce   : > { %11116 = vmatpush3.bf16.msra.mxu1 %v12171_v39  ;;  %8768 = vmatprep.mubr.bf16.mxu0 %v2362_v5  ;;  %v2372_v10 = vcombine.high %v2362_v5, %v2362_v5  ;;  %v12205_v39 = vld [vmem:[%s12884_s22 + $0x1320] sm:$0xff]  }
 0x2cf   : > { %11117 = vmatprep.subr.bf16.mxu1 %v12174_v46  ;;  %v12211_v46 = vld [vmem:[%s12884_s22 + $0x1398] sm:$0xff]  }
 0x2d0   : > { %11096 = vmatpush3.bf16.msra.mxu0 %v12173_v45  ;;  %8808 = vmatprep.mubr.bf16.mxu1 %v2372_v10  ;;  %v12212_v45 = vld [vmem:[%s12884_s22 + $0x1350] sm:$0xff]  }
 0x2d1   : > { %11097 = vmatprep.subr.bf16.mxu0 %v12176_v49  ;;  %v12216_v49 = vld [vmem:[%s12884_s22 + $0x1348] sm:$0xff]  }
 0x2d2   : > { %11118 = vmatpush3.bf16.msra.mxu1 %v12175_v48  ;;  %v12213_v48 = vld [vmem:[%s12884_s22 + $0x1310] sm:$0xff]  }
 0x2d3   : > { %11119 = vmatprep.subr.bf16.mxu1 %v12178_v52  ;;  %v12218_v52 = vld [vmem:[%s12884_s22 + $0x13c8] sm:$0xff]  }
 0x2d4   : > { %11098 = vmatpush3.bf16.msra.mxu0 %v12177_v50  ;;  %v12215_v50 = vld [vmem:[%s12884_s22 + $0x1390] sm:$0xff]  }
 0x2d5   : > { %11099 = vmatprep.subr.bf16.mxu0 %v12180_v53  ;;  %v12220_v53 = vld [vmem:[%s12884_s22 + $0x1340] sm:$0xff]  }
 0x2d6   : > { %11120 = vmatpush3.bf16.msra.mxu1 %v12179_v51  ;;  %v12217_v51 = vld [vmem:[%s12884_s22 + $0x1308] sm:$0xff]  }
 0x2d7   : > { %11121 = vmatprep.subr.bf16.mxu1 %v12182_v55  ;;  %v12222_v55 = vld [vmem:[%s12884_s22 + $0x13c0] sm:$0xff]  }
 0x2d8   : > { %11100 = vmatpush3.bf16.msra.mxu0 %v12181_v54  ;;  %v12219_v54 = vld [vmem:[%s12884_s22 + $0x1388] sm:$0xff]  }
 0x2d9   : > { %11101 = vmatprep.subr.bf16.mxu0 %v12184_v57  ;;  %v2355_v57 = vrot.slane %v13657_v2, %v12939_v42  ;;  %v12231_v2 = vld [vmem:[%s12884_s22 + $0x14f0] sm:$0xff]  }
 0x2da   : > { %11122 = vmatpush3.bf16.msra.mxu1 %v12183_v56  ;;  %v12221_v56 = vld [vmem:[%s12884_s22 + $0x1300] sm:$0xff]  }
 0x2db   : > { %11123 = vmatprep.subr.bf16.mxu1 %v12186_v58  ;;  %v12225_v58 = vld [vmem:[%s12884_s22 + $0x1478] sm:$0xff]   ;;  %v2371_v62 = vcombine.high %v2355_v57, %v2355_v57 }
 0x2dc   : > { %11102 = vmatpush3.bf16.msra.mxu0 %v12185_v61  ;;  %v12227_v61 = vld [vmem:[%s12884_s22 + $0x14f8] sm:$0xff]  }
 0x2dd   : > { %11103 = vmatprep.subr.bf16.mxu0 %v12188_v63  ;;  %v12229_v63 = vld [vmem:[%s12884_s22 + $0x1470] sm:$0xff]  }
 0x2de   : > { %11124 = vmatpush3.bf16.msra.mxu1 %v12187_v0  ;;  %v12228_v0 = vld [vmem:[%s12884_s22 + $0x14b8] sm:$0xff]  }
 0x2df   : > { %11125 = vmatprep.subr.bf16.mxu1 %v12190_v3  ;;  %v12230_v3 = vld [vmem:[%s12884_s22 + $0x1430] sm:$0xff]  }
 0x2e0   : > { %11104 = vmatpush3.bf16.msra.mxu0 %v12189_v4 }
 0x2e1   : > { %11133 = vmatprep.subr.bf16.mxu0 %v12192_v8  ;;  %v12232_v8 = vld [vmem:[%s12884_s22 + $0x14b0] sm:$0xff]  }
 0x2e2   : > { %11126 = vmatpush3.bf16.msra.mxu1 %v12191_v9 }
 0x2e3   : > { %v10841_v18 = vpop.f32.mrf.mxu0  ;;  %8769 = vmatmul.mubr.bf16.vlgmr.msra.gmra.mxu0 %v2348_v7  ;;  %11155 = vmatprep.subr.bf16.mxu1 %v12194_v11 }
 0x2e4   : > { %11134 = vmatpush3.bf16.msra.mxu0 %v12193_v13  ;;  %8848 = vmatprep.mubr.bf16.mxu0 %v2369_v12  ;;  %v12235_v12 = vld [vmem:[%s12884_s22 + $0x14e8] sm:$0xff]  }
 0x2e5   : > { %v10842_v20 = vpop.f32.mrf.mxu0  ;;  %v10863_v22 = vpop.f32.mrf.mxu1  ;;  %8809 = vmatmul.mubr.bf16.vlgmr.msra.gmra.mxu1 %v2370_v14  ;;  %11135 = vmatprep.subr.bf16.mxu0 %v12196_v15  ;;  %v12234_v14 = vld [vmem:[%s12884_s22 + $0x1428] sm:$0xff]  }
 0x2e6   : > { %v10843_v24 = vadd.f32 %v10842_v20, %v10841_v18  ;;  %11156 = vmatpush3.bf16.msra.mxu1 %v12195_v16  ;;  %8888 = vmatprep.mubr.bf16.mxu1 %v2373_v17  ;;  %v12237_v16 = vld [vmem:[%s12884_s22 + $0x1460] sm:$0xff]  }
 0x2e7   : > { %v10844_v27 = vpop.f32.mrf.mxu0  ;;  %v10864_v26 = vpop.f32.mrf.mxu1  ;;  %11157 = vmatprep.subr.bf16.mxu1 %v12198_v19  ;;  %v12236_v19 = vld [vmem:[%s12884_s22 + $0x14a8] sm:$0xff]  }
 0x2e8   : > { %v8291_v29 = vadd.f32 %v10843_v24, %v13636_v44  ;;  %v10865_v30 = vadd.f32 %v10864_v26, %v10863_v22  ;;  %11136 = vmatpush3.bf16.msra.mxu0 %v12197_v21  ;;  %v12209_v44 = vld [vmem:[%s12884_s22 + $0x1318] sm:$0xff]   ;;  %v12239_v21 = vld [vmem:[%s12884_s22 + $0x14e0] sm:$0xff]   ;;  %v12245_v26 = vld [vmem:[%s12884_s22 + $0x1450] sm:$0xff]  }
 0x2e9   : > { %v10845_v32 = vpop.f32.mrf.mxu0  ;;  %11137 = vmatprep.subr.bf16.mxu0 %v12200_v23  ;;  %v10866_v35 = vpop.f32.mrf.mxu1  ;;  %v12238_v22 = vld [vmem:[%s12884_s22 + $0x1420] sm:$0xff]   ;;  %v12241_v23 = vld [vmem:[%s12884_s22 + $0x1458] sm:$0xff]  }
 0x2ea   : > { %v13680_v36 = vadd.f32 %v10865_v30, %v8291_v29  ;;  %11158 = vmatpush3.bf16.msra.mxu1 %v12199_v25  ;;  %v12240_v24 = vld [vmem:[%s12884_s22 + $0x14a0] sm:$0xff]   ;;  %v12243_v25 = vld [vmem:[%s12884_s22 + $0x14d8] sm:$0xff]   ;;  %v12247_v29 = vld [vmem:[%s12884_s22 + $0x14d0] sm:$0xff]  }
 0x2eb   : > { %11159 = vmatprep.subr.bf16.mxu1 %v12202_v28  ;;  %v10867_v38 = vpop.f32.mrf.mxu1  ;;  %v12242_v27 = vld [vmem:[%s12884_s22 + $0x1418] sm:$0xff]   ;;  %v12246_v30 = vld [vmem:[%s12884_s22 + $0x1410] sm:$0xff]  }
 0x2ec   : > { %11138 = vmatpush3.bf16.msra.mxu0 %v12201_v31  ;;  %v12244_v28 = vld [vmem:[%s12884_s22 + $0x1498] sm:$0xff]   ;;  %v12249_v31 = vld [vmem:[%s12884_s22 + $0x1448] sm:$0xff]   ;;  %v12248_v32 = vld [vmem:[%s12884_s22 + $0x1490] sm:$0xff]  }
 0x2ed   : > { %11139 = vmatprep.subr.bf16.mxu0 %v12204_v33  ;;  %v12251_v33 = vld [vmem:[%s12884_s22 + $0x14c8] sm:$0xff]   ;;  %v12253_v38 = vld [vmem:[%s12884_s22 + $0x1440] sm:$0xff]  }
 0x2ee   : > { %11160 = vmatpush3.bf16.msra.mxu1 %v12203_v34  ;;  %v300_v35 = vld [vmem:[%s12876_s24 + $0x50] sm:$0xff] }
 0x2ef   : > { %11161 = vmatprep.subr.bf16.mxu1 %v12206_v37  ;;  %v2381_v34 = vrot.slane %v300_v35, %v12939_v42  ;;  %v2374_v37 = vcombine.high %v300_v35, %v300_v35  ;;  %v12289_v35 = vld [vmem:[%s12884_s22 + $0x1580] sm:$0xff]  }
 0x2f0   : > { %11140 = vmatpush3.bf16.msra.mxu0 %v12205_v39  ;;  %v12252_v39 = vld [vmem:[%s12884_s22 + $0x1488] sm:$0xff]  }
 0x2f1   : > { %11141 = vmatprep.subr.bf16.mxu0 %v12208_v40  ;;  %v2389_v40 = vcombine.high %v2381_v34, %v2381_v34 }
 0x2f2   : > { %11162 = vmatpush3.bf16.msra.mxu1 %v12207_v41  ;;  %v13739_v41 = vrot.slane %v2374_v37, %v12939_v42 }
 0x2f3   : > { %11163 = vmatprep.subr.bf16.mxu1 %v12210_v43  ;;  %v12255_v43 = vld [vmem:[%s12884_s22 + $0x14c0] sm:$0xff]  }
 0x2f4   : > { %11142 = vmatpush3.bf16.msra.mxu0 %v12209_v44  ;;  %v12254_v44 = vld [vmem:[%s12884_s22 + $0x1400] sm:$0xff]  }
 0x2f5   : > { %11143 = vmatprep.subr.bf16.mxu0 %v12212_v45  ;;  %v2411_v45 = vrot.slane %v2389_v40, %v12939_v42 }
 0x2f6   : > { %11164 = vmatpush3.bf16.msra.mxu1 %v12211_v46  ;;  %v2390_v46 = vcombine.high %v13739_v41, %v13739_v41 }
 0x2f7   : > { %11165 = vmatprep.subr.bf16.mxu1 %v12214_v47  ;;  %v2397_v47 = vrot.slane %v2381_v34, %v12939_v42  ;;  %v12291_v34 = vld [vmem:[%s12884_s22 + $0x1638] sm:$0xff]  }
 0x2f8   : > { %11144 = vmatpush3.bf16.msra.mxu0 %v12213_v48  ;;  %v12257_v48 = vld [vmem:[%s12884_s22 + $0x1578] sm:$0xff]  }
 0x2f9   : > { %11145 = vmatprep.subr.bf16.mxu0 %v12216_v49  ;;  %v12256_v49 = vld [vmem:[%s12884_s22 + $0x1480] sm:$0xff]  }
 0x2fa   : > { %11166 = vmatpush3.bf16.msra.mxu1 %v12215_v50  ;;  %v2421_v50 = vcombine.high %v2411_v45, %v2411_v45 }
 0x2fb   : > { %11167 = vmatprep.subr.bf16.mxu1 %v12218_v52  ;;  %v2418_v52 = vrot.slane %v2390_v46, %v12939_v42  ;;  %v12298_v46 = vld [vmem:[%s12884_s22 + $0x1668] sm:$0xff]  }
 0x2fc   : > { %11146 = vmatpush3.bf16.msra.mxu0 %v12217_v51  ;;  %v12259_v51 = vld [vmem:[%s12884_s22 + $0x15f8] sm:$0xff]  }
 0x2fd   : > { %11147 = vmatprep.subr.bf16.mxu0 %v12220_v53  ;;  %v12258_v53 = vld [vmem:[%s12884_s22 + $0x1538] sm:$0xff]  }
 0x2fe   : > { %11168 = vmatpush3.bf16.msra.mxu1 %v12219_v54  ;;  %v2419_v54 = vcombine.high %v2397_v47, %v2397_v47 }
 0x2ff   : > { %11169 = vmatprep.subr.bf16.mxu1 %v12222_v55  ;;  %v12261_v55 = vld [vmem:[%s12884_s22 + $0x1570] sm:$0xff]  }
 0x300   : > { %11148 = vmatpush3.bf16.msra.mxu0 %v12221_v56  ;;  %v12260_v56 = vld [vmem:[%s12884_s22 + $0x15b8] sm:$0xff]  }
 0x301   : > { %11177 = vmatprep.subr.bf16.mxu0 %v12225_v58 }
 0x302   : > { %11170 = vmatpush3.bf16.msra.mxu1 %v12224_v60  ;;  %v12263_v60 = vld [vmem:[%s12884_s22 + $0x15f0] sm:$0xff]  }
 0x303   : > { %v10885_v1 = vpop.f32.mrf.mxu0  ;;  %8849 = vmatmul.mubr.bf16.vlgmr.msra.gmra.mxu0 %v2355_v57  ;;  %11199 = vmatprep.subr.bf16.mxu1 %v12227_v61  ;;  %v2422_v57 = vcombine.high %v2418_v52, %v2418_v52  ;;  %v12262_v61 = vld [vmem:[%s12884_s22 + $0x1530] sm:$0xff]  }
 0x304   : > { %11178 = vmatpush3.bf16.msra.mxu0 %v12226_v59  ;;  %8928 = vmatprep.mubr.bf16.mxu0 %v2411_v45 }
 0x305   : > { %v10886_v4 = vpop.f32.mrf.mxu0  ;;  %v10907_v5 = vpop.f32.mrf.mxu1  ;;  %8889 = vmatmul.mubr.bf16.vlgmr.msra.gmra.mxu1 %v2371_v62  ;;  %11179 = vmatprep.subr.bf16.mxu0 %v12229_v63  ;;  %v12265_v63 = vld [vmem:[%s12884_s22 + $0x1568] sm:$0xff]  }
 0x306   : > { %v10887_v7 = vadd.f32 %v10886_v4, %v10885_v1  ;;  %11200 = vmatpush3.bf16.msra.mxu1 %v12228_v0  ;;  %8968 = vmatprep.mubr.bf16.mxu1 %v2421_v50  ;;  %v12264_v1 = vld [vmem:[%s12884_s22 + $0x15b0] sm:$0xff]   ;;  %v12267_v4 = vld [vmem:[%s12884_s22 + $0x15e8] sm:$0xff]  }
 0x307   : > { %v10888_v9 = vpop.f32.mrf.mxu0  ;;  %v10908_v10 = vpop.f32.mrf.mxu1  ;;  %11201 = vmatprep.subr.bf16.mxu1 %v12231_v2 }
 0x308   : > { %v8371_v11 = vadd.f32 %v10887_v7, %v13680_v36  ;;  %v10909_v13 = vadd.f32 %v10908_v10, %v10907_v5  ;;  %11180 = vmatpush3.bf16.msra.mxu0 %v12230_v3  ;;  %v12250_v36 = vld [vmem:[%s12884_s22 + $0x1408] sm:$0xff]   ;;  %v12269_v9 = vld [vmem:[%s12884_s22 + $0x1560] sm:$0xff]  }
 0x309   : > { %v10889_v15 = vpop.f32.mrf.mxu0  ;;  %11181 = vmatprep.subr.bf16.mxu0 %v12233_v6  ;;  %v10910_v17 = vpop.f32.mrf.mxu1  ;;  %v12266_v7 = vld [vmem:[%s12884_s22 + $0x1528] sm:$0xff]  }
 0x30a   : > { %v13717_v18 = vadd.f32 %v10909_v13, %v8371_v11  ;;  %11202 = vmatpush3.bf16.msra.mxu1 %v12232_v8  ;;  %v12268_v11 = vld [vmem:[%s12884_s22 + $0x15a8] sm:$0xff]   ;;  %v12271_v13 = vld [vmem:[%s12884_s22 + $0x15e0] sm:$0xff]  }
 0x30b   : > { %11203 = vmatprep.subr.bf16.mxu1 %v12235_v12  ;;  %v10911_v20 = vpop.f32.mrf.mxu1  ;;  %v12270_v15 = vld [vmem:[%s12884_s22 + $0x1520] sm:$0xff]  }
 0x30c   : > { %11182 = vmatpush3.bf16.msra.mxu0 %v12234_v14  ;;  %v12272_v17 = vld [vmem:[%s12884_s22 + $0x15a0] sm:$0xff]   ;;  %v12276_v20 = vld [vmem:[%s12884_s22 + $0x1598] sm:$0xff]  }
 0x30d   : > { %11183 = vmatprep.subr.bf16.mxu0 %v12237_v16  ;;  %v12273_v16 = vld [vmem:[%s12884_s22 + $0x1558] sm:$0xff]  }
 0x30e   : > { %11204 = vmatpush3.bf16.msra.mxu1 %v12236_v19  ;;  %v12274_v19 = vld [vmem:[%s12884_s22 + $0x1518] sm:$0xff]  }
 0x30f   : > { %11205 = vmatprep.subr.bf16.mxu1 %v12239_v21  ;;  %v12277_v21 = vld [vmem:[%s12884_s22 + $0x1550] sm:$0xff]  }
 0x310   : > { %11184 = vmatpush3.bf16.msra.mxu0 %v12238_v22  ;;  %v12279_v22 = vld [vmem:[%s12884_s22 + $0x15d0] sm:$0xff]  }
 0x311   : > { %11185 = vmatprep.subr.bf16.mxu0 %v12241_v23  ;;  %v12278_v23 = vld [vmem:[%s12884_s22 + $0x1510] sm:$0xff]  }
 0x312   : > { %11206 = vmatpush3.bf16.msra.mxu1 %v12240_v24  ;;  %v12281_v24 = vld [vmem:[%s12884_s22 + $0x1548] sm:$0xff]  }
 0x313   : > { %11207 = vmatprep.subr.bf16.mxu1 %v12243_v25  ;;  %v12280_v25 = vld [vmem:[%s12884_s22 + $0x1590] sm:$0xff]  }
 0x314   : > { %11186 = vmatpush3.bf16.msra.mxu0 %v12242_v27  ;;  %v12283_v27 = vld [vmem:[%s12884_s22 + $0x15c8] sm:$0xff]  }
 0x315   : > { %11187 = vmatprep.subr.bf16.mxu0 %v12245_v26  ;;  %v12282_v26 = vld [vmem:[%s12884_s22 + $0x1508] sm:$0xff]  }
 0x316   : > { %11208 = vmatpush3.bf16.msra.mxu1 %v12244_v28  ;;  %v12285_v28 = vld [vmem:[%s12884_s22 + $0x1540] sm:$0xff]  }
 0x317   : > { %11209 = vmatprep.subr.bf16.mxu1 %v12247_v29  ;;  %v12284_v29 = vld [vmem:[%s12884_s22 + $0x1588] sm:$0xff]  }
 0x318   : > { %11188 = vmatpush3.bf16.msra.mxu0 %v12246_v30  ;;  %v12287_v30 = vld [vmem:[%s12884_s22 + $0x15c0] sm:$0xff]  }
 0x319   : > { %11189 = vmatprep.subr.bf16.mxu0 %v12249_v31  ;;  %v12286_v31 = vld [vmem:[%s12884_s22 + $0x1500] sm:$0xff]  }
 0x31a   : > { %11210 = vmatpush3.bf16.msra.mxu1 %v12248_v32  ;;  %v2404_v32 = vrot.slane %v13739_v41, %v12939_v42  ;;  %v12296_v41 = vld [vmem:[%s12884_s22 + $0x16f0] sm:$0xff]  }
 0x31b   : > { %11211 = vmatprep.subr.bf16.mxu1 %v12251_v33  ;;  %v12290_v33 = vld [vmem:[%s12884_s22 + $0x1678] sm:$0xff]  }
 0x31c   : > { %11190 = vmatpush3.bf16.msra.mxu0 %v12250_v36  ;;  %v12292_v36 = vld [vmem:[%s12884_s22 + $0x16f8] sm:$0xff]   ;;  %v2420_v37 = vcombine.high %v2404_v32, %v2404_v32 }
 0x31d   : > { %11191 = vmatprep.subr.bf16.mxu0 %v12253_v38  ;;  %v12294_v38 = vld [vmem:[%s12884_s22 + $0x1670] sm:$0xff]  }
 0x31e   : > { %11212 = vmatpush3.bf16.msra.mxu1 %v12252_v39  ;;  %v12293_v39 = vld [vmem:[%s12884_s22 + $0x16b8] sm:$0xff]  }
 0x31f   : > { %11213 = vmatprep.subr.bf16.mxu1 %v12255_v43  ;;  %v12295_v43 = vld [vmem:[%s12884_s22 + $0x1630] sm:$0xff]  }
 0x320   : > { %11192 = vmatpush3.bf16.msra.mxu0 %v12254_v44 }
 0x321   : > { %11221 = vmatprep.subr.bf16.mxu0 %v12257_v48  ;;  %v12297_v48 = vld [vmem:[%s12884_s22 + $0x16b0] sm:$0xff]  }
 0x322   : > { %11214 = vmatpush3.bf16.msra.mxu1 %v12256_v49 }
 0x323   : > { %v10929_v58 = vpop.f32.mrf.mxu0  ;;  %8929 = vmatmul.mubr.bf16.vlgmr.msra.gmra.mxu0 %v2397_v47  ;;  %11243 = vmatprep.subr.bf16.mxu1 %v12259_v51 }
 0x324   : > { %11222 = vmatpush3.bf16.msra.mxu0 %v12258_v53  ;;  %9008 = vmatprep.mubr.bf16.mxu0 %v2418_v52  ;;  %v12300_v52 = vld [vmem:[%s12884_s22 + $0x16e8] sm:$0xff]  }
 0x325   : > { %v10930_v59 = vpop.f32.mrf.mxu0  ;;  %v10951_v62 = vpop.f32.mrf.mxu1  ;;  %8969 = vmatmul.mubr.bf16.vlgmr.msra.gmra.mxu1 %v2419_v54  ;;  %11223 = vmatprep.subr.bf16.mxu0 %v12261_v55  ;;  %v12299_v54 = vld [vmem:[%s12884_s22 + $0x1628] sm:$0xff]  }
 0x326   : > { %v10931_v0 = vadd.f32 %v10930_v59, %v10929_v58  ;;  %11244 = vmatpush3.bf16.msra.mxu1 %v12260_v56  ;;  %9048 = vmatprep.mubr.bf16.mxu1 %v2422_v57  ;;  %v12302_v56 = vld [vmem:[%s12884_s22 + $0x1660] sm:$0xff]  }
 0x327   : > { %v10932_v2 = vpop.f32.mrf.mxu0  ;;  %v10952_v3 = vpop.f32.mrf.mxu1  ;;  %11245 = vmatprep.subr.bf16.mxu1 %v12263_v60  ;;  %v12301_v60 = vld [vmem:[%s12884_s22 + $0x16a8] sm:$0xff]  }
 0x328   : > { %v8451_v5 = vadd.f32 %v10931_v0, %v13717_v18  ;;  %v10953_v6 = vadd.f32 %v10952_v3, %v10951_v62  ;;  %11224 = vmatpush3.bf16.msra.mxu0 %v12262_v61  ;;  %v12275_v18 = vld [vmem:[%s12884_s22 + $0x15d8] sm:$0xff]   ;;  %v12304_v61 = vld [vmem:[%s12884_s22 + $0x16e0] sm:$0xff]   ;;  %v12310_v3 = vld [vmem:[%s12884_s22 + $0x1650] sm:$0xff]  }
 0x329   : > { %v10933_v8 = vpop.f32.mrf.mxu0  ;;  %11225 = vmatprep.subr.bf16.mxu0 %v12265_v63  ;;  %v10954_v10 = vpop.f32.mrf.mxu1  ;;  %v12303_v62 = vld [vmem:[%s12884_s22 + $0x1620] sm:$0xff]   ;;  %v12306_v63 = vld [vmem:[%s12884_s22 + $0x1658] sm:$0xff]  }
 0x32a   : > { %v13762_v12 = vadd.f32 %v10953_v6, %v8451_v5  ;;  %11246 = vmatpush3.bf16.msra.mxu1 %v12264_v1  ;;  %v12305_v0 = vld [vmem:[%s12884_s22 + $0x16a0] sm:$0xff]   ;;  %v12308_v1 = vld [vmem:[%s12884_s22 + $0x16d8] sm:$0xff]   ;;  %v12312_v5 = vld [vmem:[%s12884_s22 + $0x16d0] sm:$0xff]  }
 0x32b   : > { %11247 = vmatprep.subr.bf16.mxu1 %v12267_v4  ;;  %v10955_v14 = vpop.f32.mrf.mxu1  ;;  %v12307_v2 = vld [vmem:[%s12884_s22 + $0x1618] sm:$0xff]   ;;  %v12311_v6 = vld [vmem:[%s12884_s22 + $0x1610] sm:$0xff]  }
 0x32c   : > { %11226 = vmatpush3.bf16.msra.mxu0 %v12266_v7  ;;  %v12309_v4 = vld [vmem:[%s12884_s22 + $0x1698] sm:$0xff]   ;;  %v12314_v7 = vld [vmem:[%s12884_s22 + $0x1648] sm:$0xff]   ;;  %v12313_v8 = vld [vmem:[%s12884_s22 + $0x1690] sm:$0xff]  }
 0x32d   : > { %11227 = vmatprep.subr.bf16.mxu0 %v12269_v9  ;;  %v12316_v9 = vld [vmem:[%s12884_s22 + $0x16c8] sm:$0xff]   ;;  %v301_v10 = vld [vmem:[%s12876_s24 + $0x58] sm:$0xff]  ;;  %v12318_v14 = vld [vmem:[%s12884_s22 + $0x1640] sm:$0xff]  }
 0x32e   : > { %11248 = vmatpush3.bf16.msra.mxu1 %v12268_v11  ;;  %v2430_v11 = vrot.slane %v301_v10, %v12939_v42 }
 0x32f   : > { %11249 = vmatprep.subr.bf16.mxu1 %v12271_v13  ;;  %v2423_v13 = vcombine.high %v301_v10, %v301_v10  ;;  %v12354_v10 = vld [vmem:[%s12884_s22 + $0x1780] sm:$0xff]  }
 0x330   : > { %11228 = vmatpush3.bf16.msra.mxu0 %v12270_v15  ;;  %v12317_v15 = vld [vmem:[%s12884_s22 + $0x1688] sm:$0xff]  }
 0x331   : > { %11229 = vmatprep.subr.bf16.mxu0 %v12273_v16  ;;  %v2438_v16 = vcombine.high %v2430_v11, %v2430_v11 }
 0x332   : > { %11250 = vmatpush3.bf16.msra.mxu1 %v12272_v17  ;;  %v13821_v17 = vrot.slane %v2423_v13, %v12939_v42  ;;  %v12357_v13 = vld [vmem:[%s12884_s22 + $0x1870] sm:$0xff]  }
 0x333   : > { %11251 = vmatprep.subr.bf16.mxu1 %v12275_v18  ;;  %v12320_v18 = vld [vmem:[%s12884_s22 + $0x16c0] sm:$0xff]  }
 0x334   : > { %11230 = vmatpush3.bf16.msra.mxu0 %v12274_v19  ;;  %v12319_v19 = vld [vmem:[%s12884_s22 + $0x1600] sm:$0xff]  }
 0x335   : > { %11231 = vmatprep.subr.bf16.mxu0 %v12277_v21  ;;  %v2460_v21 = vrot.slane %v2438_v16, %v12939_v42 }
 0x336   : > { %11252 = vmatpush3.bf16.msra.mxu1 %v12276_v20  ;;  %v2439_v20 = vcombine.high %v13821_v17, %v13821_v17 }
 0x337   : > { %11253 = vmatprep.subr.bf16.mxu1 %v12279_v22  ;;  %v2446_v22 = vrot.slane %v2430_v11, %v12939_v42 }
 0x338   : > { %11232 = vmatpush3.bf16.msra.mxu0 %v12278_v23  ;;  %v12322_v23 = vld [vmem:[%s12884_s22 + $0x1778] sm:$0xff]  }
 0x339   : > { %11233 = vmatprep.subr.bf16.mxu0 %v12281_v24  ;;  %v12321_v24 = vld [vmem:[%s12884_s22 + $0x1680] sm:$0xff]  }
 0x33a   : > { %11254 = vmatpush3.bf16.msra.mxu1 %v12280_v25  ;;  %v2470_v25 = vcombine.high %v2460_v21, %v2460_v21 }
 0x33b   : > { %11255 = vmatprep.subr.bf16.mxu1 %v12283_v27  ;;  %v2467_v27 = vrot.slane %v2439_v20, %v12939_v42 }
 0x33c   : > { %11234 = vmatpush3.bf16.msra.mxu0 %v12282_v26  ;;  %v12324_v26 = vld [vmem:[%s12884_s22 + $0x17f8] sm:$0xff]  }
 0x33d   : > { %11235 = vmatprep.subr.bf16.mxu0 %v12285_v28  ;;  %v12323_v28 = vld [vmem:[%s12884_s22 + $0x1738] sm:$0xff]  }
 0x33e   : > { %11256 = vmatpush3.bf16.msra.mxu1 %v12284_v29  ;;  %v2468_v29 = vcombine.high %v2446_v22, %v2446_v22 }
 0x33f   : > { %11257 = vmatprep.subr.bf16.mxu1 %v12287_v30  ;;  %v12326_v30 = vld [vmem:[%s12884_s22 + $0x1770] sm:$0xff]  }
 0x340   : > { %11236 = vmatpush3.bf16.msra.mxu0 %v12286_v31  ;;  %v12325_v31 = vld [vmem:[%s12884_s22 + $0x17b8] sm:$0xff]  }
 0x341   : > { %11265 = vmatprep.subr.bf16.mxu0 %v12290_v33 }
 0x342   : > { %11258 = vmatpush3.bf16.msra.mxu1 %v12289_v35  ;;  %v12328_v35 = vld [vmem:[%s12884_s22 + $0x17f0] sm:$0xff]  }
 0x343   : > { %v10973_v40 = vpop.f32.mrf.mxu0  ;;  %9009 = vmatmul.mubr.bf16.vlgmr.msra.gmra.mxu0 %v2404_v32  ;;  %11287 = vmatprep.subr.bf16.mxu1 %v12292_v36  ;;  %v2471_v32 = vcombine.high %v2467_v27, %v2467_v27  ;;  %v12327_v36 = vld [vmem:[%s12884_s22 + $0x1730] sm:$0xff]  }
 0x344   : > { %11266 = vmatpush3.bf16.msra.mxu0 %v12291_v34  ;;  %9088 = vmatprep.mubr.bf16.mxu0 %v2460_v21 }
 0x345   : > { %v10974_v44 = vpop.f32.mrf.mxu0  ;;  %v10995_v45 = vpop.f32.mrf.mxu1  ;;  %9049 = vmatmul.mubr.bf16.vlgmr.msra.gmra.mxu1 %v2420_v37  ;;  %11267 = vmatprep.subr.bf16.mxu0 %v12294_v38  ;;  %v12330_v38 = vld [vmem:[%s12884_s22 + $0x1768] sm:$0xff]  }
 0x346   : > { %v10975_v47 = vadd.f32 %v10974_v44, %v10973_v40  ;;  %11288 = vmatpush3.bf16.msra.mxu1 %v12293_v39  ;;  %9128 = vmatprep.mubr.bf16.mxu1 %v2470_v25  ;;  %v12329_v40 = vld [vmem:[%s12884_s22 + $0x17b0] sm:$0xff]   ;;  %v12332_v44 = vld [vmem:[%s12884_s22 + $0x17e8] sm:$0xff]  }
 0x347   : > { %v10976_v49 = vpop.f32.mrf.mxu0  ;;  %v10996_v50 = vpop.f32.mrf.mxu1  ;;  %11289 = vmatprep.subr.bf16.mxu1 %v12296_v41 }
 0x348   : > { %v8531_v51 = vadd.f32 %v10975_v47, %v13762_v12  ;;  %v10997_v53 = vadd.f32 %v10996_v50, %v10995_v45  ;;  %11268 = vmatpush3.bf16.msra.mxu0 %v12295_v43  ;;  %v12315_v12 = vld [vmem:[%s12884_s22 + $0x1608] sm:$0xff]   ;;  %v12334_v49 = vld [vmem:[%s12884_s22 + $0x1760] sm:$0xff]  }
 0x349   : > { %v10977_v55 = vpop.f32.mrf.mxu0  ;;  %11269 = vmatprep.subr.bf16.mxu0 %v12298_v46  ;;  %v10998_v57 = vpop.f32.mrf.mxu1  ;;  %v12331_v47 = vld [vmem:[%s12884_s22 + $0x1728] sm:$0xff]  }
 0x34a   : > { %v13799_v58 = vadd.f32 %v10997_v53, %v8531_v51  ;;  %11290 = vmatpush3.bf16.msra.mxu1 %v12297_v48  ;;  %v12333_v51 = vld [vmem:[%s12884_s22 + $0x17a8] sm:$0xff]   ;;  %v12336_v53 = vld [vmem:[%s12884_s22 + $0x17e0] sm:$0xff]  }
 0x34b   : > { %11291 = vmatprep.subr.bf16.mxu1 %v12300_v52  ;;  %v10999_v59 = vpop.f32.mrf.mxu1  ;;  %v12335_v55 = vld [vmem:[%s12884_s22 + $0x1720] sm:$0xff]  }
 0x34c   : > { %11270 = vmatpush3.bf16.msra.mxu0 %v12299_v54  ;;  %v12337_v57 = vld [vmem:[%s12884_s22 + $0x17a0] sm:$0xff]   ;;  %v12341_v59 = vld [vmem:[%s12884_s22 + $0x1798] sm:$0xff]  }
 0x34d   : > { %11271 = vmatprep.subr.bf16.mxu0 %v12302_v56  ;;  %v12338_v56 = vld [vmem:[%s12884_s22 + $0x1758] sm:$0xff]  }
 0x34e   : > { %11292 = vmatpush3.bf16.msra.mxu1 %v12301_v60  ;;  %v12339_v60 = vld [vmem:[%s12884_s22 + $0x1718] sm:$0xff]  }
 0x34f   : > { %11293 = vmatprep.subr.bf16.mxu1 %v12304_v61  ;;  %v12342_v61 = vld [vmem:[%s12884_s22 + $0x1750] sm:$0xff]  }
 0x350   : > { %11272 = vmatpush3.bf16.msra.mxu0 %v12303_v62  ;;  %v12344_v62 = vld [vmem:[%s12884_s22 + $0x17d0] sm:$0xff]  }
 0x351   : > { %11273 = vmatprep.subr.bf16.mxu0 %v12306_v63  ;;  %v12343_v63 = vld [vmem:[%s12884_s22 + $0x1710] sm:$0xff]  }
 0x352   : > { %11294 = vmatpush3.bf16.msra.mxu1 %v12305_v0  ;;  %v12346_v0 = vld [vmem:[%s12884_s22 + $0x1748] sm:$0xff]  }
 0x353   : > { %11295 = vmatprep.subr.bf16.mxu1 %v12308_v1  ;;  %v12345_v1 = vld [vmem:[%s12884_s22 + $0x1790] sm:$0xff]  }
 0x354   : > { %11274 = vmatpush3.bf16.msra.mxu0 %v12307_v2  ;;  %v12348_v2 = vld [vmem:[%s12884_s22 + $0x17c8] sm:$0xff]  }
 0x355   : > { %11275 = vmatprep.subr.bf16.mxu0 %v12310_v3  ;;  %v12347_v3 = vld [vmem:[%s12884_s22 + $0x1708] sm:$0xff]  }
 0x356   : > { %11296 = vmatpush3.bf16.msra.mxu1 %v12309_v4  ;;  %v12350_v4 = vld [vmem:[%s12884_s22 + $0x1740] sm:$0xff]  }
 0x357   : > { %11297 = vmatprep.subr.bf16.mxu1 %v12312_v5  ;;  %v12349_v5 = vld [vmem:[%s12884_s22 + $0x1788] sm:$0xff]  }
 0x358   : > { %11276 = vmatpush3.bf16.msra.mxu0 %v12311_v6  ;;  %v12352_v6 = vld [vmem:[%s12884_s22 + $0x17c0] sm:$0xff]  }
 0x359   : > { %11277 = vmatprep.subr.bf16.mxu0 %v12314_v7  ;;  %v12351_v7 = vld [vmem:[%s12884_s22 + $0x1700] sm:$0xff]  }
 0x35a   : > { %11298 = vmatpush3.bf16.msra.mxu1 %v12313_v8  ;;  %v2453_v8 = vrot.slane %v13821_v17, %v12939_v42 }
 0x35b   : > { %11299 = vmatprep.subr.bf16.mxu1 %v12316_v9  ;;  %v12355_v9 = vld [vmem:[%s12884_s22 + $0x1878] sm:$0xff]  }
 0x35c   : > { %11278 = vmatpush3.bf16.msra.mxu0 %v12315_v12  ;;  %v12356_v12 = vld [vmem:[%s12884_s22 + $0x1838] sm:$0xff]   ;;  %v2469_v11 = vcombine.high %v2453_v8, %v2453_v8 }
 0x35d   : > { %11279 = vmatprep.subr.bf16.mxu0 %v12318_v14 }
 0x35e   : > { %11300 = vmatpush3.bf16.msra.mxu1 %v12317_v15  ;;  %v12358_v15 = vld [vmem:[%s12884_s22 + $0x1830] sm:$0xff]  }
 0x35f   : > { %11301 = vmatprep.subr.bf16.mxu1 %v12320_v18  ;;  %v12359_v18 = vld [vmem:[%s12884_s22 + $0x1868] sm:$0xff]  }
 0x360   : > { %11280 = vmatpush3.bf16.msra.mxu0 %v12319_v19 }
 0x361   : > { %11309 = vmatprep.subr.bf16.mxu0 %v12322_v23 }
 0x362   : > { %11302 = vmatpush3.bf16.msra.mxu1 %v12321_v24  ;;  %v12360_v24 = vld [vmem:[%s12884_s22 + $0x1828] sm:$0xff]  }
 0x363   : > { %v11017_v33 = vpop.f32.mrf.mxu0  ;;  %9089 = vmatmul.mubr.bf16.vlgmr.msra.gmra.mxu0 %v2446_v22  ;;  %11331 = vmatprep.subr.bf16.mxu1 %v12324_v26 }
 0x364   : > { %11310 = vmatpush3.bf16.msra.mxu0 %v12323_v28  ;;  %9168 = vmatprep.mubr.bf16.mxu0 %v2467_v27  ;;  %v12361_v27 = vld [vmem:[%s12884_s22 + $0x1860] sm:$0xff]   ;;  %v9504_v28 = vld.sshfl [vmem:[%s12876_s24 + $0x60] sm:$0x11 pattern:$0x75316420] }
 0x365   : > { %v11018_v34 = vpop.f32.mrf.mxu0  ;;  %v11039_v37 = vpop.f32.mrf.mxu1  ;;  %9129 = vmatmul.mubr.bf16.vlgmr.msra.gmra.mxu1 %v2468_v29  ;;  %11311 = vmatprep.subr.bf16.mxu0 %v12326_v30  ;;  %v2479_v30 = vcombine.high %v9504_v28, %v9504_v28 }
 0x366   : > { %v11019_v39 = vadd.f32 %v11018_v34, %v11017_v33  ;;  %11332 = vmatpush3.bf16.msra.mxu1 %v12325_v31  ;;  %9208 = vmatprep.mubr.bf16.mxu1 %v2471_v32  ;;  %v12362_v32 = vld [vmem:[%s12884_s22 + $0x1820] sm:$0xff]   ;;  %v12365_v34 = vld [vmem:[%s12884_s22 + $0x1850] sm:$0xff]  }
 0x367   : > { %v11020_v41 = vpop.f32.mrf.mxu0  ;;  %v11040_v43 = vpop.f32.mrf.mxu1  ;;  %11333 = vmatprep.subr.bf16.mxu1 %v12328_v35  ;;  %v2493_v33 = vrot.slane %v2479_v30, %v12939_v42  ;;  %v12363_v35 = vld [vmem:[%s12884_s22 + $0x1858] sm:$0xff]  }
 0x368   : > { %v8611_v45 = vadd.f32 %v11019_v39, %v13799_v58  ;;  %v11041_v46 = vadd.f32 %v11040_v43, %v11039_v37  ;;  %11312 = vmatpush3.bf16.msra.mxu0 %v12327_v36  ;;  %v12340_v58 = vld [vmem:[%s12884_s22 + $0x17d8] sm:$0xff]   ;;  %v12366_v37 = vld [vmem:[%s12884_s22 + $0x1810] sm:$0xff]   ;;  %v12368_v39 = vld [vmem:[%s12884_s22 + $0x1808] sm:$0xff]   ;;  %v2486_v43 = vrot.slane %v9504_v28, %v12939_v42 }
 0x369   : > { %v11021_v48 = vpop.f32.mrf.mxu0  ;;  %11313 = vmatprep.subr.bf16.mxu0 %v12330_v38  ;;  %v11042_v50 = vpop.f32.mrf.mxu1  ;;  %v12364_v36 = vld [vmem:[%s12884_s22 + $0x1818] sm:$0xff]   ;;  %v12367_v38 = vld [vmem:[%s12884_s22 + $0x1848] sm:$0xff]   ;;  %v12370_v41 = vld [vmem:[%s12884_s22 + $0x1800] sm:$0xff]  }
 0x36a   : > { %v13844_v52 = vadd.f32 %v11041_v46, %v8611_v45  ;;  %11334 = vmatpush3.bf16.msra.mxu1 %v12329_v40  ;;  %v12369_v40 = vld [vmem:[%s12884_s22 + $0x1840] sm:$0xff]  }
 0x36b   : > { %11335 = vmatprep.subr.bf16.mxu1 %v12332_v44  ;;  %v11043_v54 = vpop.f32.mrf.mxu1 }
 0x36c   : > { %11314 = vmatpush3.bf16.msra.mxu0 %v12331_v47 }
 0x36d   : > { %11315 = vmatprep.subr.bf16.mxu0 %v12334_v49 }
 0x36e   : > { %11336 = vmatpush3.bf16.msra.mxu1 %v12333_v51 }
 0x36f   : > { %11337 = vmatprep.subr.bf16.mxu1 %v12336_v53 }
 0x370   : > { %11316 = vmatpush3.bf16.msra.mxu0 %v12335_v55 }
 0x371   : > { %11317 = vmatprep.subr.bf16.mxu0 %v12338_v56 }
 0x372   : > { %11338 = vmatpush3.bf16.msra.mxu1 %v12337_v57 }
 0x373   : > { %11339 = vmatprep.subr.bf16.mxu1 %v12340_v58 }
 0x374   : > { %11318 = vmatpush3.bf16.msra.mxu0 %v12339_v60 }
 0x375   : > { %11319 = vmatprep.subr.bf16.mxu0 %v12342_v61 }
 0x376   : > { %11340 = vmatpush3.bf16.msra.mxu1 %v12341_v59 }
 0x377   : > { %11341 = vmatprep.subr.bf16.mxu1 %v12344_v62 }
 0x378   : > { %11320 = vmatpush3.bf16.msra.mxu0 %v12343_v63 }
 0x379   : > { %11321 = vmatprep.subr.bf16.mxu0 %v12346_v0 }
 0x37a   : > { %11342 = vmatpush3.bf16.msra.mxu1 %v12345_v1 }
 0x37b   : > { %11343 = vmatprep.subr.bf16.mxu1 %v12348_v2 }
 0x37c   : > { %11322 = vmatpush3.bf16.msra.mxu0 %v12347_v3 }
 0x37d   : > { %11323 = vmatprep.subr.bf16.mxu0 %v12350_v4 }
 0x37e   : > { %11344 = vmatpush3.bf16.msra.mxu1 %v12349_v5 }
 0x37f   : > { %11345 = vmatprep.subr.bf16.mxu1 %v12352_v6 }
 0x380   : > { %11324 = vmatpush3.bf16.msra.mxu0 %v12351_v7 }
 0x381   : > { %11353 = vmatprep.subr.bf16.mxu0 %v12355_v9 }
 0x382   : > { %11346 = vmatpush3.bf16.msra.mxu1 %v12354_v10 }
 0x383   : > { %v11061_v14 = vpop.f32.mrf.mxu0  ;;  %9169 = vmatmul.mubr.bf16.vlgmr.msra.gmra.mxu0 %v2453_v8 }
 0x384   : > { %11354 = vmatpush3.bf16.msra.mxu0 %v12356_v12  ;;  %9248 = vmatprep.mubr.bf16.mxu0 %v2493_v33 }
 0x385   : > { %v11062_v16 = vpop.f32.mrf.mxu0  ;;  %v11083_v17 = vpop.f32.mrf.mxu1  ;;  %9209 = vmatmul.mubr.bf16.vlgmr.msra.gmra.mxu1 %v2469_v11  ;;  %11355 = vmatprep.subr.bf16.mxu0 %v12357_v13 }
 0x386   : > { %v11063_v19 = vadd.f32 %v11062_v16, %v11061_v14 }
 0x387   : > { %v11064_v21 = vpop.f32.mrf.mxu0  ;;  %v11084_v20 = vpop.f32.mrf.mxu1 }
 0x388   : > { %v8691_v22 = vadd.f32 %v11063_v19, %v13844_v52  ;;  %v11085_v23 = vadd.f32 %v11084_v20, %v11083_v17  ;;  %11356 = vmatpush3.bf16.msra.mxu0 %v12358_v15 }
 0x389   : > { %v11065_v25 = vpop.f32.mrf.mxu0  ;;  %11357 = vmatprep.subr.bf16.mxu0 %v12359_v18  ;;  %v11086_v26 = vpop.f32.mrf.mxu1 }
 0x38a   : > { %v8731_v29 = vadd.f32 %v11085_v23, %v8691_v22 }
 0x38b   : > { %v11087_v31 = vpop.f32.mrf.mxu1 }
 0x38c   : > { %11358 = vmatpush3.bf16.msra.mxu0 %v12360_v24 }
 0x38d   : > { %11359 = vmatprep.subr.bf16.mxu0 %v12361_v27 }
 0x390   : > { %11360 = vmatpush3.bf16.msra.mxu0 %v12362_v32 }
 0x391   : > { %11361 = vmatprep.subr.bf16.mxu0 %v12363_v35 }
 0x394   : > { %11362 = vmatpush3.bf16.msra.mxu0 %v12364_v36 }
 0x395   : > { %11363 = vmatprep.subr.bf16.mxu0 %v12365_v34 }
 0x398   : > { %11364 = vmatpush3.bf16.msra.mxu0 %v12366_v37 }
 0x399   : > { %11365 = vmatprep.subr.bf16.mxu0 %v12367_v38 }
 0x39c   : > { %11366 = vmatpush3.bf16.msra.mxu0 %v12368_v39 }
 0x39d   : > { %11367 = vmatprep.subr.bf16.mxu0 %v12369_v40 }
 0x3a0   : > { %11368 = vmatpush3.bf16.msra.mxu0 %v12370_v41 }
 0x3a3   : > { %v11105_v44 = vpop.f32.mrf.mxu0  ;;  %9249 = vmatmul.mubr.bf16.vlgmr.msra.gmra.mxu0 %v2486_v43 }
 0x3a5   : > { %v11106_v45 = vpop.f32.mrf.mxu0  ;;  %v11127_v46 = vpop.f32.mrf.mxu1 }
 0x3a6   : > { %v11107_v47 = vadd.f32 %v11106_v45, %v11105_v44 }
 0x3a7   : > { %v11108_v48 = vpop.f32.mrf.mxu0  ;;  %v11128_v49 = vpop.f32.mrf.mxu1 }
 0x3a8   : > { %v8771_v50 = vadd.f32 %v11107_v47, %v8731_v29  ;;  %v11129_v52 = vadd.f32 %v11128_v49, %v11127_v46 }
 0x3a9   : > { %v11109_v51 = vpop.f32.mrf.mxu0  ;;  %v11130_v53 = vpop.f32.mrf.mxu1 }
 0x3aa   : > { %v8811_v54 = vadd.f32 %v11129_v52, %v8771_v50 }
 0x3ab   : > { %v11131_v55 = vpop.f32.mrf.mxu1 }
 0x3ac   : > { %v289_v55 = vld [vmem:[#allocation2] sm:$0x3] }
 0x3c3   : > { %v11149_v56 = vpop.f32.mrf.mxu0 }
 0x3c5   : > { %v11150_v57 = vpop.f32.mrf.mxu0  ;;  %v11171_v58 = vpop.f32.mrf.mxu1 }
 0x3c6   : > { %v11151_v60 = vadd.f32 %v11150_v57, %v11149_v56 }
 0x3c7   : > { %v11152_v61 = vpop.f32.mrf.mxu0  ;;  %v11172_v42 = vpop.f32.mrf.mxu1 }
 0x3c8   : > { %v8851_v59 = vadd.f32 %v11151_v60, %v8811_v54  ;;  %v11173_v62 = vadd.f32 %v11172_v42, %v11171_v58 }
 0x3c9   : > { %v11153_v63 = vpop.f32.mrf.mxu0  ;;  %v11174_v0 = vpop.f32.mrf.mxu1 }
 0x3ca   : > { %v8891_v1 = vadd.f32 %v11173_v62, %v8851_v59 }
 0x3cb   : > { %v11175_v2 = vpop.f32.mrf.mxu1 }
 0x3e3   : > { %v11193_v3 = vpop.f32.mrf.mxu0 }
 0x3e5   : > { %v11194_v4 = vpop.f32.mrf.mxu0  ;;  %v11215_v5 = vpop.f32.mrf.mxu1 }
 0x3e6   : > { %v11195_v6 = vadd.f32 %v11194_v4, %v11193_v3 }
 0x3e7   : > { %v11196_v7 = vpop.f32.mrf.mxu0  ;;  %v11216_v8 = vpop.f32.mrf.mxu1 }
 0x3e8   : > { %v8931_v9 = vadd.f32 %v11195_v6, %v8891_v1  ;;  %v11217_v10 = vadd.f32 %v11216_v8, %v11215_v5 }
 0x3e9   : > { %v11197_v12 = vpop.f32.mrf.mxu0  ;;  %v11218_v11 = vpop.f32.mrf.mxu1 }
 0x3ea   : > { %v8971_v13 = vadd.f32 %v11217_v10, %v8931_v9 }
 0x3eb   : > { %v11219_v14 = vpop.f32.mrf.mxu1 }
 0x403   : > { %v11237_v15 = vpop.f32.mrf.mxu0 }
 0x405   : > { %v11238_v16 = vpop.f32.mrf.mxu0  ;;  %v11259_v17 = vpop.f32.mrf.mxu1 }
 0x406   : > { %v11239_v18 = vadd.f32 %v11238_v16, %v11237_v15 }
 0x407   : > { %v11240_v19 = vpop.f32.mrf.mxu0  ;;  %v11260_v21 = vpop.f32.mrf.mxu1 }
 0x408   : > { %v9011_v20 = vadd.f32 %v11239_v18, %v8971_v13  ;;  %v11261_v22 = vadd.f32 %v11260_v21, %v11259_v17 }
 0x409   : > { %v11241_v23 = vpop.f32.mrf.mxu0  ;;  %v11262_v24 = vpop.f32.mrf.mxu1 }
 0x40a   : > { %v9051_v25 = vadd.f32 %v11261_v22, %v9011_v20 }
 0x40b   : > { %v11263_v27 = vpop.f32.mrf.mxu1 }
 0x423   : > { %v11281_v26 = vpop.f32.mrf.mxu0 }
 0x425   : > { %v11282_v28 = vpop.f32.mrf.mxu0  ;;  %v11303_v29 = vpop.f32.mrf.mxu1 }
 0x426   : > { %v11283_v44 = vadd.f32 %v11282_v28, %v11281_v26 }
 0x427   : > { %v11284_v30 = vpop.f32.mrf.mxu0  ;;  %v11304_v31 = vpop.f32.mrf.mxu1 }
 0x428   : > { %v9091_v45 = vadd.f32 %v11283_v44, %v9051_v25  ;;  %v11305_v46 = vadd.f32 %v11304_v31, %v11303_v29 }
 0x429   : > { %v11285_v32 = vpop.f32.mrf.mxu0  ;;  %v11306_v33 = vpop.f32.mrf.mxu1 }
 0x42a   : > { %v9131_v48 = vadd.f32 %v11305_v46, %v9091_v45 }
 0x42b   : > { %v11307_v35 = vpop.f32.mrf.mxu1 }
 0x443   : > { %v11325_v36 = vpop.f32.mrf.mxu0 }
 0x445   : > { %v11326_v34 = vpop.f32.mrf.mxu0  ;;  %v11347_v37 = vpop.f32.mrf.mxu1 }
 0x446   : > { %v11327_v47 = vadd.f32 %v11326_v34, %v11325_v36 }
 0x447   : > { %v11328_v38 = vpop.f32.mrf.mxu0  ;;  %v11348_v39 = vpop.f32.mrf.mxu1 }
 0x448   : > { %v9171_v49 = vadd.f32 %v11327_v47, %v9131_v48  ;;  %v11349_v50 = vadd.f32 %v11348_v39, %v11347_v37 }
 0x449   : > { %v11329_v40 = vpop.f32.mrf.mxu0  ;;  %v11350_v41 = vpop.f32.mrf.mxu1 }
 0x44a   : > { %v9211_v53 = vadd.f32 %v11349_v50, %v9171_v49 }
 0x44b   : > { %v11351_v43 = vpop.f32.mrf.mxu1 }
 0x463   : > { %v11369_v52 = vpop.f32.mrf.mxu0 }
 0x465   : > { %v11370_v51 = vpop.f32.mrf.mxu0 }
 0x466   : > { %v11371_v54 = vadd.f32 %v11370_v51, %v11369_v52 }
 0x467   : > { %v11372_v56 = vpop.f32.mrf.mxu0 }
 0x468   : > { %v9251_v57 = vadd.f32 %v11371_v54, %v9211_v53  ;;  %9261 = sbr.rel (%p10289_p1) target bundleno = 1361 (0x551), region = 52 }
 0x469   : > { %v11373_v58 = vpop.f32.mrf.mxu0 }
 0x46a   : > { %v9256_v60 = vadd.f32 %v9251_v57, %v289_v55 }
 0x46c   : > { %9257 = vst [vmem:[#allocation2] sm:$0x3] %v9256_v60 }
 0x46d   : > { %v9278_v61 = vld [vmem:[%s12894_s29 + $0x78] sm:$0xff]  ;;  %v12618_v42 = vmov 0.0   ;;  %v9277_v59 = vld [vmem:[%s12894_s29 + $0x70] sm:$0xff]  ;;  %vm12619_vm0 = vmmov 0   ;;  %v9276_v62 = vld [vmem:[%s12894_s29 + $0x68] sm:$0xff] }
 0x46e   : > { %11392 = vmatprep.subr.mxu0 %v12618_v42  ;;  %11424 = vmatprep.mubr.msk.f32.mxu0 %vm12619_vm0, %v12618_v42  ;;  %v9275_v63 = vld [vmem:[%s12894_s29 + $0x60] sm:$0xff]  ;;  %v9274_v0 = vld [vmem:[%s12894_s29 + $0x58] sm:$0xff]  ;;  %v9273_v1 = vld [vmem:[%s12894_s29 + $0x50] sm:$0xff] }
 0x46f   : > { %11393 = vmatpush3.msra.mxu0 %v9278_v61  ;;  %v9272_v2 = vld [vmem:[%s12894_s29 + $0x48] sm:$0xff]  ;;  %v9271_v3 = vld [vmem:[%s12894_s29 + $0x40] sm:$0xff]  ;;  %v9270_v4 = vld [vmem:[%s12894_s29 + $0x38] sm:$0xff] }
 0x470   : > { %11394 = vmatprep.subr.mxu0 %v12618_v42  ;;  %v9269_v5 = vld [vmem:[%s12894_s29 + $0x30] sm:$0xff]  ;;  %v9268_v6 = vld [vmem:[%s12894_s29 + $0x28] sm:$0xff]  ;;  %v9267_v7 = vld [vmem:[%s12894_s29 + $0x20] sm:$0xff] }
 0x471   : > { %11395 = vmatpush3.msra.mxu0 %v9277_v59  ;;  %v9266_v8 = vld [vmem:[%s12894_s29 + $0x18] sm:$0xff]  ;;  %v9265_v9 = vld [vmem:[%s12894_s29 + $0x10] sm:$0xff]  ;;  %v9264_v10 = vld [vmem:[%s12894_s29 + $0x8] sm:$0xff] }
 0x472   : > { %11396 = vmatprep.subr.mxu0 %v12618_v42  ;;  %v9263_v12 = vld [vmem:[%s12894_s29] sm:$0xff] }
 0x473   : > { %11397 = vmatpush3.msra.mxu0 %v9276_v62  ;;  %v9262_v11 = vld [vmem:[#allocation2] sm:$0x3] }
 0x474   : > { %11398 = vmatprep.subr.mxu0 %v12618_v42 }
 0x475   : > { %11399 = vmatpush3.msra.mxu0 %v9275_v63 }
 0x476   : > { %11400 = vmatprep.subr.mxu0 %v12618_v42 }
 0x477   : > { %11401 = vmatpush3.msra.mxu0 %v9274_v0 }
 0x478   : > { %11402 = vmatprep.subr.mxu0 %v12618_v42 }
 0x479   : > { %11403 = vmatpush3.msra.mxu0 %v9273_v1 }
 0x47a   : > { %11404 = vmatprep.subr.mxu0 %v12618_v42 }
 0x47b   : > { %11405 = vmatpush3.msra.mxu0 %v9272_v2 }
 0x47c   : > { %11406 = vmatprep.subr.mxu0 %v12618_v42 }
 0x47d   : > { %11407 = vmatpush3.msra.mxu0 %v9271_v3 }
 0x47e   : > { %11408 = vmatprep.subr.mxu0 %v12618_v42 }
 0x47f   : > { %11409 = vmatpush3.msra.mxu0 %v9270_v4 }
 0x480   : > { %11410 = vmatprep.subr.mxu0 %v12618_v42 }
 0x481   : > { %11411 = vmatpush3.msra.mxu0 %v9269_v5 }
 0x482   : > { %11412 = vmatprep.subr.mxu0 %v12618_v42 }
 0x483   : > { %11413 = vmatpush3.msra.mxu0 %v9268_v6 }
 0x484   : > { %11414 = vmatprep.subr.mxu0 %v12618_v42 }
 0x485   : > { %11415 = vmatpush3.msra.mxu0 %v9267_v7 }
 0x486   : > { %11416 = vmatprep.subr.mxu0 %v12618_v42 }
 0x487   : > { %11417 = vmatpush3.msra.mxu0 %v9266_v8 }
 0x488   : > { %11418 = vmatprep.subr.mxu0 %v12618_v42 }
 0x489   : > { %11419 = vmatpush3.msra.mxu0 %v9265_v9 }
 0x48a   : > { %11420 = vmatprep.subr.mxu0 %v12618_v42 }
 0x48b   : > { %11421 = vmatpush3.msra.mxu0 %v9264_v10 }
 0x48c   : > { %11422 = vmatprep.subr.mxu0 %v12618_v42 }
 0x48d   : > { %11423 = vmatpush3.msra.mxu0 %v9263_v12 }
 0x48e   : > { %11425 = vmatmul.mubr.f32.vlgmr.msra.gmra.mxu0 %v9262_v11 }
 0x54e   : > { %v9345_v13 = vpop.f32.mrf.mxu0 }
 0x54f   : > { %9349 = vst [vmem:[%s12901_s15] sm:$0x3] %v9345_v13 }
 0x550   : > { %v11426_v14 = vpop.f32.mrf.mxu0 }
 0x551 PF: > { %s14022_s21 = sld [smem:[#allocation15_spill]]  ;;  %s9364_s23 = sshll.u32 %s12901_s15, 4  ;;  %s9365_s23 = int_to_ptr.vmem [resolvable:$true] %s9364_s23 }
 0x552   : > { %s14023_s27 = sld [smem:[#allocation23_spill]]  ;;  %s9351_s0 = scalar_lea.sflag [#allocation5], %s12891_s1 }
 0x553   : > { %s12455_s26 = scalar_lea.vmem %s9365_s23, 32  ;;  %p14024_p11 = scmp.ne.s32.totalorder %s14012_s9, 0 }
 0x554   : > { %p12456_p9 = scmp.ne.s32.totalorder %s9365_s23, %s12455_s26  ;;  %s12620_s28 = smov [#allocation9]  }
 0x555   : > { %s12459_s22 = sshll.u32 %s12620_s28, 4  ;;  %s12460_s22 = int_to_ptr.vmem [resolvable:$false] %s12459_s22 }
 0x556   : > { %p12457_p5 = pnand %p12456_p9, %p14024_p11  ;;  %s12461_s18 = scalar_lea.vmem %s12460_s22, 64 }
 0x557   : > { %s10291_s4 = sshll.u32 %s14022_s21, 5  ;;  %p12462_p0 = scmp.lt.s32.totalorder %s9365_s23, %s12460_s22 }
 0x558   : > { %s9362_s24 = scalar_lea.hbm %s14023_s27, %s10291_s4  ;;  %p12458_p7 = pneg %p12457_p5 }
 0x559   : > { %p12463_p10 = scmp.lt.s32.totalorder %s12461_s18, %s12455_s26 }
 0x55b   : > { %p12464_p4 = por %p12463_p10, %p12462_p0 }
 0x55d   : > { %p12465_p3 = pnand %p12464_p4, %p12458_p7 }
 0x55f   : > { %12468 = shalt.err (!%p12465_p3)
}
 0x560   : > { %s12469_s29 = scalar_lea.hbm %s9362_s24, 32  ;;  %s12473_s15 = scalar_lea.hbm %s14023_s27, 64 }
 0x561   : > { %p12470_p8 = scmp.ne.s32.totalorder %s9362_s24, %s12469_s29  ;;  %p12474_p6 = scmp.lt.s32.totalorder %s9362_s24, %s14023_s27 }
 0x562   : > { %p12475_p13 = scmp.lt.s32.totalorder %s12473_s15, %s12469_s29 }
 0x563   : > { %p12471_p2 = pnand %p12470_p8, %p14024_p11 }
 0x564   : > { %p12476_p1 = por %p12475_p13, %p12474_p6 }
 0x565   : > { %p12472_p12 = pneg %p12471_p2 }
 0x567   : > { %p12477_p9 = pnand %p12476_p1, %p12472_p12 }
 0x569   : > { %12480 = shalt.err (!%p12477_p9)
}
 0x56a   : > { %11437 = dma.vmem_to_hbm [thread:$0]  (%p14024_p11), %s9365_s23, 32, %s9362_s24, %s9351_s0  }
 0x56b PF: > { %p11454_p5 = scmp.ge.s32.totalorder %s12607_s25, 2  ;;  %s9376_s21 = sand.u32 1, %s12555_s12  }
 0x56c   : > { %p14025_p7 = scmp.ne.s32.totalorder %s14015_s5, 0  ;;  %s9377_s4 = scalar_lea.sflag [#allocation5], %s9376_s21 }
 0x56e   : > { %p11450_p0 = pnand %p11454_p5, %p14025_p7 }
 0x570   : > { %p11451_p10 = pneg %p11450_p0 }
 0x572   : > { %12550 = dma.done.wait (%p11451_p10), %s9377_s4, 32  }
 0x573   : > { %12552 = vsyncadd (%p11451_p10), %s9377_s4, 4294967264  ;;  %s22_s25 = sadd.s32 1, %s12607_s25   ;;  %s14027_s9 = sld [smem:[#allocation20_spill]] }
 0x574   : > { %p13929_p4 = scmp.ge.s32.totalorder %s22_s25, 6   ;;  %s14028_s21 = sld [smem:[#allocation16_spill]] }
 0x575   : > { %s14029_s22 = sld [smem:[#allocation17_spill]]  ;;  %s14032_s12 = smov %s12559_s13 }
 0x576   : > { %s14030_s23 = sld [smem:[#allocation18_spill]]  ;;  %s14033_s13 = smov %s12563_s14 }
 0x577   : > { %s14031_s24 = sld [smem:[#allocation19_spill]]  ;;  %s14034_s14 = smov %s12827_s11 }
 0x578   : > { %s14035_s15 = smov %s12571_s16  ;;  %s14036_s16 = smov %s12575_s17 }
 0x579   : > { %s14037_s17 = smov %s12802_s30  ;;  %s14038_s18 = smov %s12583_s19 }
 0x57a   : > { %s14039_s19 = smov %s12587_s20  ;;  %s14040_s20 = smov %s14027_s9 }
 0x57b   :  { %21 = sbr.rel (!%p13929_p4) target bundleno = 16 (0x10), region = 109 }
 0x580   :  { %9382 = vsyncpa [#allocation4], 1 }
 0x581   :  { %9384 = vsyncpa [#allocation4 + $0x1], 1 }
 0x582   :  { %9385 = vsyncpa [#allocation7], 1 }
 0x583   :  { %9387 = vsyncpa [#allocation7 + $0x1], 1 }
 0x584   :  { %9388 = vsyncpa [#allocation5], 1 }
 0x585   :  { %9390 = vsyncpa [#allocation5 + $0x1], 1 }

</bundles_post_ra>
